<compile_context>
chip_gen: v6e
topology: v6e:2x2x1
jax: 0.10.0
libtpu: 0.0.40
codegen_flags: <defaults>
</compile_context>

<pallas_src>
import functools

import jax
import jax.numpy as jnp
from jax.experimental import pallas as pl
from jax.experimental.pallas import tpu as pltpu


# ---------------------------------------------------------------------------
# In-kernel helpers (pure jnp, traced inside Pallas kernels)
# ---------------------------------------------------------------------------
def _lrelu(a):
    return jnp.maximum(a, 0.2 * a)


def _store_taps(stack_ref, off, x):
    """Write the k=3 conv taps of x into stack_ref rows [off, off + 3*C).

    Rows [off      , off +   C): x shifted right by one lane (x[l-1]), 0 at lane 0
    Rows [off +   C, off + 2*C): x
    Rows [off + 2*C, off + 3*C): x shifted left  by one lane (x[l+1]), 0 at lane L-1

    The halo lives entirely in VMEM (no HBM pre-pad, no MXU shift matrices).
    """
    c, l = x.shape
    v = x.astype(stack_ref.dtype)
    zcol = jnp.zeros((c, 1), stack_ref.dtype)
    stack_ref[off:off + c, 0:1] = zcol
    stack_ref[off:off + c, 1:l] = v[:, 0:l - 1]
    stack_ref[off + c:off + 2 * c, :] = v
    stack_ref[off + 2 * c:off + 3 * c, 0:l - 1] = v[:, 1:l]
    stack_ref[off + 2 * c:off + 3 * c, l - 1:l] = zcol


# ---------------------------------------------------------------------------
# Kernel 1: stand-alone Conv1d k=3 (optional fused LeakyReLU), NCL layout
# ---------------------------------------------------------------------------
def _conv3_kernel(x_ref, w_ref, b_ref, o_ref, stack_ref, *, lrelu):
    x = x_ref[0]                                         # (Cin, L) f32
    _store_taps(stack_ref, 0, x)
    acc = jnp.dot(w_ref[...], stack_ref[...].astype(jnp.bfloat16),
                  preferred_element_type=jnp.float32)    # one MXU dot, K = 3*Cin
    acc = acc + b_ref[...]
    if lrelu:
        acc = _lrelu(acc)
    o_ref[0] = acc.astype(o_ref.dtype)


def conv3_ncl(x, w_cat, b, *, lrelu=False):
    """x: (N, Cin, L) f32; w_cat: (Cout, 3*Cin) bf16 ([t-1|t0|t+1] column blocks);
    b: (Cout, 1) f32 -> (N, Cout, L) f32."""
    N, Cin, L = x.shape
    Cout = w_cat.shape[0]
    kern = functools.partial(_conv3_kernel, lrelu=lrelu)
    return pl.pallas_call(
        kern,
        out_shape=jax.ShapeDtypeStruct((N, Cout, L), jnp.float32),
        grid=(N,),
        in_specs=[pl.BlockSpec((1, Cin, L), lambda n: (n, 0, 0)),
                  pl.BlockSpec((Cout, 3 * Cin), lambda n: (0, 0)),
                  pl.BlockSpec((Cout, 1), lambda n: (0, 0))],
        out_specs=pl.BlockSpec((1, Cout, L), lambda n: (n, 0, 0)),
        scratch_shapes=[pltpu.VMEM((3 * Cin, L), jnp.float32)],
        compiler_params=pltpu.CompilerParams(
            dimension_semantics=("parallel",),
            vmem_limit_bytes=32 * 1024 * 1024),
    )(x, w_cat, b)


# ---------------------------------------------------------------------------
# Kernel 2: the WHOLE trunk — nb RRDB blocks (15 convs each) + trunk_conv +
#           outer residual — in one pallas_call; trunk stays resident in VMEM.
# ---------------------------------------------------------------------------
def _trunk_kernel(x_ref, w1_ref, w2_ref, w3_ref, w4_ref, w5_ref, wt_ref, b_ref,
                  o_ref, stack_ref, *, nb):
    nf = x_ref.shape[1]
    gc = w1_ref.shape[1]
    w_refs = (w1_ref, w2_ref, w3_ref, w4_ref, w5_ref)

    bias_pos = [0]

    def next_bias(c):
        b = b_ref[bias_pos[0]:bias_pos[0] + c, :]
        bias_pos[0] += c
        return b

    def conv(w, k):
        return jnp.dot(w, stack_ref[0:k, :].astype(jnp.bfloat16),
                       preferred_element_type=jnp.float32)

    def rdb(x_in, idx):
        _store_taps(stack_ref, 0, x_in)                  # segment 0: x
        k = 3 * nf
        for j in range(4):                               # conv1..conv4 (+lrelu)
            xj = _lrelu(conv(w_refs[j][idx], k) + next_bias(gc))
            _store_taps(stack_ref, k, xj)                # grow the tap stack
            k += 3 * gc
        x5 = conv(w_refs[4][idx], k) + next_bias(nf)     # conv5 (no activation)
        return x5 * 0.2 + x_in                           # RDB residual (f32)

    fea = x_ref[0]                                       # (nf, L) f32
    trunk = fea
    idx = 0
    for _ in range(nb):                                  # nb RRDB blocks, fused
        rrdb_in = trunk
        for _ in range(3):
            trunk = rdb(trunk, idx)
            idx += 1
        trunk = trunk * 0.2 + rrdb_in                    # RRDB residual

    _store_taps(stack_ref, 0, trunk)                     # trunk_conv + fea residual
    tc = conv(wt_ref[...], 3 * nf) + next_bias(nf)
    o_ref[0] = (fea + tc).astype(o_ref.dtype)


def trunk_fused(fea, rdb_w, trunk_w, biases, *, nb, gc):
    """fea: (N, nf, L).  rdb_w: 5 stacked weights (nb*3, Cout_j, 3*Cin_j) bf16.
    trunk_w: (nf, 3*nf) bf16.  biases: all RDB + trunk biases stacked (R, 1) f32."""
    N, nf, L = fea.shape
    kern = functools.partial(_trunk_kernel, nb=nb)

    in_specs = [pl.BlockSpec((1, nf, L), lambda n: (n, 0, 0))]
    for w in rdb_w:
        in_specs.append(pl.BlockSpec(w.shape, lambda n: (0, 0, 0)))
    in_specs.append(pl.BlockSpec(trunk_w.shape, lambda n: (0, 0)))
    in_specs.append(pl.BlockSpec(biases.shape, lambda n: (0, 0)))

    rdb_flops = sum(2 * (gc if j < 4 else nf) * 3 * (nf + j * gc) * L
                    for j in range(5))
    flops = N * (nb * 3 * rdb_flops + 2 * nf * 3 * nf * L)
    w_bytes = sum(int(w.size) * w.dtype.itemsize for w in rdb_w)
    w_bytes += int(trunk_w.size) * trunk_w.dtype.itemsize
    w_bytes += int(biases.size) * biases.dtype.itemsize
    bytes_accessed = 2 * N * nf * L * 4 + w_bytes

    return pl.pallas_call(
        kern,
        out_shape=jax.ShapeDtypeStruct((N, nf, L), jnp.float32),
        grid=(N,),
        in_specs=in_specs,
        out_specs=pl.BlockSpec((1, nf, L), lambda n: (n, 0, 0)),
        scratch_shapes=[pltpu.VMEM((3 * (nf + 4 * gc), L), jnp.float32)],
        compiler_params=pltpu.CompilerParams(
            dimension_semantics=("parallel",),
            vmem_limit_bytes=64 * 1024 * 1024),
        cost_estimate=pl.CostEstimate(flops=flops, transcendentals=0,
                                      bytes_accessed=bytes_accessed),
    )(fea, *rdb_w, trunk_w, biases)


# ---------------------------------------------------------------------------
# Kernel 3: tail = HRconv(+lrelu) + conv_last + 3x nearest-up + adaptive_avg_pool(841)
#           emitted directly as a lane-dense NCL tensor.
# ---------------------------------------------------------------------------
def _resample_matrix_T(l_in, scale, out_size):
    """(l_in, out_size) linear map: nearest-upsample by `scale`, then
    F.adaptive_avg_pool1d(out_size), folded into one matrix (built in XLA)."""
    l_up = l_in * scale
    i = jnp.arange(out_size, dtype=jnp.int32)
    start = (i * l_up) // out_size
    end = ((i + 1) * l_up + out_size - 1) // out_size           # ceil
    r = jnp.arange(l_up, dtype=jnp.int32)
    mask = (r[None, :] >= start[:, None]) & (r[None, :] < end[:, None])
    pool = mask.astype(jnp.float32) / (end - start)[:, None].astype(jnp.float32)
    rep = (r[:, None] // scale ==
           jnp.arange(l_in, dtype=jnp.int32)[None, :]).astype(jnp.float32)
    return (pool @ rep).T                                       # (l_in, out_size)


def _tail_kernel(x_ref, whr_ref, bhr_ref, wl_ref, bl_ref, qt_ref, o_ref,
                 stack_ref):
    x = x_ref[0]                                         # (nf, L) f32
    _store_taps(stack_ref, 0, x)
    h = jnp.dot(whr_ref[...], stack_ref[...].astype(jnp.bfloat16),
                preferred_element_type=jnp.float32) + bhr_ref[...]
    h = _lrelu(h)                                        # HRconv + LeakyReLU
    _store_taps(stack_ref, 0, h)
    y = jnp.dot(wl_ref[...], stack_ref[...].astype(jnp.bfloat16),
                preferred_element_type=jnp.float32) + bl_ref[...]   # conv_last
    # fused Upsample(3, nearest) + adaptive_avg_pool1d; f32 resample for parity,
    # (nf, out_size) written lane-dense in NCL.
    o_ref[0] = jnp.dot(y, qt_ref[...],
                       preferred_element_type=jnp.float32).astype(o_ref.dtype)


def tail_resample(x, w_hr, b_hr, w_last, b_last, *, up_scale=3, out_size=841):
    N, nf, L = x.shape
    qt = _resample_matrix_T(L, up_scale, out_size)       # (L, out_size) f32
    flops = N * (2 * 2 * nf * 3 * nf * L + 2 * nf * L * out_size)
    bytes_accessed = N * (nf * L + nf * out_size) * 4 + int(qt.size) * 4
    return pl.pallas_call(
        _tail_kernel,
        out_shape=jax.ShapeDtypeStruct((N, nf, out_size), jnp.float32),
        grid=(N,),
        in_specs=[pl.BlockSpec((1, nf, L), lambda n: (n, 0, 0)),
                  pl.BlockSpec(w_hr.shape, lambda n: (0, 0)),
                  pl.BlockSpec(b_hr.shape, lambda n: (0, 0)),
                  pl.BlockSpec(w_last.shape, lambda n: (0, 0)),
                  pl.BlockSpec(b_last.shape, lambda n: (0, 0)),
                  pl.BlockSpec((L, out_size), lambda n: (0, 0))],
        out_specs=pl.BlockSpec((1, nf, out_size), lambda n: (n, 0, 0)),
        scratch_shapes=[pltpu.VMEM((3 * nf, L), jnp.float32)],
        compiler_params=pltpu.CompilerParams(
            dimension_semantics=("parallel",),
            vmem_limit_bytes=64 * 1024 * 1024),
        cost_estimate=pl.CostEstimate(flops=flops, transcendentals=0,
                                      bytes_accessed=bytes_accessed),
    )(x, w_hr, b_hr, w_last, b_last, qt)


# ---------------------------------------------------------------------------
# RRDBNet forward (NCL end-to-end, matches the PyTorch module)
# ---------------------------------------------------------------------------
def rrdbnet_forward(x_ncl, params):
    x = x_ncl.astype(jnp.float32)                        # (N, in_nc, L)
    fea = conv3_ncl(x, params["conv_first_w"], params["conv_first_b"], lrelu=False)
    # all RRDB blocks + trunk_conv + `fea + trunk` residual in ONE fused kernel
    fea = trunk_fused(fea, params["rdb_w"], params["trunk_conv_w"],
                      params["trunk_biases"], nb=params["nb"], gc=params["gc"])
    for name in ("upconv1", "upconv2", "upconv3", "upconv4"):
        # TODO(synk): fuse the 2x nearest upsample into the conv kernel via
        # polyphase (parity-decomposed) weights; kept as XLA repeat for now.
        up = jnp.repeat(fea, 2, axis=2)
        fea = conv3_ncl(up, params[name + "_w"], params[name + "_b"], lrelu=True)
    return tail_resample(fea, params["HRconv_w"], params["HRconv_b"],
                         params["conv_last_w"], params["conv_last_b"],
                         up_scale=3, out_size=841)


# ---------------------------------------------------------------------------
# Deterministic parameter construction.
#   w[t, o, i] == torch_conv.weight[o, i, t]; bias (Cout, 1).
#   Weights are pre-concatenated into (Cout, 3*Cin_total) bf16 matrices whose
#   column order matches the in-kernel tap stack (per segment: [t-1 | t0 | t+1]).
# ---------------------------------------------------------------------------
def _rand_conv(key, c_in, c_out, scale=0.05):
    kw, kb = jax.random.split(key)
    w = scale * jax.random.normal(kw, (3, c_out, c_in), dtype=jnp.float32)
    b = scale * jax.random.normal(kb, (c_out, 1), dtype=jnp.float32)
    return w, b


def _cat_weight(w, seg_sizes):
    cols, off = [], 0
    for s in seg_sizes:
        for t in range(3):
            cols.append(w[t, :, off:off + s])
        off += s
    return jnp.concatenate(cols, axis=1)


def make_rrdbnet_params(key, in_nc, nf, nb, gc):
    keys = iter(jax.random.split(key, 1 + nb * 15 + 7))
    p = {"nb": nb, "gc": gc}

    w, b = _rand_conv(next(keys), in_nc, nf)
    p["conv_first_w"] = _cat_weight(w, [in_nc]).astype(jnp.bfloat16)
    p["conv_first_b"] = b

    per_pos = [[] for _ in range(5)]
    biases = []
    for _ in range(nb * 3):                              # nb RRDBs x 3 RDBs
        for j in range(5):
            c_in = nf + j * gc
            c_out = gc if j < 4 else nf
            w, b = _rand_conv(next(keys), c_in, c_out)
            per_pos[j].append(_cat_weight(w, [nf] + [gc] * j))
            biases.append(b)
    p["rdb_w"] = tuple(jnp.stack(per_pos[j], axis=0).astype(jnp.bfloat16)
                       for j in range(5))

    w, b = _rand_conv(next(keys), nf, nf)
    p["trunk_conv_w"] = _cat_weight(w, [nf]).astype(jnp.bfloat16)
    biases.append(b)
    p["trunk_biases"] = jnp.concatenate(biases, axis=0)  # (nb*3*(4gc+nf)+nf, 1) f32

    for name in ("upconv1", "upconv2", "upconv3", "upconv4", "HRconv", "conv_last"):
        w, b = _rand_conv(next(keys), nf, nf)
        p[name + "_w"] = _cat_weight(w, [nf]).astype(jnp.bfloat16)
        p[name + "_b"] = b
    return p


# ---------------------------------------------------------------------------
# main
# ---------------------------------------------------------------------------
if __name__ == "__main__":
    # small, forward-consistent shapes: batch=2, in_nc=4, nf=8, nb=1, gc=4, L=16
    N, IN_NC, NF, NB, GC, L = 2, 4, 8, 1, 4, 16

    key = jax.random.PRNGKey(0)
    k_x, k_p = jax.random.split(key)

    x = jax.random.normal(k_x, (N, IN_NC, L), dtype=jnp.float32)   # PyTorch NCL layout
    params = make_rrdbnet_params(k_p, IN_NC, NF, NB, GC)

    fwd = jax.jit(lambda xx: rrdbnet_forward(xx, params))
    out = jax.block_until_ready(fwd(x))

    assert out.shape == (N, NF, 841), out.shape
    assert bool(jnp.all(jnp.isfinite(out)))
    print("KERNEL_OK")
</pallas_src>

<mosaic_0001>
module attributes {stable_mosaic.version = 11 : i64} {
  func.func @_conv3_kernel(%arg0: i32, %arg1: memref<1x4x16xf32, #tpu.memory_space<vmem>>, %arg2: memref<8x12xbf16, #tpu.memory_space<vmem>>, %arg3: memref<8x1xf32, #tpu.memory_space<vmem>>, %arg4: memref<1x8x16xf32, #tpu.memory_space<vmem>>, %arg5: memref<12x16xf32, #tpu.memory_space<vmem>>) attributes {dimension_semantics = [#tpu.dimension_semantics<parallel>], iteration_bounds = array<i64: 2>, scalar_prefetch = 0 : i64, scratch_operands = 1 : i64, tpu.core_type = #tpu.core_type<tc>, window_params = [{transform_indices = @transform_0, window_bounds = array<i64: 1, 4, 16>}, {pipeline_mode = #tpu.pipeline_mode<synchronous>, transform_indices = @transform_1, window_bounds = array<i64: 8, 12>}, {pipeline_mode = #tpu.pipeline_mode<synchronous>, transform_indices = @transform_2, window_bounds = array<i64: 8, 1>}, {transform_indices = @transform_3, window_bounds = array<i64: 1, 8, 16>}]} {
    %c0 = arith.constant 0 : index
    %c0_0 = arith.constant 0 : index
    %c0_1 = arith.constant 0 : index
    %0 = vector.load %arg1[%c0, %c0_0, %c0_1] : memref<1x4x16xf32, #tpu.memory_space<vmem>>, vector<1x4x16xf32>
    %1 = vector.shape_cast %0 : vector<1x4x16xf32> to vector<4x16xf32>
    %cst = arith.constant 0.000000e+00 : f32
    %2 = vector.broadcast %cst : f32 to vector<4x1xf32>
    %c0_2 = arith.constant 0 : index
    %c0_3 = arith.constant 0 : index
    %3 = vector.load %arg5[%c0_2, %c0_3] : memref<12x16xf32, #tpu.memory_space<vmem>>, vector<4x1xf32>
    tpu.vector_store %arg5[%c0_2, %c0_3], %2 {strides = array<i32>} : memref<12x16xf32, #tpu.memory_space<vmem>>, vector<4x1xf32>,
    %4 = vector.extract_strided_slice %1 {offsets = [0, 0], sizes = [4, 15], strides = [1, 1]} : vector<4x16xf32> to vector<4x15xf32>
    %c0_4 = arith.constant 0 : index
    %c1 = arith.constant 1 : index
    %5 = vector.load %arg5[%c0_4, %c1] : memref<12x16xf32, #tpu.memory_space<vmem>>, vector<4x15xf32>
    tpu.vector_store %arg5[%c0_4, %c1], %4 {strides = array<i32>} : memref<12x16xf32, #tpu.memory_space<vmem>>, vector<4x15xf32>,
    %c4 = arith.constant 4 : index
    %c0_5 = arith.constant 0 : index
    %6 = vector.load %arg5[%c4, %c0_5] : memref<12x16xf32, #tpu.memory_space<vmem>>, vector<4x16xf32>
    tpu.vector_store %arg5[%c4, %c0_5], %1 {strides = array<i32>} : memref<12x16xf32, #tpu.memory_space<vmem>>, vector<4x16xf32>,
    %7 = vector.extract_strided_slice %1 {offsets = [0, 1], sizes = [4, 15], strides = [1, 1]} : vector<4x16xf32> to vector<4x15xf32>
    %c8 = arith.constant 8 : index
    %c0_6 = arith.constant 0 : index
    %8 = vector.load %arg5[%c8, %c0_6] : memref<12x16xf32, #tpu.memory_space<vmem>>, vector<4x15xf32>
    tpu.vector_store %arg5[%c8, %c0_6], %7 {strides = array<i32>} : memref<12x16xf32, #tpu.memory_space<vmem>>, vector<4x15xf32>,
    %c8_7 = arith.constant 8 : index
    %c15 = arith.constant 15 : index
    %9 = vector.load %arg5[%c8_7, %c15] : memref<12x16xf32, #tpu.memory_space<vmem>>, vector<4x1xf32>
    tpu.vector_store %arg5[%c8_7, %c15], %2 {strides = array<i32>} : memref<12x16xf32, #tpu.memory_space<vmem>>, vector<4x1xf32>,
    %c0_8 = arith.constant 0 : index
    %c0_9 = arith.constant 0 : index
    %10 = vector.load %arg2[%c0_8, %c0_9] : memref<8x12xbf16, #tpu.memory_space<vmem>>, vector<8x12xbf16>
    %c0_10 = arith.constant 0 : index
    %c0_11 = arith.constant 0 : index
    %11 = vector.load %arg5[%c0_10, %c0_11] : memref<12x16xf32, #tpu.memory_space<vmem>>, vector<12x16xf32>
    %12 = arith.truncf %11 : vector<12x16xf32> to vector<12x16xbf16>
    %cst_12 = arith.constant dense<0.000000e+00> : vector<8x16xf32>
    %13 = tpu.matmul %10, %12, %cst_12 {dimension_numbers = #tpu.dot_dimension_numbers<[1], [0], [0], [1], [0, 0, 1, 1], [], []>} : vector<8x12xbf16>, vector<12x16xbf16>, vector<8x16xf32> -> vector<8x16xf32>
    %c0_13 = arith.constant 0 : index
    %c0_14 = arith.constant 0 : index
    %14 = vector.load %arg3[%c0_13, %c0_14] : memref<8x1xf32, #tpu.memory_space<vmem>>, vector<8x1xf32>
    %15 = vector.broadcast %14 : vector<8x1xf32> to vector<8x16xf32>
    %16 = arith.addf %13, %15 : vector<8x16xf32>
    %c0_15 = arith.constant 0 : index
    %c0_16 = arith.constant 0 : index
    %c0_17 = arith.constant 0 : index
    %17 = vector.load %arg4[%c0_15, %c0_16, %c0_17] : memref<1x8x16xf32, #tpu.memory_space<vmem>>, vector<1x8x16xf32>
    %18 = vector.shape_cast %17 : vector<1x8x16xf32> to vector<8x16xf32>
    %19 = vector.shape_cast %16 : vector<8x16xf32> to vector<1x8x16xf32>
    tpu.vector_store %arg4[%c0_15, %c0_16, %c0_17], %19 {strides = array<i32>} : memref<1x8x16xf32, #tpu.memory_space<vmem>>, vector<1x8x16xf32>,
    return
  }
  func.func @transform_0(%arg0: i32) -> (i32, i32, i32) {
    %c0_i32 = arith.constant 0 : i32
    %c0_i32_0 = arith.constant 0 : i32
    %c0_i32_1 = arith.constant 0 : i32
    return %arg0, %c0_i32, %c0_i32_0 : i32, i32, i32
  }
  func.func @transform_1(%arg0: i32) -> (i32, i32) {
    %c0_i32 = arith.constant 0 : i32
    %c0_i32_0 = arith.constant 0 : i32
    %c0_i32_1 = arith.constant 0 : i32
    return %c0_i32, %c0_i32_0 : i32, i32
  }
  func.func @transform_2(%arg0: i32) -> (i32, i32) {
    %c0_i32 = arith.constant 0 : i32
    %c0_i32_0 = arith.constant 0 : i32
    %c0_i32_1 = arith.constant 0 : i32
    return %c0_i32, %c0_i32_0 : i32, i32
  }
  func.func @transform_3(%arg0: i32) -> (i32, i32, i32) {
    %c0_i32 = arith.constant 0 : i32
    %c0_i32_0 = arith.constant 0 : i32
    %c0_i32_1 = arith.constant 0 : i32
    return %arg0, %c0_i32, %c0_i32_0 : i32, i32, i32
  }
}

module attributes {stable_mosaic.version = 11 : i64} {
  func.func @_trunk_kernel(%arg0: i32, %arg1: memref<1x8x16xf32, #tpu.memory_space<vmem>>, %arg2: memref<3x4x24xbf16, #tpu.memory_space<vmem>>, %arg3: memref<3x4x36xbf16, #tpu.memory_space<vmem>>, %arg4: memref<3x4x48xbf16, #tpu.memory_space<vmem>>, %arg5: memref<3x4x60xbf16, #tpu.memory_space<vmem>>, %arg6: memref<3x8x72xbf16, #tpu.memory_space<vmem>>, %arg7: memref<8x24xbf16, #tpu.memory_space<vmem>>, %arg8: memref<80x1xf32, #tpu.memory_space<vmem>>, %arg9: memref<1x8x16xf32, #tpu.memory_space<vmem>>, %arg10: memref<72x16xf32, #tpu.memory_space<vmem>>) attributes {dimension_semantics = [#tpu.dimension_semantics<parallel>], iteration_bounds = array<i64: 2>, scalar_prefetch = 0 : i64, scratch_operands = 1 : i64, tpu.core_type = #tpu.core_type<tc>, window_params = [{transform_indices = @transform_0, window_bounds = array<i64: 1, 8, 16>}, {pipeline_mode = #tpu.pipeline_mode<synchronous>, transform_indices = @transform_1, window_bounds = array<i64: 3, 4, 24>}, {pipeline_mode = #tpu.pipeline_mode<synchronous>, transform_indices = @transform_2, window_bounds = array<i64: 3, 4, 36>}, {pipeline_mode = #tpu.pipeline_mode<synchronous>, transform_indices = @transform_3, window_bounds = array<i64: 3, 4, 48>}, {pipeline_mode = #tpu.pipeline_mode<synchronous>, transform_indices = @transform_4, window_bounds = array<i64: 3, 4, 60>}, {pipeline_mode = #tpu.pipeline_mode<synchronous>, transform_indices = @transform_5, window_bounds = array<i64: 3, 8, 72>}, {pipeline_mode = #tpu.pipeline_mode<synchronous>, transform_indices = @transform_6, window_bounds = array<i64: 8, 24>}, {pipeline_mode = #tpu.pipeline_mode<synchronous>, transform_indices = @transform_7, window_bounds = array<i64: 80, 1>}, {transform_indices = @transform_8, window_bounds = array<i64: 1, 8, 16>}]} {
    %c0 = arith.constant 0 : index
    %c0_0 = arith.constant 0 : index
    %c0_1 = arith.constant 0 : index
    %0 = vector.load %arg1[%c0, %c0_0, %c0_1] : memref<1x8x16xf32, #tpu.memory_space<vmem>>, vector<1x8x16xf32>
    %1 = vector.shape_cast %0 : vector<1x8x16xf32> to vector<8x16xf32>
    %cst = arith.constant 0.000000e+00 : f32
    %2 = vector.broadcast %cst : f32 to vector<8x1xf32>
    %c0_2 = arith.constant 0 : index
    %c0_3 = arith.constant 0 : index
    %3 = vector.load %arg10[%c0_2, %c0_3] : memref<72x16xf32, #tpu.memory_space<vmem>>, vector<8x1xf32>
    tpu.vector_store %arg10[%c0_2, %c0_3], %2 {strides = array<i32>} : memref<72x16xf32, #tpu.memory_space<vmem>>, vector<8x1xf32>,
    %4 = vector.extract_strided_slice %1 {offsets = [0, 0], sizes = [8, 15], strides = [1, 1]} : vector<8x16xf32> to vector<8x15xf32>
    %c0_4 = arith.constant 0 : index
    %c1 = arith.constant 1 : index
    %5 = vector.load %arg10[%c0_4, %c1] : memref<72x16xf32, #tpu.memory_space<vmem>>, vector<8x15xf32>
    tpu.vector_store %arg10[%c0_4, %c1], %4 {strides = array<i32>} : memref<72x16xf32, #tpu.memory_space<vmem>>, vector<8x15xf32>,
    %c8 = arith.constant 8 : index
    %c0_5 = arith.constant 0 : index
    %6 = vector.load %arg10[%c8, %c0_5] : memref<72x16xf32, #tpu.memory_space<vmem>>, vector<8x16xf32>
    tpu.vector_store %arg10[%c8, %c0_5], %1 {strides = array<i32>} : memref<72x16xf32, #tpu.memory_space<vmem>>, vector<8x16xf32>,
    %7 = vector.extract_strided_slice %1 {offsets = [0, 1], sizes = [8, 15], strides = [1, 1]} : vector<8x16xf32> to vector<8x15xf32>
    %c16 = arith.constant 16 : index
    %c0_6 = arith.constant 0 : index
    %8 = vector.load %arg10[%c16, %c0_6] : memref<72x16xf32, #tpu.memory_space<vmem>>, vector<8x15xf32>
    tpu.vector_store %arg10[%c16, %c0_6], %7 {strides = array<i32>} : memref<72x16xf32, #tpu.memory_space<vmem>>, vector<8x15xf32>,
    %c16_7 = arith.constant 16 : index
    %c15 = arith.constant 15 : index
    %9 = vector.load %arg10[%c16_7, %c15] : memref<72x16xf32, #tpu.memory_space<vmem>>, vector<8x1xf32>
    tpu.vector_store %arg10[%c16_7, %c15], %2 {strides = array<i32>} : memref<72x16xf32, #tpu.memory_space<vmem>>, vector<8x1xf32>,
    %c0_8 = arith.constant 0 : index
    %c0_9 = arith.constant 0 : index
    %c0_10 = arith.constant 0 : index
    %10 = vector.load %arg2[%c0_8, %c0_9, %c0_10] : memref<3x4x24xbf16, #tpu.memory_space<vmem>>, vector<1x4x24xbf16>
    %11 = vector.shape_cast %10 : vector<1x4x24xbf16> to vector<4x24xbf16>
    %c0_11 = arith.constant 0 : index
    %c0_12 = arith.constant 0 : index
    %12 = vector.load %arg10[%c0_11, %c0_12] : memref<72x16xf32, #tpu.memory_space<vmem>>, vector<24x16xf32>
    %13 = arith.truncf %12 : vector<24x16xf32> to vector<24x16xbf16>
    %cst_13 = arith.constant dense<0.000000e+00> : vector<4x16xf32>
    %14 = tpu.matmul %11, %13, %cst_13 {dimension_numbers = #tpu.dot_dimension_numbers<[1], [0], [0], [1], [0, 0, 1, 1], [], []>} : vector<4x24xbf16>, vector<24x16xbf16>, vector<4x16xf32> -> vector<4x16xf32>
    %c0_14 = arith.constant 0 : index
    %c0_15 = arith.constant 0 : index
    %15 = vector.load %arg8[%c0_14, %c0_15] : memref<80x1xf32, #tpu.memory_space<vmem>>, vector<4x1xf32>
    %16 = vector.broadcast %15 : vector<4x1xf32> to vector<4x16xf32>
    %17 = arith.addf %14, %16 : vector<4x16xf32>
    %cst_16 = arith.constant 2.000000e-01 : f32
    %18 = vector.broadcast %cst_16 : f32 to vector<4x16xf32>
    %19 = arith.mulf %18, %17 : vector<4x16xf32>
    %20 = arith.maximumf %17, %19 : vector<4x16xf32>
    %cst_17 = arith.constant 0.000000e+00 : f32
    %21 = vector.broadcast %cst_17 : f32 to vector<4x1xf32>
    %c24 = arith.constant 24 : index
    %c0_18 = arith.constant 0 : index
    %22 = vector.load %arg10[%c24, %c0_18] : memref<72x16xf32, #tpu.memory_space<vmem>>, vector<4x1xf32>
    tpu.vector_store %arg10[%c24, %c0_18], %21 {strides = array<i32>} : memref<72x16xf32, #tpu.memory_space<vmem>>, vector<4x1xf32>,
    %23 = vector.extract_strided_slice %20 {offsets = [0, 0], sizes = [4, 15], strides = [1, 1]} : vector<4x16xf32> to vector<4x15xf32>
    %c24_19 = arith.constant 24 : index
    %c1_20 = arith.constant 1 : index
    %24 = vector.load %arg10[%c24_19, %c1_20] : memref<72x16xf32, #tpu.memory_space<vmem>>, vector<4x15xf32>
    tpu.vector_store %arg10[%c24_19, %c1_20], %23 {strides = array<i32>} : memref<72x16xf32, #tpu.memory_space<vmem>>, vector<4x15xf32>,
    %c28 = arith.constant 28 : index
    %c0_21 = arith.constant 0 : index
    %25 = vector.load %arg10[%c28, %c0_21] : memref<72x16xf32, #tpu.memory_space<vmem>>, vector<4x16xf32>
    tpu.vector_store %arg10[%c28, %c0_21], %20 {strides = array<i32>} : memref<72x16xf32, #tpu.memory_space<vmem>>, vector<4x16xf32>,
    %26 = vector.extract_strided_slice %20 {offsets = [0, 1], sizes = [4, 15], strides = [1, 1]} : vector<4x16xf32> to vector<4x15xf32>
    %c32 = arith.constant 32 : index
    %c0_22 = arith.constant 0 : index
    %27 = vector.load %arg10[%c32, %c0_22] : memref<72x16xf32, #tpu.memory_space<vmem>>, vector<4x15xf32>
    tpu.vector_store %arg10[%c32, %c0_22], %26 {strides = array<i32>} : memref<72x16xf32, #tpu.memory_space<vmem>>, vector<4x15xf32>,
    %c32_23 = arith.constant 32 : index
    %c15_24 = arith.constant 15 : index
    %28 = vector.load %arg10[%c32_23, %c15_24] : memref<72x16xf32, #tpu.memory_space<vmem>>, vector<4x1xf32>
    tpu.vector_store %arg10[%c32_23, %c15_24], %21 {strides = array<i32>} : memref<72x16xf32, #tpu.memory_space<vmem>>, vector<4x1xf32>,
    %c0_25 = arith.constant 0 : index
    %c0_26 = arith.constant 0 : index
    %c0_27 = arith.constant 0 : index
    %29 = vector.load %arg3[%c0_25, %c0_26, %c0_27] : memref<3x4x36xbf16, #tpu.memory_space<vmem>>, vector<1x4x36xbf16>
    %30 = vector.shape_cast %29 : vector<1x4x36xbf16> to vector<4x36xbf16>
    %c0_28 = arith.constant 0 : index
    %c0_29 = arith.constant 0 : index
    %31 = vector.load %arg10[%c0_28, %c0_29] : memref<72x16xf32, #tpu.memory_space<vmem>>, vector<36x16xf32>
    %32 = arith.truncf %31 : vector<36x16xf32> to vector<36x16xbf16>
    %cst_30 = arith.constant dense<0.000000e+00> : vector<4x16xf32>
    %33 = tpu.matmul %30, %32, %cst_30 {dimension_numbers = #tpu.dot_dimension_numbers<[1], [0], [0], [1], [0, 0, 1, 1], [], []>} : vector<4x36xbf16>, vector<36x16xbf16>, vector<4x16xf32> -> vector<4x16xf32>
    %c4 = arith.constant 4 : index
    %c0_31 = arith.constant 0 : index
    %34 = vector.load %arg8[%c4, %c0_31] : memref<80x1xf32, #tpu.memory_space<vmem>>, vector<4x1xf32>
    %35 = vector.broadcast %34 : vector<4x1xf32> to vector<4x16xf32>
    %36 = arith.addf %33, %35 : vector<4x16xf32>
    %cst_32 = arith.constant 2.000000e-01 : f32
    %37 = vector.broadcast %cst_32 : f32 to vector<4x16xf32>
    %38 = arith.mulf %37, %36 : vector<4x16xf32>
    %39 = arith.maximumf %36, %38 : vector<4x16xf32>
    %cst_33 = arith.constant 0.000000e+00 : f32
    %40 = vector.broadcast %cst_33 : f32 to vector<4x1xf32>
    %c36 = arith.constant 36 : index
    %c0_34 = arith.constant 0 : index
    %41 = vector.load %arg10[%c36, %c0_34] : memref<72x16xf32, #tpu.memory_space<vmem>>, vector<4x1xf32>
    tpu.vector_store %arg10[%c36, %c0_34], %40 {strides = array<i32>} : memref<72x16xf32, #tpu.memory_space<vmem>>, vector<4x1xf32>,
    %42 = vector.extract_strided_slice %39 {offsets = [0, 0], sizes = [4, 15], strides = [1, 1]} : vector<4x16xf32> to vector<4x15xf32>
    %c36_35 = arith.constant 36 : index
    %c1_36 = arith.constant 1 : index
    %43 = vector.load %arg10[%c36_35, %c1_36] : memref<72x16xf32, #tpu.memory_space<vmem>>, vector<4x15xf32>
    tpu.vector_store %arg10[%c36_35, %c1_36], %42 {strides = array<i32>} : memref<72x16xf32, #tpu.memory_space<vmem>>, vector<4x15xf32>,
    %c40 = arith.constant 40 : index
    %c0_37 = arith.constant 0 : index
    %44 = vector.load %arg10[%c40, %c0_37] : memref<72x16xf32, #tpu.memory_space<vmem>>, vector<4x16xf32>
    tpu.vector_store %arg10[%c40, %c0_37], %39 {strides = array<i32>} : memref<72x16xf32, #tpu.memory_space<vmem>>, vector<4x16xf32>,
    %45 = vector.extract_strided_slice %39 {offsets = [0, 1], sizes = [4, 15], strides = [1, 1]} : vector<4x16xf32> to vector<4x15xf32>
    %c44 = arith.constant 44 : index
    %c0_38 = arith.constant 0 : index
    %46 = vector.load %arg10[%c44, %c0_38] : memref<72x16xf32, #tpu.memory_space<vmem>>, vector<4x15xf32>
    tpu.vector_store %arg10[%c44, %c0_38], %45 {strides = array<i32>} : memref<72x16xf32, #tpu.memory_space<vmem>>, vector<4x15xf32>,
    %c44_39 = arith.constant 44 : index
    %c15_40 = arith.constant 15 : index
    %47 = vector.load %arg10[%c44_39, %c15_40] : memref<72x16xf32, #tpu.memory_space<vmem>>, vector<4x1xf32>
    tpu.vector_store %arg10[%c44_39, %c15_40], %40 {strides = array<i32>} : memref<72x16xf32, #tpu.memory_space<vmem>>, vector<4x1xf32>,
    %c0_41 = arith.constant 0 : index
    %c0_42 = arith.constant 0 : index
    %c0_43 = arith.constant 0 : index
    %48 = vector.load %arg4[%c0_41, %c0_42, %c0_43] : memref<3x4x48xbf16, #tpu.memory_space<vmem>>, vector<1x4x48xbf16>
    %49 = vector.shape_cast %48 : vector<1x4x48xbf16> to vector<4x48xbf16>
    %c0_44 = arith.constant 0 : index
    %c0_45 = arith.constant 0 : index
    %50 = vector.load %arg10[%c0_44, %c0_45] : memref<72x16xf32, #tpu.memory_space<vmem>>, vector<48x16xf32>
    %51 = arith.truncf %50 : vector<48x16xf32> to vector<48x16xbf16>
    %cst_46 = arith.constant dense<0.000000e+00> : vector<4x16xf32>
    %52 = tpu.matmul %49, %51, %cst_46 {dimension_numbers = #tpu.dot_dimension_numbers<[1], [0], [0], [1], [0, 0, 1, 1], [], []>} : vector<4x48xbf16>, vector<48x16xbf16>, vector<4x16xf32> -> vector<4x16xf32>
    %c8_47 = arith.constant 8 : index
    %c0_48 = arith.constant 0 : index
    %53 = vector.load %arg8[%c8_47, %c0_48] : memref<80x1xf32, #tpu.memory_space<vmem>>, vector<4x1xf32>
    %54 = vector.broadcast %53 : vector<4x1xf32> to vector<4x16xf32>
    %55 = arith.addf %52, %54 : vector<4x16xf32>
    %cst_49 = arith.constant 2.000000e-01 : f32
    %56 = vector.broadcast %cst_49 : f32 to vector<4x16xf32>
    %57 = arith.mulf %56, %55 : vector<4x16xf32>
    %58 = arith.maximumf %55, %57 : vector<4x16xf32>
    %cst_50 = arith.constant 0.000000e+00 : f32
    %59 = vector.broadcast %cst_50 : f32 to vector<4x1xf32>
    %c48 = arith.constant 48 : index
    %c0_51 = arith.constant 0 : index
    %60 = vector.load %arg10[%c48, %c0_51] : memref<72x16xf32, #tpu.memory_space<vmem>>, vector<4x1xf32>
    tpu.vector_store %arg10[%c48, %c0_51], %59 {strides = array<i32>} : memref<72x16xf32, #tpu.memory_space<vmem>>, vector<4x1xf32>,
    %61 = vector.extract_strided_slice %58 {offsets = [0, 0], sizes = [4, 15], strides = [1, 1]} : vector<4x16xf32> to vector<4x15xf32>
    %c48_52 = arith.constant 48 : index
    %c1_53 = arith.constant 1 : index
    %62 = vector.load %arg10[%c48_52, %c1_53] : memref<72x16xf32, #tpu.memory_space<vmem>>, vector<4x15xf32>
    tpu.vector_store %arg10[%c48_52, %c1_53], %61 {strides = array<i32>} : memref<72x16xf32, #tpu.memory_space<vmem>>, vector<4x15xf32>,
    %c52 = arith.constant 52 : index
    %c0_54 = arith.constant 0 : index
    %63 = vector.load %arg10[%c52, %c0_54] : memref<72x16xf32, #tpu.memory_space<vmem>>, vector<4x16xf32>
    tpu.vector_store %arg10[%c52, %c0_54], %58 {strides = array<i32>} : memref<72x16xf32, #tpu.memory_space<vmem>>, vector<4x16xf32>,
    %64 = vector.extract_strided_slice %58 {offsets = [0, 1], sizes = [4, 15], strides = [1, 1]} : vector<4x16xf32> to vector<4x15xf32>
    %c56 = arith.constant 56 : index
    %c0_55 = arith.constant 0 : index
    %65 = vector.load %arg10[%c56, %c0_55] : memref<72x16xf32, #tpu.memory_space<vmem>>, vector<4x15xf32>
    tpu.vector_store %arg10[%c56, %c0_55], %64 {strides = array<i32>} : memref<72x16xf32, #tpu.memory_space<vmem>>, vector<4x15xf32>,
    %c56_56 = arith.constant 56 : index
    %c15_57 = arith.constant 15 : index
    %66 = vector.load %arg10[%c56_56, %c15_57] : memref<72x16xf32, #tpu.memory_space<vmem>>, vector<4x1xf32>
    tpu.vector_store %arg10[%c56_56, %c15_57], %59 {strides = array<i32>} : memref<72x16xf32, #tpu.memory_space<vmem>>, vector<4x1xf32>,
    %c0_58 = arith.constant 0 : index
    %c0_59 = arith.constant 0 : index
    %c0_60 = arith.constant 0 : index
    %67 = vector.load %arg5[%c0_58, %c0_59, %c0_60] : memref<3x4x60xbf16, #tpu.memory_space<vmem>>, vector<1x4x60xbf16>
    %68 = vector.shape_cast %67 : vector<1x4x60xbf16> to vector<4x60xbf16>
    %c0_61 = arith.constant 0 : index
    %c0_62 = arith.constant 0 : index
    %69 = vector.load %arg10[%c0_61, %c0_62] : memref<72x16xf32, #tpu.memory_space<vmem>>, vector<60x16xf32>
    %70 = arith.truncf %69 : vector<60x16xf32> to vector<60x16xbf16>
    %cst_63 = arith.constant dense<0.000000e+00> : vector<4x16xf32>
    %71 = tpu.matmul %68, %70, %cst_63 {dimension_numbers = #tpu.dot_dimension_numbers<[1], [0], [0], [1], [0, 0, 1, 1], [], []>} : vector<4x60xbf16>, vector<60x16xbf16>, vector<4x16xf32> -> vector<4x16xf32>
    %c12 = arith.constant 12 : index
    %c0_64 = arith.constant 0 : index
    %72 = vector.load %arg8[%c12, %c0_64] : memref<80x1xf32, #tpu.memory_space<vmem>>, vector<4x1xf32>
    %73 = vector.broadcast %72 : vector<4x1xf32> to vector<4x16xf32>
    %74 = arith.addf %71, %73 : vector<4x16xf32>
    %cst_65 = arith.constant 2.000000e-01 : f32
    %75 = vector.broadcast %cst_65 : f32 to vector<4x16xf32>
    %76 = arith.mulf %75, %74 : vector<4x16xf32>
    %77 = arith.maximumf %74, %76 : vector<4x16xf32>
    %cst_66 = arith.constant 0.000000e+00 : f32
    %78 = vector.broadcast %cst_66 : f32 to vector<4x1xf32>
    %c60 = arith.constant 60 : index
    %c0_67 = arith.constant 0 : index
    %79 = vector.load %arg10[%c60, %c0_67] : memref<72x16xf32, #tpu.memory_space<vmem>>, vector<4x1xf32>
    tpu.vector_store %arg10[%c60, %c0_67], %78 {strides = array<i32>} : memref<72x16xf32, #tpu.memory_space<vmem>>, vector<4x1xf32>,
    %80 = vector.extract_strided_slice %77 {offsets = [0, 0], sizes = [4, 15], strides = [1, 1]} : vector<4x16xf32> to vector<4x15xf32>
    %c60_68 = arith.constant 60 : index
    %c1_69 = arith.constant 1 : index
    %81 = vector.load %arg10[%c60_68, %c1_69] : memref<72x16xf32, #tpu.memory_space<vmem>>, vector<4x15xf32>
    tpu.vector_store %arg10[%c60_68, %c1_69], %80 {strides = array<i32>} : memref<72x16xf32, #tpu.memory_space<vmem>>, vector<4x15xf32>,
    %c64 = arith.constant 64 : index
    %c0_70 = arith.constant 0 : index
    %82 = vector.load %arg10[%c64, %c0_70] : memref<72x16xf32, #tpu.memory_space<vmem>>, vector<4x16xf32>
    tpu.vector_store %arg10[%c64, %c0_70], %77 {strides = array<i32>} : memref<72x16xf32, #tpu.memory_space<vmem>>, vector<4x16xf32>,
    %83 = vector.extract_strided_slice %77 {offsets = [0, 1], sizes = [4, 15], strides = [1, 1]} : vector<4x16xf32> to vector<4x15xf32>
    %c68 = arith.constant 68 : index
    %c0_71 = arith.constant 0 : index
    %84 = vector.load %arg10[%c68, %c0_71] : memref<72x16xf32, #tpu.memory_space<vmem>>, vector<4x15xf32>
    tpu.vector_store %arg10[%c68, %c0_71], %83 {strides = array<i32>} : memref<72x16xf32, #tpu.memory_space<vmem>>, vector<4x15xf32>,
    %c68_72 = arith.constant 68 : index
    %c15_73 = arith.constant 15 : index
    %85 = vector.load %arg10[%c68_72, %c15_73] : memref<72x16xf32, #tpu.memory_space<vmem>>, vector<4x1xf32>
    tpu.vector_store %arg10[%c68_72, %c15_73], %78 {strides = array<i32>} : memref<72x16xf32, #tpu.memory_space<vmem>>, vector<4x1xf32>,
    %c0_74 = arith.constant 0 : index
    %c0_75 = arith.constant 0 : index
    %c0_76 = arith.constant 0 : index
    %86 = vector.load %arg6[%c0_74, %c0_75, %c0_76] : memref<3x8x72xbf16, #tpu.memory_space<vmem>>, vector<1x8x72xbf16>
    %87 = vector.shape_cast %86 : vector<1x8x72xbf16> to vector<8x72xbf16>
    %c0_77 = arith.constant 0 : index
    %c0_78 = arith.constant 0 : index
    %88 = vector.load %arg10[%c0_77, %c0_78] : memref<72x16xf32, #tpu.memory_space<vmem>>, vector<72x16xf32>
    %89 = arith.truncf %88 : vector<72x16xf32> to vector<72x16xbf16>
    %cst_79 = arith.constant dense<0.000000e+00> : vector<8x16xf32>
    %90 = tpu.matmul %87, %89, %cst_79 {dimension_numbers = #tpu.dot_dimension_numbers<[1], [0], [0], [1], [0, 0, 1, 1], [], []>} : vector<8x72xbf16>, vector<72x16xbf16>, vector<8x16xf32> -> vector<8x16xf32>
    %c16_80 = arith.constant 16 : index
    %c0_81 = arith.constant 0 : index
    %91 = vector.load %arg8[%c16_80, %c0_81] : memref<80x1xf32, #tpu.memory_space<vmem>>, vector<8x1xf32>
    %92 = vector.broadcast %91 : vector<8x1xf32> to vector<8x16xf32>
    %93 = arith.addf %90, %92 : vector<8x16xf32>
    %cst_82 = arith.constant 2.000000e-01 : f32
    %94 = vector.broadcast %cst_82 : f32 to vector<8x16xf32>
    %95 = arith.mulf %93, %94 : vector<8x16xf32>
    %96 = arith.addf %95, %1 : vector<8x16xf32>
    %cst_83 = arith.constant 0.000000e+00 : f32
    %97 = vector.broadcast %cst_83 : f32 to vector<8x1xf32>
    %c0_84 = arith.constant 0 : index
    %c0_85 = arith.constant 0 : index
    %98 = vector.load %arg10[%c0_84, %c0_85] : memref<72x16xf32, #tpu.memory_space<vmem>>, vector<8x1xf32>
    tpu.vector_store %arg10[%c0_84, %c0_85], %97 {strides = array<i32>} : memref<72x16xf32, #tpu.memory_space<vmem>>, vector<8x1xf32>,
    %99 = vector.extract_strided_slice %96 {offsets = [0, 0], sizes = [8, 15], strides = [1, 1]} : vector<8x16xf32> to vector<8x15xf32>
    %c0_86 = arith.constant 0 : index
    %c1_87 = arith.constant 1 : index
    %100 = vector.load %arg10[%c0_86, %c1_87] : memref<72x16xf32, #tpu.memory_space<vmem>>, vector<8x15xf32>
    tpu.vector_store %arg10[%c0_86, %c1_87], %99 {strides = array<i32>} : memref<72x16xf32, #tpu.memory_space<vmem>>, vector<8x15xf32>,
    %c8_88 = arith.constant 8 : index
    %c0_89 = arith.constant 0 : index
    %101 = vector.load %arg10[%c8_88, %c0_89] : memref<72x16xf32, #tpu.memory_space<vmem>>, vector<8x16xf32>
    tpu.vector_store %arg10[%c8_88, %c0_89], %96 {strides = array<i32>} : memref<72x16xf32, #tpu.memory_space<vmem>>, vector<8x16xf32>,
    %102 = vector.extract_strided_slice %96 {offsets = [0, 1], sizes = [8, 15], strides = [1, 1]} : vector<8x16xf32> to vector<8x15xf32>
    %c16_90 = arith.constant 16 : index
    %c0_91 = arith.constant 0 : index
    %103 = vector.load %arg10[%c16_90, %c0_91] : memref<72x16xf32, #tpu.memory_space<vmem>>, vector<8x15xf32>
    tpu.vector_store %arg10[%c16_90, %c0_91], %102 {strides = array<i32>} : memref<72x16xf32, #tpu.memory_space<vmem>>, vector<8x15xf32>,
    %c16_92 = arith.constant 16 : index
    %c15_93 = arith.constant 15 : index
    %104 = vector.load %arg10[%c16_92, %c15_93] : memref<72x16xf32, #tpu.memory_space<vmem>>, vector<8x1xf32>
    tpu.vector_store %arg10[%c16_92, %c15_93], %97 {strides = array<i32>} : memref<72x16xf32, #tpu.memory_space<vmem>>, vector<8x1xf32>,
    %c1_94 = arith.constant 1 : index
    %c0_95 = arith.constant 0 : index
    %c0_96 = arith.constant 0 : index
    %105 = vector.load %arg2[%c1_94, %c0_95, %c0_96] : memref<3x4x24xbf16, #tpu.memory_space<vmem>>, vector<1x4x24xbf16>
    %106 = vector.shape_cast %105 : vector<1x4x24xbf16> to vector<4x24xbf16>
    %c0_97 = arith.constant 0 : index
    %c0_98 = arith.constant 0 : index
    %107 = vector.load %arg10[%c0_97, %c0_98] : memref<72x16xf32, #tpu.memory_space<vmem>>, vector<24x16xf32>
    %108 = arith.truncf %107 : vector<24x16xf32> to vector<24x16xbf16>
    %cst_99 = arith.constant dense<0.000000e+00> : vector<4x16xf32>
    %109 = tpu.matmul %106, %108, %cst_99 {dimension_numbers = #tpu.dot_dimension_numbers<[1], [0], [0], [1], [0, 0, 1, 1], [], []>} : vector<4x24xbf16>, vector<24x16xbf16>, vector<4x16xf32> -> vector<4x16xf32>
    %c24_100 = arith.constant 24 : index
    %c0_101 = arith.constant 0 : index
    %110 = vector.load %arg8[%c24_100, %c0_101] : memref<80x1xf32, #tpu.memory_space<vmem>>, vector<4x1xf32>
    %111 = vector.broadcast %110 : vector<4x1xf32> to vector<4x16xf32>
    %112 = arith.addf %109, %111 : vector<4x16xf32>
    %cst_102 = arith.constant 2.000000e-01 : f32
    %113 = vector.broadcast %cst_102 : f32 to vector<4x16xf32>
    %114 = arith.mulf %113, %112 : vector<4x16xf32>
    %115 = arith.maximumf %112, %114 : vector<4x16xf32>
    %cst_103 = arith.constant 0.000000e+00 : f32
    %116 = vector.broadcast %cst_103 : f32 to vector<4x1xf32>
    %c24_104 = arith.constant 24 : index
    %c0_105 = arith.constant 0 : index
    %117 = vector.load %arg10[%c24_104, %c0_105] : memref<72x16xf32, #tpu.memory_space<vmem>>, vector<4x1xf32>
    tpu.vector_store %arg10[%c24_104, %c0_105], %116 {strides = array<i32>} : memref<72x16xf32, #tpu.memory_space<vmem>>, vector<4x1xf32>,
    %118 = vector.extract_strided_slice %115 {offsets = [0, 0], sizes = [4, 15], strides = [1, 1]} : vector<4x16xf32> to vector<4x15xf32>
    %c24_106 = arith.constant 24 : index
    %c1_107 = arith.constant 1 : index
    %119 = vector.load %arg10[%c24_106, %c1_107] : memref<72x16xf32, #tpu.memory_space<vmem>>, vector<4x15xf32>
    tpu.vector_store %arg10[%c24_106, %c1_107], %118 {strides = array<i32>} : memref<72x16xf32, #tpu.memory_space<vmem>>, vector<4x15xf32>,
    %c28_108 = arith.constant 28 : index
    %c0_109 = arith.constant 0 : index
    %120 = vector.load %arg10[%c28_108, %c0_109] : memref<72x16xf32, #tpu.memory_space<vmem>>, vector<4x16xf32>
    tpu.vector_store %arg10[%c28_108, %c0_109], %115 {strides = array<i32>} : memref<72x16xf32, #tpu.memory_space<vmem>>, vector<4x16xf32>,
    %121 = vector.extract_strided_slice %115 {offsets = [0, 1], sizes = [4, 15], strides = [1, 1]} : vector<4x16xf32> to vector<4x15xf32>
    %c32_110 = arith.constant 32 : index
    %c0_111 = arith.constant 0 : index
    %122 = vector.load %arg10[%c32_110, %c0_111] : memref<72x16xf32, #tpu.memory_space<vmem>>, vector<4x15xf32>
    tpu.vector_store %arg10[%c32_110, %c0_111], %121 {strides = array<i32>} : memref<72x16xf32, #tpu.memory_space<vmem>>, vector<4x15xf32>,
    %c32_112 = arith.constant 32 : index
    %c15_113 = arith.constant 15 : index
    %123 = vector.load %arg10[%c32_112, %c15_113] : memref<72x16xf32, #tpu.memory_space<vmem>>, vector<4x1xf32>
    tpu.vector_store %arg10[%c32_112, %c15_113], %116 {strides = array<i32>} : memref<72x16xf32, #tpu.memory_space<vmem>>, vector<4x1xf32>,
    %c1_114 = arith.constant 1 : index
    %c0_115 = arith.constant 0 : index
    %c0_116 = arith.constant 0 : index
    %124 = vector.load %arg3[%c1_114, %c0_115, %c0_116] : memref<3x4x36xbf16, #tpu.memory_space<vmem>>, vector<1x4x36xbf16>
    %125 = vector.shape_cast %124 : vector<1x4x36xbf16> to vector<4x36xbf16>
    %c0_117 = arith.constant 0 : index
    %c0_118 = arith.constant 0 : index
    %126 = vector.load %arg10[%c0_117, %c0_118] : memref<72x16xf32, #tpu.memory_space<vmem>>, vector<36x16xf32>
    %127 = arith.truncf %126 : vector<36x16xf32> to vector<36x16xbf16>
    %cst_119 = arith.constant dense<0.000000e+00> : vector<4x16xf32>
    %128 = tpu.matmul %125, %127, %cst_119 {dimension_numbers = #tpu.dot_dimension_numbers<[1], [0], [0], [1], [0, 0, 1, 1], [], []>} : vector<4x36xbf16>, vector<36x16xbf16>, vector<4x16xf32> -> vector<4x16xf32>
    %c28_120 = arith.constant 28 : index
    %c0_121 = arith.constant 0 : index
    %129 = vector.load %arg8[%c28_120, %c0_121] : memref<80x1xf32, #tpu.memory_space<vmem>>, vector<4x1xf32>
    %130 = vector.broadcast %129 : vector<4x1xf32> to vector<4x16xf32>
    %131 = arith.addf %128, %130 : vector<4x16xf32>
    %cst_122 = arith.constant 2.000000e-01 : f32
    %132 = vector.broadcast %cst_122 : f32 to vector<4x16xf32>
    %133 = arith.mulf %132, %131 : vector<4x16xf32>
    %134 = arith.maximumf %131, %133 : vector<4x16xf32>
    %cst_123 = arith.constant 0.000000e+00 : f32
    %135 = vector.broadcast %cst_123 : f32 to vector<4x1xf32>
    %c36_124 = arith.constant 36 : index
    %c0_125 = arith.constant 0 : index
    %136 = vector.load %arg10[%c36_124, %c0_125] : memref<72x16xf32, #tpu.memory_space<vmem>>, vector<4x1xf32>
    tpu.vector_store %arg10[%c36_124, %c0_125], %135 {strides = array<i32>} : memref<72x16xf32, #tpu.memory_space<vmem>>, vector<4x1xf32>,
    %137 = vector.extract_strided_slice %134 {offsets = [0, 0], sizes = [4, 15], strides = [1, 1]} : vector<4x16xf32> to vector<4x15xf32>
    %c36_126 = arith.constant 36 : index
    %c1_127 = arith.constant 1 : index
    %138 = vector.load %arg10[%c36_126, %c1_127] : memref<72x16xf32, #tpu.memory_space<vmem>>, vector<4x15xf32>
    tpu.vector_store %arg10[%c36_126, %c1_127], %137 {strides = array<i32>} : memref<72x16xf32, #tpu.memory_space<vmem>>, vector<4x15xf32>,
    %c40_128 = arith.constant 40 : index
    %c0_129 = arith.constant 0 : index
    %139 = vector.load %arg10[%c40_128, %c0_129] : memref<72x16xf32, #tpu.memory_space<vmem>>, vector<4x16xf32>
    tpu.vector_store %arg10[%c40_128, %c0_129], %134 {strides = array<i32>} : memref<72x16xf32, #tpu.memory_space<vmem>>, vector<4x16xf32>,
    %140 = vector.extract_strided_slice %134 {offsets = [0, 1], sizes = [4, 15], strides = [1, 1]} : vector<4x16xf32> to vector<4x15xf32>
    %c44_130 = arith.constant 44 : index
    %c0_131 = arith.constant 0 : index
    %141 = vector.load %arg10[%c44_130, %c0_131] : memref<72x16xf32, #tpu.memory_space<vmem>>, vector<4x15xf32>
    tpu.vector_store %arg10[%c44_130, %c0_131], %140 {strides = array<i32>} : memref<72x16xf32, #tpu.memory_space<vmem>>, vector<4x15xf32>,
    %c44_132 = arith.constant 44 : index
    %c15_133 = arith.constant 15 : index
    %142 = vector.load %arg10[%c44_132, %c15_133] : memref<72x16xf32, #tpu.memory_space<vmem>>, vector<4x1xf32>
    tpu.vector_store %arg10[%c44_132, %c15_133], %135 {strides = array<i32>} : memref<72x16xf32, #tpu.memory_space<vmem>>, vector<4x1xf32>,
    %c1_134 = arith.constant 1 : index
    %c0_135 = arith.constant 0 : index
    %c0_136 = arith.constant 0 : index
    %143 = vector.load %arg4[%c1_134, %c0_135, %c0_136] : memref<3x4x48xbf16, #tpu.memory_space<vmem>>, vector<1x4x48xbf16>
    %144 = vector.shape_cast %143 : vector<1x4x48xbf16> to vector<4x48xbf16>
    %c0_137 = arith.constant 0 : index
    %c0_138 = arith.constant 0 : index
    %145 = vector.load %arg10[%c0_137, %c0_138] : memref<72x16xf32, #tpu.memory_space<vmem>>, vector<48x16xf32>
    %146 = arith.truncf %145 : vector<48x16xf32> to vector<48x16xbf16>
    %cst_139 = arith.constant dense<0.000000e+00> : vector<4x16xf32>
    %147 = tpu.matmul %144, %146, %cst_139 {dimension_numbers = #tpu.dot_dimension_numbers<[1], [0], [0], [1], [0, 0, 1, 1], [], []>} : vector<4x48xbf16>, vector<48x16xbf16>, vector<4x16xf32> -> vector<4x16xf32>
    %c32_140 = arith.constant 32 : index
    %c0_141 = arith.constant 0 : index
    %148 = vector.load %arg8[%c32_140, %c0_141] : memref<80x1xf32, #tpu.memory_space<vmem>>, vector<4x1xf32>
    %149 = vector.broadcast %148 : vector<4x1xf32> to vector<4x16xf32>
    %150 = arith.addf %147, %149 : vector<4x16xf32>
    %cst_142 = arith.constant 2.000000e-01 : f32
    %151 = vector.broadcast %cst_142 : f32 to vector<4x16xf32>
    %152 = arith.mulf %151, %150 : vector<4x16xf32>
    %153 = arith.maximumf %150, %152 : vector<4x16xf32>
    %cst_143 = arith.constant 0.000000e+00 : f32
    %154 = vector.broadcast %cst_143 : f32 to vector<4x1xf32>
    %c48_144 = arith.constant 48 : index
    %c0_145 = arith.constant 0 : index
    %155 = vector.load %arg10[%c48_144, %c0_145] : memref<72x16xf32, #tpu.memory_space<vmem>>, vector<4x1xf32>
    tpu.vector_store %arg10[%c48_144, %c0_145], %154 {strides = array<i32>} : memref<72x16xf32, #tpu.memory_space<vmem>>, vector<4x1xf32>,
    %156 = vector.extract_strided_slice %153 {offsets = [0, 0], sizes = [4, 15], strides = [1, 1]} : vector<4x16xf32> to vector<4x15xf32>
    %c48_146 = arith.constant 48 : index
    %c1_147 = arith.constant 1 : index
    %157 = vector.load %arg10[%c48_146, %c1_147] : memref<72x16xf32, #tpu.memory_space<vmem>>, vector<4x15xf32>
    tpu.vector_store %arg10[%c48_146, %c1_147], %156 {strides = array<i32>} : memref<72x16xf32, #tpu.memory_space<vmem>>, vector<4x15xf32>,
    %c52_148 = arith.constant 52 : index
    %c0_149 = arith.constant 0 : index
    %158 = vector.load %arg10[%c52_148, %c0_149] : memref<72x16xf32, #tpu.memory_space<vmem>>, vector<4x16xf32>
    tpu.vector_store %arg10[%c52_148, %c0_149], %153 {strides = array<i32>} : memref<72x16xf32, #tpu.memory_space<vmem>>, vector<4x16xf32>,
    %159 = vector.extract_strided_slice %153 {offsets = [0, 1], sizes = [4, 15], strides = [1, 1]} : vector<4x16xf32> to vector<4x15xf32>
    %c56_150 = arith.constant 56 : index
    %c0_151 = arith.constant 0 : index
    %160 = vector.load %arg10[%c56_150, %c0_151] : memref<72x16xf32, #tpu.memory_space<vmem>>, vector<4x15xf32>
    tpu.vector_store %arg10[%c56_150, %c0_151], %159 {strides = array<i32>} : memref<72x16xf32, #tpu.memory_space<vmem>>, vector<4x15xf32>,
    %c56_152 = arith.constant 56 : index
    %c15_153 = arith.constant 15 : index
    %161 = vector.load %arg10[%c56_152, %c15_153] : memref<72x16xf32, #tpu.memory_space<vmem>>, vector<4x1xf32>
    tpu.vector_store %arg10[%c56_152, %c15_153], %154 {strides = array<i32>} : memref<72x16xf32, #tpu.memory_space<vmem>>, vector<4x1xf32>,
    %c1_154 = arith.constant 1 : index
    %c0_155 = arith.constant 0 : index
    %c0_156 = arith.constant 0 : index
    %162 = vector.load %arg5[%c1_154, %c0_155, %c0_156] : memref<3x4x60xbf16, #tpu.memory_space<vmem>>, vector<1x4x60xbf16>
    %163 = vector.shape_cast %162 : vector<1x4x60xbf16> to vector<4x60xbf16>
    %c0_157 = arith.constant 0 : index
    %c0_158 = arith.constant 0 : index
    %164 = vector.load %arg10[%c0_157, %c0_158] : memref<72x16xf32, #tpu.memory_space<vmem>>, vector<60x16xf32>
    %165 = arith.truncf %164 : vector<60x16xf32> to vector<60x16xbf16>
    %cst_159 = arith.constant dense<0.000000e+00> : vector<4x16xf32>
    %166 = tpu.matmul %163, %165, %cst_159 {dimension_numbers = #tpu.dot_dimension_numbers<[1], [0], [0], [1], [0, 0, 1, 1], [], []>} : vector<4x60xbf16>, vector<60x16xbf16>, vector<4x16xf32> -> vector<4x16xf32>
    %c36_160 = arith.constant 36 : index
    %c0_161 = arith.constant 0 : index
    %167 = vector.load %arg8[%c36_160, %c0_161] : memref<80x1xf32, #tpu.memory_space<vmem>>, vector<4x1xf32>
    %168 = vector.broadcast %167 : vector<4x1xf32> to vector<4x16xf32>
    %169 = arith.addf %166, %168 : vector<4x16xf32>
    %cst_162 = arith.constant 2.000000e-01 : f32
    %170 = vector.broadcast %cst_162 : f32 to vector<4x16xf32>
    %171 = arith.mulf %170, %169 : vector<4x16xf32>
    %172 = arith.maximumf %169, %171 : vector<4x16xf32>
    %cst_163 = arith.constant 0.000000e+00 : f32
    %173 = vector.broadcast %cst_163 : f32 to vector<4x1xf32>
    %c60_164 = arith.constant 60 : index
    %c0_165 = arith.constant 0 : index
    %174 = vector.load %arg10[%c60_164, %c0_165] : memref<72x16xf32, #tpu.memory_space<vmem>>, vector<4x1xf32>
    tpu.vector_store %arg10[%c60_164, %c0_165], %173 {strides = array<i32>} : memref<72x16xf32, #tpu.memory_space<vmem>>, vector<4x1xf32>,
    %175 = vector.extract_strided_slice %172 {offsets = [0, 0], sizes = [4, 15], strides = [1, 1]} : vector<4x16xf32> to vector<4x15xf32>
    %c60_166 = arith.constant 60 : index
    %c1_167 = arith.constant 1 : index
    %176 = vector.load %arg10[%c60_166, %c1_167] : memref<72x16xf32, #tpu.memory_space<vmem>>, vector<4x15xf32>
    tpu.vector_store %arg10[%c60_166, %c1_167], %175 {strides = array<i32>} : memref<72x16xf32, #tpu.memory_space<vmem>>, vector<4x15xf32>,
    %c64_168 = arith.constant 64 : index
    %c0_169 = arith.constant 0 : index
    %177 = vector.load %arg10[%c64_168, %c0_169] : memref<72x16xf32, #tpu.memory_space<vmem>>, vector<4x16xf32>
    tpu.vector_store %arg10[%c64_168, %c0_169], %172 {strides = array<i32>} : memref<72x16xf32, #tpu.memory_space<vmem>>, vector<4x16xf32>,
    %178 = vector.extract_strided_slice %172 {offsets = [0, 1], sizes = [4, 15], strides = [1, 1]} : vector<4x16xf32> to vector<4x15xf32>
    %c68_170 = arith.constant 68 : index
    %c0_171 = arith.constant 0 : index
    %179 = vector.load %arg10[%c68_170, %c0_171] : memref<72x16xf32, #tpu.memory_space<vmem>>, vector<4x15xf32>
    tpu.vector_store %arg10[%c68_170, %c0_171], %178 {strides = array<i32>} : memref<72x16xf32, #tpu.memory_space<vmem>>, vector<4x15xf32>,
    %c68_172 = arith.constant 68 : index
    %c15_173 = arith.constant 15 : index
    %180 = vector.load %arg10[%c68_172, %c15_173] : memref<72x16xf32, #tpu.memory_space<vmem>>, vector<4x1xf32>
    tpu.vector_store %arg10[%c68_172, %c15_173], %173 {strides = array<i32>} : memref<72x16xf32, #tpu.memory_space<vmem>>, vector<4x1xf32>,
    %c1_174 = arith.constant 1 : index
    %c0_175 = arith.constant 0 : index
    %c0_176 = arith.constant 0 : index
    %181 = vector.load %arg6[%c1_174, %c0_175, %c0_176] : memref<3x8x72xbf16, #tpu.memory_space<vmem>>, vector<1x8x72xbf16>
    %182 = vector.shape_cast %181 : vector<1x8x72xbf16> to vector<8x72xbf16>
    %c0_177 = arith.constant 0 : index
    %c0_178 = arith.constant 0 : index
    %183 = vector.load %arg10[%c0_177, %c0_178] : memref<72x16xf32, #tpu.memory_space<vmem>>, vector<72x16xf32>
    %184 = arith.truncf %183 : vector<72x16xf32> to vector<72x16xbf16>
    %cst_179 = arith.constant dense<0.000000e+00> : vector<8x16xf32>
    %185 = tpu.matmul %182, %184, %cst_179 {dimension_numbers = #tpu.dot_dimension_numbers<[1], [0], [0], [1], [0, 0, 1, 1], [], []>} : vector<8x72xbf16>, vector<72x16xbf16>, vector<8x16xf32> -> vector<8x16xf32>
    %c40_180 = arith.constant 40 : index
    %c0_181 = arith.constant 0 : index
    %186 = vector.load %arg8[%c40_180, %c0_181] : memref<80x1xf32, #tpu.memory_space<vmem>>, vector<8x1xf32>
    %187 = vector.broadcast %186 : vector<8x1xf32> to vector<8x16xf32>
    %188 = arith.addf %185, %187 : vector<8x16xf32>
    %cst_182 = arith.constant 2.000000e-01 : f32
    %189 = vector.broadcast %cst_182 : f32 to vector<8x16xf32>
    %190 = arith.mulf %188, %189 : vector<8x16xf32>
    %191 = arith.addf %190, %96 : vector<8x16xf32>
    %cst_183 = arith.constant 0.000000e+00 : f32
    %192 = vector.broadcast %cst_183 : f32 to vector<8x1xf32>
    %c0_184 = arith.constant 0 : index
    %c0_185 = arith.constant 0 : index
    %193 = vector.load %arg10[%c0_184, %c0_185] : memref<72x16xf32, #tpu.memory_space<vmem>>, vector<8x1xf32>
    tpu.vector_store %arg10[%c0_184, %c0_185], %192 {strides = array<i32>} : memref<72x16xf32, #tpu.memory_space<vmem>>, vector<8x1xf32>,
    %194 = vector.extract_strided_slice %191 {offsets = [0, 0], sizes = [8, 15], strides = [1, 1]} : vector<8x16xf32> to vector<8x15xf32>
    %c0_186 = arith.constant 0 : index
    %c1_187 = arith.constant 1 : index
    %195 = vector.load %arg10[%c0_186, %c1_187] : memref<72x16xf32, #tpu.memory_space<vmem>>, vector<8x15xf32>
    tpu.vector_store %arg10[%c0_186, %c1_187], %194 {strides = array<i32>} : memref<72x16xf32, #tpu.memory_space<vmem>>, vector<8x15xf32>,
    %c8_188 = arith.constant 8 : index
    %c0_189 = arith.constant 0 : index
    %196 = vector.load %arg10[%c8_188, %c0_189] : memref<72x16xf32, #tpu.memory_space<vmem>>, vector<8x16xf32>
    tpu.vector_store %arg10[%c8_188, %c0_189], %191 {strides = array<i32>} : memref<72x16xf32, #tpu.memory_space<vmem>>, vector<8x16xf32>,
    %197 = vector.extract_strided_slice %191 {offsets = [0, 1], sizes = [8, 15], strides = [1, 1]} : vector<8x16xf32> to vector<8x15xf32>
    %c16_190 = arith.constant 16 : index
    %c0_191 = arith.constant 0 : index
    %198 = vector.load %arg10[%c16_190, %c0_191] : memref<72x16xf32, #tpu.memory_space<vmem>>, vector<8x15xf32>
    tpu.vector_store %arg10[%c16_190, %c0_191], %197 {strides = array<i32>} : memref<72x16xf32, #tpu.memory_space<vmem>>, vector<8x15xf32>,
    %c16_192 = arith.constant 16 : index
    %c15_193 = arith.constant 15 : index
    %199 = vector.load %arg10[%c16_192, %c15_193] : memref<72x16xf32, #tpu.memory_space<vmem>>, vector<8x1xf32>
    tpu.vector_store %arg10[%c16_192, %c15_193], %192 {strides = array<i32>} : memref<72x16xf32, #tpu.memory_space<vmem>>, vector<8x1xf32>,
    %c2 = arith.constant 2 : index
    %c0_194 = arith.constant 0 : index
    %c0_195 = arith.constant 0 : index
    %200 = vector.load %arg2[%c2, %c0_194, %c0_195] : memref<3x4x24xbf16, #tpu.memory_space<vmem>>, vector<1x4x24xbf16>
    %201 = vector.shape_cast %200 : vector<1x4x24xbf16> to vector<4x24xbf16>
    %c0_196 = arith.constant 0 : index
    %c0_197 = arith.constant 0 : index
    %202 = vector.load %arg10[%c0_196, %c0_197] : memref<72x16xf32, #tpu.memory_space<vmem>>, vector<24x16xf32>
    %203 = arith.truncf %202 : vector<24x16xf32> to vector<24x16xbf16>
    %cst_198 = arith.constant dense<0.000000e+00> : vector<4x16xf32>
    %204 = tpu.matmul %201, %203, %cst_198 {dimension_numbers = #tpu.dot_dimension_numbers<[1], [0], [0], [1], [0, 0, 1, 1], [], []>} : vector<4x24xbf16>, vector<24x16xbf16>, vector<4x16xf32> -> vector<4x16xf32>
    %c48_199 = arith.constant 48 : index
    %c0_200 = arith.constant 0 : index
    %205 = vector.load %arg8[%c48_199, %c0_200] : memref<80x1xf32, #tpu.memory_space<vmem>>, vector<4x1xf32>
    %206 = vector.broadcast %205 : vector<4x1xf32> to vector<4x16xf32>
    %207 = arith.addf %204, %206 : vector<4x16xf32>
    %cst_201 = arith.constant 2.000000e-01 : f32
    %208 = vector.broadcast %cst_201 : f32 to vector<4x16xf32>
    %209 = arith.mulf %208, %207 : vector<4x16xf32>
    %210 = arith.maximumf %207, %209 : vector<4x16xf32>
    %cst_202 = arith.constant 0.000000e+00 : f32
    %211 = vector.broadcast %cst_202 : f32 to vector<4x1xf32>
    %c24_203 = arith.constant 24 : index
    %c0_204 = arith.constant 0 : index
    %212 = vector.load %arg10[%c24_203, %c0_204] : memref<72x16xf32, #tpu.memory_space<vmem>>, vector<4x1xf32>
    tpu.vector_store %arg10[%c24_203, %c0_204], %211 {strides = array<i32>} : memref<72x16xf32, #tpu.memory_space<vmem>>, vector<4x1xf32>,
    %213 = vector.extract_strided_slice %210 {offsets = [0, 0], sizes = [4, 15], strides = [1, 1]} : vector<4x16xf32> to vector<4x15xf32>
    %c24_205 = arith.constant 24 : index
    %c1_206 = arith.constant 1 : index
    %214 = vector.load %arg10[%c24_205, %c1_206] : memref<72x16xf32, #tpu.memory_space<vmem>>, vector<4x15xf32>
    tpu.vector_store %arg10[%c24_205, %c1_206], %213 {strides = array<i32>} : memref<72x16xf32, #tpu.memory_space<vmem>>, vector<4x15xf32>,
    %c28_207 = arith.constant 28 : index
    %c0_208 = arith.constant 0 : index
    %215 = vector.load %arg10[%c28_207, %c0_208] : memref<72x16xf32, #tpu.memory_space<vmem>>, vector<4x16xf32>
    tpu.vector_store %arg10[%c28_207, %c0_208], %210 {strides = array<i32>} : memref<72x16xf32, #tpu.memory_space<vmem>>, vector<4x16xf32>,
    %216 = vector.extract_strided_slice %210 {offsets = [0, 1], sizes = [4, 15], strides = [1, 1]} : vector<4x16xf32> to vector<4x15xf32>
    %c32_209 = arith.constant 32 : index
    %c0_210 = arith.constant 0 : index
    %217 = vector.load %arg10[%c32_209, %c0_210] : memref<72x16xf32, #tpu.memory_space<vmem>>, vector<4x15xf32>
    tpu.vector_store %arg10[%c32_209, %c0_210], %216 {strides = array<i32>} : memref<72x16xf32, #tpu.memory_space<vmem>>, vector<4x15xf32>,
    %c32_211 = arith.constant 32 : index
    %c15_212 = arith.constant 15 : index
    %218 = vector.load %arg10[%c32_211, %c15_212] : memref<72x16xf32, #tpu.memory_space<vmem>>, vector<4x1xf32>
    tpu.vector_store %arg10[%c32_211, %c15_212], %211 {strides = array<i32>} : memref<72x16xf32, #tpu.memory_space<vmem>>, vector<4x1xf32>,
    %c2_213 = arith.constant 2 : index
    %c0_214 = arith.constant 0 : index
    %c0_215 = arith.constant 0 : index
    %219 = vector.load %arg3[%c2_213, %c0_214, %c0_215] : memref<3x4x36xbf16, #tpu.memory_space<vmem>>, vector<1x4x36xbf16>
    %220 = vector.shape_cast %219 : vector<1x4x36xbf16> to vector<4x36xbf16>
    %c0_216 = arith.constant 0 : index
    %c0_217 = arith.constant 0 : index
    %221 = vector.load %arg10[%c0_216, %c0_217] : memref<72x16xf32, #tpu.memory_space<vmem>>, vector<36x16xf32>
    %222 = arith.truncf %221 : vector<36x16xf32> to vector<36x16xbf16>
    %cst_218 = arith.constant dense<0.000000e+00> : vector<4x16xf32>
    %223 = tpu.matmul %220, %222, %cst_218 {dimension_numbers = #tpu.dot_dimension_numbers<[1], [0], [0], [1], [0, 0, 1, 1], [], []>} : vector<4x36xbf16>, vector<36x16xbf16>, vector<4x16xf32> -> vector<4x16xf32>
    %c52_219 = arith.constant 52 : index
    %c0_220 = arith.constant 0 : index
    %224 = vector.load %arg8[%c52_219, %c0_220] : memref<80x1xf32, #tpu.memory_space<vmem>>, vector<4x1xf32>
    %225 = vector.broadcast %224 : vector<4x1xf32> to vector<4x16xf32>
    %226 = arith.addf %223, %225 : vector<4x16xf32>
    %cst_221 = arith.constant 2.000000e-01 : f32
    %227 = vector.broadcast %cst_221 : f32 to vector<4x16xf32>
    %228 = arith.mulf %227, %226 : vector<4x16xf32>
    %229 = arith.maximumf %226, %228 : vector<4x16xf32>
    %cst_222 = arith.constant 0.000000e+00 : f32
    %230 = vector.broadcast %cst_222 : f32 to vector<4x1xf32>
    %c36_223 = arith.constant 36 : index
    %c0_224 = arith.constant 0 : index
    %231 = vector.load %arg10[%c36_223, %c0_224] : memref<72x16xf32, #tpu.memory_space<vmem>>, vector<4x1xf32>
    tpu.vector_store %arg10[%c36_223, %c0_224], %230 {strides = array<i32>} : memref<72x16xf32, #tpu.memory_space<vmem>>, vector<4x1xf32>,
    %232 = vector.extract_strided_slice %229 {offsets = [0, 0], sizes = [4, 15], strides = [1, 1]} : vector<4x16xf32> to vector<4x15xf32>
    %c36_225 = arith.constant 36 : index
    %c1_226 = arith.constant 1 : index
    %233 = vector.load %arg10[%c36_225, %c1_226] : memref<72x16xf32, #tpu.memory_space<vmem>>, vector<4x15xf32>
    tpu.vector_store %arg10[%c36_225, %c1_226], %232 {strides = array<i32>} : memref<72x16xf32, #tpu.memory_space<vmem>>, vector<4x15xf32>,
    %c40_227 = arith.constant 40 : index
    %c0_228 = arith.constant 0 : index
    %234 = vector.load %arg10[%c40_227, %c0_228] : memref<72x16xf32, #tpu.memory_space<vmem>>, vector<4x16xf32>
    tpu.vector_store %arg10[%c40_227, %c0_228], %229 {strides = array<i32>} : memref<72x16xf32, #tpu.memory_space<vmem>>, vector<4x16xf32>,
    %235 = vector.extract_strided_slice %229 {offsets = [0, 1], sizes = [4, 15], strides = [1, 1]} : vector<4x16xf32> to vector<4x15xf32>
    %c44_229 = arith.constant 44 : index
    %c0_230 = arith.constant 0 : index
    %236 = vector.load %arg10[%c44_229, %c0_230] : memref<72x16xf32, #tpu.memory_space<vmem>>, vector<4x15xf32>
    tpu.vector_store %arg10[%c44_229, %c0_230], %235 {strides = array<i32>} : memref<72x16xf32, #tpu.memory_space<vmem>>, vector<4x15xf32>,
    %c44_231 = arith.constant 44 : index
    %c15_232 = arith.constant 15 : index
    %237 = vector.load %arg10[%c44_231, %c15_232] : memref<72x16xf32, #tpu.memory_space<vmem>>, vector<4x1xf32>
    tpu.vector_store %arg10[%c44_231, %c15_232], %230 {strides = array<i32>} : memref<72x16xf32, #tpu.memory_space<vmem>>, vector<4x1xf32>,
    %c2_233 = arith.constant 2 : index
    %c0_234 = arith.constant 0 : index
    %c0_235 = arith.constant 0 : index
    %238 = vector.load %arg4[%c2_233, %c0_234, %c0_235] : memref<3x4x48xbf16, #tpu.memory_space<vmem>>, vector<1x4x48xbf16>
    %239 = vector.shape_cast %238 : vector<1x4x48xbf16> to vector<4x48xbf16>
    %c0_236 = arith.constant 0 : index
    %c0_237 = arith.constant 0 : index
    %240 = vector.load %arg10[%c0_236, %c0_237] : memref<72x16xf32, #tpu.memory_space<vmem>>, vector<48x16xf32>
    %241 = arith.truncf %240 : vector<48x16xf32> to vector<48x16xbf16>
    %cst_238 = arith.constant dense<0.000000e+00> : vector<4x16xf32>
    %242 = tpu.matmul %239, %241, %cst_238 {dimension_numbers = #tpu.dot_dimension_numbers<[1], [0], [0], [1], [0, 0, 1, 1], [], []>} : vector<4x48xbf16>, vector<48x16xbf16>, vector<4x16xf32> -> vector<4x16xf32>
    %c56_239 = arith.constant 56 : index
    %c0_240 = arith.constant 0 : index
    %243 = vector.load %arg8[%c56_239, %c0_240] : memref<80x1xf32, #tpu.memory_space<vmem>>, vector<4x1xf32>
    %244 = vector.broadcast %243 : vector<4x1xf32> to vector<4x16xf32>
    %245 = arith.addf %242, %244 : vector<4x16xf32>
    %cst_241 = arith.constant 2.000000e-01 : f32
    %246 = vector.broadcast %cst_241 : f32 to vector<4x16xf32>
    %247 = arith.mulf %246, %245 : vector<4x16xf32>
    %248 = arith.maximumf %245, %247 : vector<4x16xf32>
    %cst_242 = arith.constant 0.000000e+00 : f32
    %249 = vector.broadcast %cst_242 : f32 to vector<4x1xf32>
    %c48_243 = arith.constant 48 : index
    %c0_244 = arith.constant 0 : index
    %250 = vector.load %arg10[%c48_243, %c0_244] : memref<72x16xf32, #tpu.memory_space<vmem>>, vector<4x1xf32>
    tpu.vector_store %arg10[%c48_243, %c0_244], %249 {strides = array<i32>} : memref<72x16xf32, #tpu.memory_space<vmem>>, vector<4x1xf32>,
    %251 = vector.extract_strided_slice %248 {offsets = [0, 0], sizes = [4, 15], strides = [1, 1]} : vector<4x16xf32> to vector<4x15xf32>
    %c48_245 = arith.constant 48 : index
    %c1_246 = arith.constant 1 : index
    %252 = vector.load %arg10[%c48_245, %c1_246] : memref<72x16xf32, #tpu.memory_space<vmem>>, vector<4x15xf32>
    tpu.vector_store %arg10[%c48_245, %c1_246], %251 {strides = array<i32>} : memref<72x16xf32, #tpu.memory_space<vmem>>, vector<4x15xf32>,
    %c52_247 = arith.constant 52 : index
    %c0_248 = arith.constant 0 : index
    %253 = vector.load %arg10[%c52_247, %c0_248] : memref<72x16xf32, #tpu.memory_space<vmem>>, vector<4x16xf32>
    tpu.vector_store %arg10[%c52_247, %c0_248], %248 {strides = array<i32>} : memref<72x16xf32, #tpu.memory_space<vmem>>, vector<4x16xf32>,
    %254 = vector.extract_strided_slice %248 {offsets = [0, 1], sizes = [4, 15], strides = [1, 1]} : vector<4x16xf32> to vector<4x15xf32>
    %c56_249 = arith.constant 56 : index
    %c0_250 = arith.constant 0 : index
    %255 = vector.load %arg10[%c56_249, %c0_250] : memref<72x16xf32, #tpu.memory_space<vmem>>, vector<4x15xf32>
    tpu.vector_store %arg10[%c56_249, %c0_250], %254 {strides = array<i32>} : memref<72x16xf32, #tpu.memory_space<vmem>>, vector<4x15xf32>,
    %c56_251 = arith.constant 56 : index
    %c15_252 = arith.constant 15 : index
    %256 = vector.load %arg10[%c56_251, %c15_252] : memref<72x16xf32, #tpu.memory_space<vmem>>, vector<4x1xf32>
    tpu.vector_store %arg10[%c56_251, %c15_252], %249 {strides = array<i32>} : memref<72x16xf32, #tpu.memory_space<vmem>>, vector<4x1xf32>,
    %c2_253 = arith.constant 2 : index
    %c0_254 = arith.constant 0 : index
    %c0_255 = arith.constant 0 : index
    %257 = vector.load %arg5[%c2_253, %c0_254, %c0_255] : memref<3x4x60xbf16, #tpu.memory_space<vmem>>, vector<1x4x60xbf16>
    %258 = vector.shape_cast %257 : vector<1x4x60xbf16> to vector<4x60xbf16>
    %c0_256 = arith.constant 0 : index
    %c0_257 = arith.constant 0 : index
    %259 = vector.load %arg10[%c0_256, %c0_257] : memref<72x16xf32, #tpu.memory_space<vmem>>, vector<60x16xf32>
    %260 = arith.truncf %259 : vector<60x16xf32> to vector<60x16xbf16>
    %cst_258 = arith.constant dense<0.000000e+00> : vector<4x16xf32>
    %261 = tpu.matmul %258, %260, %cst_258 {dimension_numbers = #tpu.dot_dimension_numbers<[1], [0], [0], [1], [0, 0, 1, 1], [], []>} : vector<4x60xbf16>, vector<60x16xbf16>, vector<4x16xf32> -> vector<4x16xf32>
    %c60_259 = arith.constant 60 : index
    %c0_260 = arith.constant 0 : index
    %262 = vector.load %arg8[%c60_259, %c0_260] : memref<80x1xf32, #tpu.memory_space<vmem>>, vector<4x1xf32>
    %263 = vector.broadcast %262 : vector<4x1xf32> to vector<4x16xf32>
    %264 = arith.addf %261, %263 : vector<4x16xf32>
    %cst_261 = arith.constant 2.000000e-01 : f32
    %265 = vector.broadcast %cst_261 : f32 to vector<4x16xf32>
    %266 = arith.mulf %265, %264 : vector<4x16xf32>
    %267 = arith.maximumf %264, %266 : vector<4x16xf32>
    %cst_262 = arith.constant 0.000000e+00 : f32
    %268 = vector.broadcast %cst_262 : f32 to vector<4x1xf32>
    %c60_263 = arith.constant 60 : index
    %c0_264 = arith.constant 0 : index
    %269 = vector.load %arg10[%c60_263, %c0_264] : memref<72x16xf32, #tpu.memory_space<vmem>>, vector<4x1xf32>
    tpu.vector_store %arg10[%c60_263, %c0_264], %268 {strides = array<i32>} : memref<72x16xf32, #tpu.memory_space<vmem>>, vector<4x1xf32>,
    %270 = vector.extract_strided_slice %267 {offsets = [0, 0], sizes = [4, 15], strides = [1, 1]} : vector<4x16xf32> to vector<4x15xf32>
    %c60_265 = arith.constant 60 : index
    %c1_266 = arith.constant 1 : index
    %271 = vector.load %arg10[%c60_265, %c1_266] : memref<72x16xf32, #tpu.memory_space<vmem>>, vector<4x15xf32>
    tpu.vector_store %arg10[%c60_265, %c1_266], %270 {strides = array<i32>} : memref<72x16xf32, #tpu.memory_space<vmem>>, vector<4x15xf32>,
    %c64_267 = arith.constant 64 : index
    %c0_268 = arith.constant 0 : index
    %272 = vector.load %arg10[%c64_267, %c0_268] : memref<72x16xf32, #tpu.memory_space<vmem>>, vector<4x16xf32>
    tpu.vector_store %arg10[%c64_267, %c0_268], %267 {strides = array<i32>} : memref<72x16xf32, #tpu.memory_space<vmem>>, vector<4x16xf32>,
    %273 = vector.extract_strided_slice %267 {offsets = [0, 1], sizes = [4, 15], strides = [1, 1]} : vector<4x16xf32> to vector<4x15xf32>
    %c68_269 = arith.constant 68 : index
    %c0_270 = arith.constant 0 : index
    %274 = vector.load %arg10[%c68_269, %c0_270] : memref<72x16xf32, #tpu.memory_space<vmem>>, vector<4x15xf32>
    tpu.vector_store %arg10[%c68_269, %c0_270], %273 {strides = array<i32>} : memref<72x16xf32, #tpu.memory_space<vmem>>, vector<4x15xf32>,
    %c68_271 = arith.constant 68 : index
    %c15_272 = arith.constant 15 : index
    %275 = vector.load %arg10[%c68_271, %c15_272] : memref<72x16xf32, #tpu.memory_space<vmem>>, vector<4x1xf32>
    tpu.vector_store %arg10[%c68_271, %c15_272], %268 {strides = array<i32>} : memref<72x16xf32, #tpu.memory_space<vmem>>, vector<4x1xf32>,
    %c2_273 = arith.constant 2 : index
    %c0_274 = arith.constant 0 : index
    %c0_275 = arith.constant 0 : index
    %276 = vector.load %arg6[%c2_273, %c0_274, %c0_275] : memref<3x8x72xbf16, #tpu.memory_space<vmem>>, vector<1x8x72xbf16>
    %277 = vector.shape_cast %276 : vector<1x8x72xbf16> to vector<8x72xbf16>
    %c0_276 = arith.constant 0 : index
    %c0_277 = arith.constant 0 : index
    %278 = vector.load %arg10[%c0_276, %c0_277] : memref<72x16xf32, #tpu.memory_space<vmem>>, vector<72x16xf32>
    %279 = arith.truncf %278 : vector<72x16xf32> to vector<72x16xbf16>
    %cst_278 = arith.constant dense<0.000000e+00> : vector<8x16xf32>
    %280 = tpu.matmul %277, %279, %cst_278 {dimension_numbers = #tpu.dot_dimension_numbers<[1], [0], [0], [1], [0, 0, 1, 1], [], []>} : vector<8x72xbf16>, vector<72x16xbf16>, vector<8x16xf32> -> vector<8x16xf32>
    %c64_279 = arith.constant 64 : index
    %c0_280 = arith.constant 0 : index
    %281 = vector.load %arg8[%c64_279, %c0_280] : memref<80x1xf32, #tpu.memory_space<vmem>>, vector<8x1xf32>
    %282 = vector.broadcast %281 : vector<8x1xf32> to vector<8x16xf32>
    %283 = arith.addf %280, %282 : vector<8x16xf32>
    %cst_281 = arith.constant 2.000000e-01 : f32
    %284 = vector.broadcast %cst_281 : f32 to vector<8x16xf32>
    %285 = arith.mulf %283, %284 : vector<8x16xf32>
    %286 = arith.addf %285, %191 : vector<8x16xf32>
    %cst_282 = arith.constant 2.000000e-01 : f32
    %287 = vector.broadcast %cst_282 : f32 to vector<8x16xf32>
    %288 = arith.mulf %286, %287 : vector<8x16xf32>
    %289 = arith.addf %288, %1 : vector<8x16xf32>
    %cst_283 = arith.constant 0.000000e+00 : f32
    %290 = vector.broadcast %cst_283 : f32 to vector<8x1xf32>
    %c0_284 = arith.constant 0 : index
    %c0_285 = arith.constant 0 : index
    %291 = vector.load %arg10[%c0_284, %c0_285] : memref<72x16xf32, #tpu.memory_space<vmem>>, vector<8x1xf32>
    tpu.vector_store %arg10[%c0_284, %c0_285], %290 {strides = array<i32>} : memref<72x16xf32, #tpu.memory_space<vmem>>, vector<8x1xf32>,
    %292 = vector.extract_strided_slice %289 {offsets = [0, 0], sizes = [8, 15], strides = [1, 1]} : vector<8x16xf32> to vector<8x15xf32>
    %c0_286 = arith.constant 0 : index
    %c1_287 = arith.constant 1 : index
    %293 = vector.load %arg10[%c0_286, %c1_287] : memref<72x16xf32, #tpu.memory_space<vmem>>, vector<8x15xf32>
    tpu.vector_store %arg10[%c0_286, %c1_287], %292 {strides = array<i32>} : memref<72x16xf32, #tpu.memory_space<vmem>>, vector<8x15xf32>,
    %c8_288 = arith.constant 8 : index
    %c0_289 = arith.constant 0 : index
    %294 = vector.load %arg10[%c8_288, %c0_289] : memref<72x16xf32, #tpu.memory_space<vmem>>, vector<8x16xf32>
    tpu.vector_store %arg10[%c8_288, %c0_289], %289 {strides = array<i32>} : memref<72x16xf32, #tpu.memory_space<vmem>>, vector<8x16xf32>,
    %295 = vector.extract_strided_slice %289 {offsets = [0, 1], sizes = [8, 15], strides = [1, 1]} : vector<8x16xf32> to vector<8x15xf32>
    %c16_290 = arith.constant 16 : index
    %c0_291 = arith.constant 0 : index
    %296 = vector.load %arg10[%c16_290, %c0_291] : memref<72x16xf32, #tpu.memory_space<vmem>>, vector<8x15xf32>
    tpu.vector_store %arg10[%c16_290, %c0_291], %295 {strides = array<i32>} : memref<72x16xf32, #tpu.memory_space<vmem>>, vector<8x15xf32>,
    %c16_292 = arith.constant 16 : index
    %c15_293 = arith.constant 15 : index
    %297 = vector.load %arg10[%c16_292, %c15_293] : memref<72x16xf32, #tpu.memory_space<vmem>>, vector<8x1xf32>
    tpu.vector_store %arg10[%c16_292, %c15_293], %290 {strides = array<i32>} : memref<72x16xf32, #tpu.memory_space<vmem>>, vector<8x1xf32>,
    %c0_294 = arith.constant 0 : index
    %c0_295 = arith.constant 0 : index
    %298 = vector.load %arg7[%c0_294, %c0_295] : memref<8x24xbf16, #tpu.memory_space<vmem>>, vector<8x24xbf16>
    %c0_296 = arith.constant 0 : index
    %c0_297 = arith.constant 0 : index
    %299 = vector.load %arg10[%c0_296, %c0_297] : memref<72x16xf32, #tpu.memory_space<vmem>>, vector<24x16xf32>
    %300 = arith.truncf %299 : vector<24x16xf32> to vector<24x16xbf16>
    %cst_298 = arith.constant dense<0.000000e+00> : vector<8x16xf32>
    %301 = tpu.matmul %298, %300, %cst_298 {dimension_numbers = #tpu.dot_dimension_numbers<[1], [0], [0], [1], [0, 0, 1, 1], [], []>} : vector<8x24xbf16>, vector<24x16xbf16>, vector<8x16xf32> -> vector<8x16xf32>
    %c72 = arith.constant 72 : index
    %c0_299 = arith.constant 0 : index
    %302 = vector.load %arg8[%c72, %c0_299] : memref<80x1xf32, #tpu.memory_space<vmem>>, vector<8x1xf32>
    %303 = vector.broadcast %302 : vector<8x1xf32> to vector<8x16xf32>
    %304 = arith.addf %301, %303 : vector<8x16xf32>
    %305 = arith.addf %1, %304 : vector<8x16xf32>
    %c0_300 = arith.constant 0 : index
    %c0_301 = arith.constant 0 : index
    %c0_302 = arith.constant 0 : index
    %306 = vector.load %arg9[%c0_300, %c0_301, %c0_302] : memref<1x8x16xf32, #tpu.memory_space<vmem>>, vector<1x8x16xf32>
    %307 = vector.shape_cast %306 : vector<1x8x16xf32> to vector<8x16xf32>
    %308 = vector.shape_cast %305 : vector<8x16xf32> to vector<1x8x16xf32>
    tpu.vector_store %arg9[%c0_300, %c0_301, %c0_302], %308 {strides = array<i32>} : memref<1x8x16xf32, #tpu.memory_space<vmem>>, vector<1x8x16xf32>,
    return
  }
  func.func @transform_0(%arg0: i32) -> (i32, i32, i32) {
    %c0_i32 = arith.constant 0 : i32
    %c0_i32_0 = arith.constant 0 : i32
    %c0_i32_1 = arith.constant 0 : i32
    return %arg0, %c0_i32, %c0_i32_0 : i32, i32, i32
  }
  func.func @transform_1(%arg0: i32) -> (i32, i32, i32) {
    %c0_i32 = arith.constant 0 : i32
    %c0_i32_0 = arith.constant 0 : i32
    %c0_i32_1 = arith.constant 0 : i32
    %c0_i32_2 = arith.constant 0 : i32
    return %c0_i32, %c0_i32_0, %c0_i32_1 : i32, i32, i32
  }
  func.func @transform_2(%arg0: i32) -> (i32, i32, i32) {
    %c0_i32 = arith.constant 0 : i32
    %c0_i32_0 = arith.constant 0 : i32
    %c0_i32_1 = arith.constant 0 : i32
    %c0_i32_2 = arith.constant 0 : i32
    return %c0_i32, %c0_i32_0, %c0_i32_1 : i32, i32, i32
  }
  func.func @transform_3(%arg0: i32) -> (i32, i32, i32) {
    %c0_i32 = arith.constant 0 : i32
    %c0_i32_0 = arith.constant 0 : i32
    %c0_i32_1 = arith.constant 0 : i32
    %c0_i32_2 = arith.constant 0 : i32
    return %c0_i32, %c0_i32_0, %c0_i32_1 : i32, i32, i32
  }
  func.func @transform_4(%arg0: i32) -> (i32, i32, i32) {
    %c0_i32 = arith.constant 0 : i32
    %c0_i32_0 = arith.constant 0 : i32
    %c0_i32_1 = arith.constant 0 : i32
    %c0_i32_2 = arith.constant 0 : i32
    return %c0_i32, %c0_i32_0, %c0_i32_1 : i32, i32, i32
  }
  func.func @transform_5(%arg0: i32) -> (i32, i32, i32) {
    %c0_i32 = arith.constant 0 : i32
    %c0_i32_0 = arith.constant 0 : i32
    %c0_i32_1 = arith.constant 0 : i32
    %c0_i32_2 = arith.constant 0 : i32
    return %c0_i32, %c0_i32_0, %c0_i32_1 : i32, i32, i32
  }
  func.func @transform_6(%arg0: i32) -> (i32, i32) {
    %c0_i32 = arith.constant 0 : i32
    %c0_i32_0 = arith.constant 0 : i32
    %c0_i32_1 = arith.constant 0 : i32
    return %c0_i32, %c0_i32_0 : i32, i32
  }
  func.func @transform_7(%arg0: i32) -> (i32, i32) {
    %c0_i32 = arith.constant 0 : i32
    %c0_i32_0 = arith.constant 0 : i32
    %c0_i32_1 = arith.constant 0 : i32
    return %c0_i32, %c0_i32_0 : i32, i32
  }
  func.func @transform_8(%arg0: i32) -> (i32, i32, i32) {
    %c0_i32 = arith.constant 0 : i32
    %c0_i32_0 = arith.constant 0 : i32
    %c0_i32_1 = arith.constant 0 : i32
    return %arg0, %c0_i32, %c0_i32_0 : i32, i32, i32
  }
}

module attributes {stable_mosaic.version = 11 : i64} {
  func.func @_conv3_kernel(%arg0: i32, %arg1: memref<1x8x32xf32, #tpu.memory_space<vmem>>, %arg2: memref<8x24xbf16, #tpu.memory_space<vmem>>, %arg3: memref<8x1xf32, #tpu.memory_space<vmem>>, %arg4: memref<1x8x32xf32, #tpu.memory_space<vmem>>, %arg5: memref<24x32xf32, #tpu.memory_space<vmem>>) attributes {dimension_semantics = [#tpu.dimension_semantics<parallel>], iteration_bounds = array<i64: 2>, scalar_prefetch = 0 : i64, scratch_operands = 1 : i64, tpu.core_type = #tpu.core_type<tc>, window_params = [{transform_indices = @transform_0, window_bounds = array<i64: 1, 8, 32>}, {pipeline_mode = #tpu.pipeline_mode<synchronous>, transform_indices = @transform_1, window_bounds = array<i64: 8, 24>}, {pipeline_mode = #tpu.pipeline_mode<synchronous>, transform_indices = @transform_2, window_bounds = array<i64: 8, 1>}, {transform_indices = @transform_3, window_bounds = array<i64: 1, 8, 32>}]} {
    %c0 = arith.constant 0 : index
    %c0_0 = arith.constant 0 : index
    %c0_1 = arith.constant 0 : index
    %0 = vector.load %arg1[%c0, %c0_0, %c0_1] : memref<1x8x32xf32, #tpu.memory_space<vmem>>, vector<1x8x32xf32>
    %1 = vector.shape_cast %0 : vector<1x8x32xf32> to vector<8x32xf32>
    %cst = arith.constant 0.000000e+00 : f32
    %2 = vector.broadcast %cst : f32 to vector<8x1xf32>
    %c0_2 = arith.constant 0 : index
    %c0_3 = arith.constant 0 : index
    %3 = vector.load %arg5[%c0_2, %c0_3] : memref<24x32xf32, #tpu.memory_space<vmem>>, vector<8x1xf32>
    tpu.vector_store %arg5[%c0_2, %c0_3], %2 {strides = array<i32>} : memref<24x32xf32, #tpu.memory_space<vmem>>, vector<8x1xf32>,
    %4 = vector.extract_strided_slice %1 {offsets = [0, 0], sizes = [8, 31], strides = [1, 1]} : vector<8x32xf32> to vector<8x31xf32>
    %c0_4 = arith.constant 0 : index
    %c1 = arith.constant 1 : index
    %5 = vector.load %arg5[%c0_4, %c1] : memref<24x32xf32, #tpu.memory_space<vmem>>, vector<8x31xf32>
    tpu.vector_store %arg5[%c0_4, %c1], %4 {strides = array<i32>} : memref<24x32xf32, #tpu.memory_space<vmem>>, vector<8x31xf32>,
    %c8 = arith.constant 8 : index
    %c0_5 = arith.constant 0 : index
    %6 = vector.load %arg5[%c8, %c0_5] : memref<24x32xf32, #tpu.memory_space<vmem>>, vector<8x32xf32>
    tpu.vector_store %arg5[%c8, %c0_5], %1 {strides = array<i32>} : memref<24x32xf32, #tpu.memory_space<vmem>>, vector<8x32xf32>,
    %7 = vector.extract_strided_slice %1 {offsets = [0, 1], sizes = [8, 31], strides = [1, 1]} : vector<8x32xf32> to vector<8x31xf32>
    %c16 = arith.constant 16 : index
    %c0_6 = arith.constant 0 : index
    %8 = vector.load %arg5[%c16, %c0_6] : memref<24x32xf32, #tpu.memory_space<vmem>>, vector<8x31xf32>
    tpu.vector_store %arg5[%c16, %c0_6], %7 {strides = array<i32>} : memref<24x32xf32, #tpu.memory_space<vmem>>, vector<8x31xf32>,
    %c16_7 = arith.constant 16 : index
    %c31 = arith.constant 31 : index
    %9 = vector.load %arg5[%c16_7, %c31] : memref<24x32xf32, #tpu.memory_space<vmem>>, vector<8x1xf32>
    tpu.vector_store %arg5[%c16_7, %c31], %2 {strides = array<i32>} : memref<24x32xf32, #tpu.memory_space<vmem>>, vector<8x1xf32>,
    %c0_8 = arith.constant 0 : index
    %c0_9 = arith.constant 0 : index
    %10 = vector.load %arg2[%c0_8, %c0_9] : memref<8x24xbf16, #tpu.memory_space<vmem>>, vector<8x24xbf16>
    %c0_10 = arith.constant 0 : index
    %c0_11 = arith.constant 0 : index
    %11 = vector.load %arg5[%c0_10, %c0_11] : memref<24x32xf32, #tpu.memory_space<vmem>>, vector<24x32xf32>
    %12 = arith.truncf %11 : vector<24x32xf32> to vector<24x32xbf16>
    %cst_12 = arith.constant dense<0.000000e+00> : vector<8x32xf32>
    %13 = tpu.matmul %10, %12, %cst_12 {dimension_numbers = #tpu.dot_dimension_numbers<[1], [0], [0], [1], [0, 0, 1, 1], [], []>} : vector<8x24xbf16>, vector<24x32xbf16>, vector<8x32xf32> -> vector<8x32xf32>
    %c0_13 = arith.constant 0 : index
    %c0_14 = arith.constant 0 : index
    %14 = vector.load %arg3[%c0_13, %c0_14] : memref<8x1xf32, #tpu.memory_space<vmem>>, vector<8x1xf32>
    %15 = vector.broadcast %14 : vector<8x1xf32> to vector<8x32xf32>
    %16 = arith.addf %13, %15 : vector<8x32xf32>
    %cst_15 = arith.constant 2.000000e-01 : f32
    %17 = vector.broadcast %cst_15 : f32 to vector<8x32xf32>
    %18 = arith.mulf %17, %16 : vector<8x32xf32>
    %19 = arith.maximumf %16, %18 : vector<8x32xf32>
    %c0_16 = arith.constant 0 : index
    %c0_17 = arith.constant 0 : index
    %c0_18 = arith.constant 0 : index
    %20 = vector.load %arg4[%c0_16, %c0_17, %c0_18] : memref<1x8x32xf32, #tpu.memory_space<vmem>>, vector<1x8x32xf32>
    %21 = vector.shape_cast %20 : vector<1x8x32xf32> to vector<8x32xf32>
    %22 = vector.shape_cast %19 : vector<8x32xf32> to vector<1x8x32xf32>
    tpu.vector_store %arg4[%c0_16, %c0_17, %c0_18], %22 {strides = array<i32>} : memref<1x8x32xf32, #tpu.memory_space<vmem>>, vector<1x8x32xf32>,
    return
  }
  func.func @transform_0(%arg0: i32) -> (i32, i32, i32) {
    %c0_i32 = arith.constant 0 : i32
    %c0_i32_0 = arith.constant 0 : i32
    %c0_i32_1 = arith.constant 0 : i32
    return %arg0, %c0_i32, %c0_i32_0 : i32, i32, i32
  }
  func.func @transform_1(%arg0: i32) -> (i32, i32) {
    %c0_i32 = arith.constant 0 : i32
    %c0_i32_0 = arith.constant 0 : i32
    %c0_i32_1 = arith.constant 0 : i32
    return %c0_i32, %c0_i32_0 : i32, i32
  }
  func.func @transform_2(%arg0: i32) -> (i32, i32) {
    %c0_i32 = arith.constant 0 : i32
    %c0_i32_0 = arith.constant 0 : i32
    %c0_i32_1 = arith.constant 0 : i32
    return %c0_i32, %c0_i32_0 : i32, i32
  }
  func.func @transform_3(%arg0: i32) -> (i32, i32, i32) {
    %c0_i32 = arith.constant 0 : i32
    %c0_i32_0 = arith.constant 0 : i32
    %c0_i32_1 = arith.constant 0 : i32
    return %arg0, %c0_i32, %c0_i32_0 : i32, i32, i32
  }
}

module attributes {stable_mosaic.version = 11 : i64} {
  func.func @_conv3_kernel(%arg0: i32, %arg1: memref<1x8x64xf32, #tpu.memory_space<vmem>>, %arg2: memref<8x24xbf16, #tpu.memory_space<vmem>>, %arg3: memref<8x1xf32, #tpu.memory_space<vmem>>, %arg4: memref<1x8x64xf32, #tpu.memory_space<vmem>>, %arg5: memref<24x64xf32, #tpu.memory_space<vmem>>) attributes {dimension_semantics = [#tpu.dimension_semantics<parallel>], iteration_bounds = array<i64: 2>, scalar_prefetch = 0 : i64, scratch_operands = 1 : i64, tpu.core_type = #tpu.core_type<tc>, window_params = [{transform_indices = @transform_0, window_bounds = array<i64: 1, 8, 64>}, {pipeline_mode = #tpu.pipeline_mode<synchronous>, transform_indices = @transform_1, window_bounds = array<i64: 8, 24>}, {pipeline_mode = #tpu.pipeline_mode<synchronous>, transform_indices = @transform_2, window_bounds = array<i64: 8, 1>}, {transform_indices = @transform_3, window_bounds = array<i64: 1, 8, 64>}]} {
    %c0 = arith.constant 0 : index
    %c0_0 = arith.constant 0 : index
    %c0_1 = arith.constant 0 : index
    %0 = vector.load %arg1[%c0, %c0_0, %c0_1] : memref<1x8x64xf32, #tpu.memory_space<vmem>>, vector<1x8x64xf32>
    %1 = vector.shape_cast %0 : vector<1x8x64xf32> to vector<8x64xf32>
    %cst = arith.constant 0.000000e+00 : f32
    %2 = vector.broadcast %cst : f32 to vector<8x1xf32>
    %c0_2 = arith.constant 0 : index
    %c0_3 = arith.constant 0 : index
    %3 = vector.load %arg5[%c0_2, %c0_3] : memref<24x64xf32, #tpu.memory_space<vmem>>, vector<8x1xf32>
    tpu.vector_store %arg5[%c0_2, %c0_3], %2 {strides = array<i32>} : memref<24x64xf32, #tpu.memory_space<vmem>>, vector<8x1xf32>,
    %4 = vector.extract_strided_slice %1 {offsets = [0, 0], sizes = [8, 63], strides = [1, 1]} : vector<8x64xf32> to vector<8x63xf32>
    %c0_4 = arith.constant 0 : index
    %c1 = arith.constant 1 : index
    %5 = vector.load %arg5[%c0_4, %c1] : memref<24x64xf32, #tpu.memory_space<vmem>>, vector<8x63xf32>
    tpu.vector_store %arg5[%c0_4, %c1], %4 {strides = array<i32>} : memref<24x64xf32, #tpu.memory_space<vmem>>, vector<8x63xf32>,
    %c8 = arith.constant 8 : index
    %c0_5 = arith.constant 0 : index
    %6 = vector.load %arg5[%c8, %c0_5] : memref<24x64xf32, #tpu.memory_space<vmem>>, vector<8x64xf32>
    tpu.vector_store %arg5[%c8, %c0_5], %1 {strides = array<i32>} : memref<24x64xf32, #tpu.memory_space<vmem>>, vector<8x64xf32>,
    %7 = vector.extract_strided_slice %1 {offsets = [0, 1], sizes = [8, 63], strides = [1, 1]} : vector<8x64xf32> to vector<8x63xf32>
    %c16 = arith.constant 16 : index
    %c0_6 = arith.constant 0 : index
    %8 = vector.load %arg5[%c16, %c0_6] : memref<24x64xf32, #tpu.memory_space<vmem>>, vector<8x63xf32>
    tpu.vector_store %arg5[%c16, %c0_6], %7 {strides = array<i32>} : memref<24x64xf32, #tpu.memory_space<vmem>>, vector<8x63xf32>,
    %c16_7 = arith.constant 16 : index
    %c63 = arith.constant 63 : index
    %9 = vector.load %arg5[%c16_7, %c63] : memref<24x64xf32, #tpu.memory_space<vmem>>, vector<8x1xf32>
    tpu.vector_store %arg5[%c16_7, %c63], %2 {strides = array<i32>} : memref<24x64xf32, #tpu.memory_space<vmem>>, vector<8x1xf32>,
    %c0_8 = arith.constant 0 : index
    %c0_9 = arith.constant 0 : index
    %10 = vector.load %arg2[%c0_8, %c0_9] : memref<8x24xbf16, #tpu.memory_space<vmem>>, vector<8x24xbf16>
    %c0_10 = arith.constant 0 : index
    %c0_11 = arith.constant 0 : index
    %11 = vector.load %arg5[%c0_10, %c0_11] : memref<24x64xf32, #tpu.memory_space<vmem>>, vector<24x64xf32>
    %12 = arith.truncf %11 : vector<24x64xf32> to vector<24x64xbf16>
    %cst_12 = arith.constant dense<0.000000e+00> : vector<8x64xf32>
    %13 = tpu.matmul %10, %12, %cst_12 {dimension_numbers = #tpu.dot_dimension_numbers<[1], [0], [0], [1], [0, 0, 1, 1], [], []>} : vector<8x24xbf16>, vector<24x64xbf16>, vector<8x64xf32> -> vector<8x64xf32>
    %c0_13 = arith.constant 0 : index
    %c0_14 = arith.constant 0 : index
    %14 = vector.load %arg3[%c0_13, %c0_14] : memref<8x1xf32, #tpu.memory_space<vmem>>, vector<8x1xf32>
    %15 = vector.broadcast %14 : vector<8x1xf32> to vector<8x64xf32>
    %16 = arith.addf %13, %15 : vector<8x64xf32>
    %cst_15 = arith.constant 2.000000e-01 : f32
    %17 = vector.broadcast %cst_15 : f32 to vector<8x64xf32>
    %18 = arith.mulf %17, %16 : vector<8x64xf32>
    %19 = arith.maximumf %16, %18 : vector<8x64xf32>
    %c0_16 = arith.constant 0 : index
    %c0_17 = arith.constant 0 : index
    %c0_18 = arith.constant 0 : index
    %20 = vector.load %arg4[%c0_16, %c0_17, %c0_18] : memref<1x8x64xf32, #tpu.memory_space<vmem>>, vector<1x8x64xf32>
    %21 = vector.shape_cast %20 : vector<1x8x64xf32> to vector<8x64xf32>
    %22 = vector.shape_cast %19 : vector<8x64xf32> to vector<1x8x64xf32>
    tpu.vector_store %arg4[%c0_16, %c0_17, %c0_18], %22 {strides = array<i32>} : memref<1x8x64xf32, #tpu.memory_space<vmem>>, vector<1x8x64xf32>,
    return
  }
  func.func @transform_0(%arg0: i32) -> (i32, i32, i32) {
    %c0_i32 = arith.constant 0 : i32
    %c0_i32_0 = arith.constant 0 : i32
    %c0_i32_1 = arith.constant 0 : i32
    return %arg0, %c0_i32, %c0_i32_0 : i32, i32, i32
  }
  func.func @transform_1(%arg0: i32) -> (i32, i32) {
    %c0_i32 = arith.constant 0 : i32
    %c0_i32_0 = arith.constant 0 : i32
    %c0_i32_1 = arith.constant 0 : i32
    return %c0_i32, %c0_i32_0 : i32, i32
  }
  func.func @transform_2(%arg0: i32) -> (i32, i32) {
    %c0_i32 = arith.constant 0 : i32
    %c0_i32_0 = arith.constant 0 : i32
    %c0_i32_1 = arith.constant 0 : i32
    return %c0_i32, %c0_i32_0 : i32, i32
  }
  func.func @transform_3(%arg0: i32) -> (i32, i32, i32) {
    %c0_i32 = arith.constant 0 : i32
    %c0_i32_0 = arith.constant 0 : i32
    %c0_i32_1 = arith.constant 0 : i32
    return %arg0, %c0_i32, %c0_i32_0 : i32, i32, i32
  }
}

module attributes {stable_mosaic.version = 11 : i64} {
  func.func @_conv3_kernel(%arg0: i32, %arg1: memref<1x8x128xf32, #tpu.memory_space<vmem>>, %arg2: memref<8x24xbf16, #tpu.memory_space<vmem>>, %arg3: memref<8x1xf32, #tpu.memory_space<vmem>>, %arg4: memref<1x8x128xf32, #tpu.memory_space<vmem>>, %arg5: memref<24x128xf32, #tpu.memory_space<vmem>>) attributes {dimension_semantics = [#tpu.dimension_semantics<parallel>], iteration_bounds = array<i64: 2>, scalar_prefetch = 0 : i64, scratch_operands = 1 : i64, tpu.core_type = #tpu.core_type<tc>, window_params = [{transform_indices = @transform_0, window_bounds = array<i64: 1, 8, 128>}, {pipeline_mode = #tpu.pipeline_mode<synchronous>, transform_indices = @transform_1, window_bounds = array<i64: 8, 24>}, {pipeline_mode = #tpu.pipeline_mode<synchronous>, transform_indices = @transform_2, window_bounds = array<i64: 8, 1>}, {transform_indices = @transform_3, window_bounds = array<i64: 1, 8, 128>}]} {
    %c0 = arith.constant 0 : index
    %c0_0 = arith.constant 0 : index
    %c0_1 = arith.constant 0 : index
    %0 = vector.load %arg1[%c0, %c0_0, %c0_1] : memref<1x8x128xf32, #tpu.memory_space<vmem>>, vector<1x8x128xf32>
    %1 = vector.shape_cast %0 : vector<1x8x128xf32> to vector<8x128xf32>
    %cst = arith.constant 0.000000e+00 : f32
    %2 = vector.broadcast %cst : f32 to vector<8x1xf32>
    %c0_2 = arith.constant 0 : index
    %c0_3 = arith.constant 0 : index
    %3 = vector.load %arg5[%c0_2, %c0_3] : memref<24x128xf32, #tpu.memory_space<vmem>>, vector<8x1xf32>
    tpu.vector_store %arg5[%c0_2, %c0_3], %2 {strides = array<i32>} : memref<24x128xf32, #tpu.memory_space<vmem>>, vector<8x1xf32>,
    %4 = vector.extract_strided_slice %1 {offsets = [0, 0], sizes = [8, 127], strides = [1, 1]} : vector<8x128xf32> to vector<8x127xf32>
    %c0_4 = arith.constant 0 : index
    %c1 = arith.constant 1 : index
    %5 = vector.load %arg5[%c0_4, %c1] : memref<24x128xf32, #tpu.memory_space<vmem>>, vector<8x127xf32>
    tpu.vector_store %arg5[%c0_4, %c1], %4 {strides = array<i32>} : memref<24x128xf32, #tpu.memory_space<vmem>>, vector<8x127xf32>,
    %c8 = arith.constant 8 : index
    %c0_5 = arith.constant 0 : index
    %6 = vector.load %arg5[%c8, %c0_5] : memref<24x128xf32, #tpu.memory_space<vmem>>, vector<8x128xf32>
    tpu.vector_store %arg5[%c8, %c0_5], %1 {strides = array<i32>} : memref<24x128xf32, #tpu.memory_space<vmem>>, vector<8x128xf32>,
    %7 = vector.extract_strided_slice %1 {offsets = [0, 1], sizes = [8, 127], strides = [1, 1]} : vector<8x128xf32> to vector<8x127xf32>
    %c16 = arith.constant 16 : index
    %c0_6 = arith.constant 0 : index
    %8 = vector.load %arg5[%c16, %c0_6] : memref<24x128xf32, #tpu.memory_space<vmem>>, vector<8x127xf32>
    tpu.vector_store %arg5[%c16, %c0_6], %7 {strides = array<i32>} : memref<24x128xf32, #tpu.memory_space<vmem>>, vector<8x127xf32>,
    %c16_7 = arith.constant 16 : index
    %c127 = arith.constant 127 : index
    %9 = vector.load %arg5[%c16_7, %c127] : memref<24x128xf32, #tpu.memory_space<vmem>>, vector<8x1xf32>
    tpu.vector_store %arg5[%c16_7, %c127], %2 {strides = array<i32>} : memref<24x128xf32, #tpu.memory_space<vmem>>, vector<8x1xf32>,
    %c0_8 = arith.constant 0 : index
    %c0_9 = arith.constant 0 : index
    %10 = vector.load %arg2[%c0_8, %c0_9] : memref<8x24xbf16, #tpu.memory_space<vmem>>, vector<8x24xbf16>
    %c0_10 = arith.constant 0 : index
    %c0_11 = arith.constant 0 : index
    %11 = vector.load %arg5[%c0_10, %c0_11] : memref<24x128xf32, #tpu.memory_space<vmem>>, vector<24x128xf32>
    %12 = arith.truncf %11 : vector<24x128xf32> to vector<24x128xbf16>
    %cst_12 = arith.constant dense<0.000000e+00> : vector<8x128xf32>
    %13 = tpu.matmul %10, %12, %cst_12 {dimension_numbers = #tpu.dot_dimension_numbers<[1], [0], [0], [1], [0, 0, 1, 1], [], []>} : vector<8x24xbf16>, vector<24x128xbf16>, vector<8x128xf32> -> vector<8x128xf32>
    %c0_13 = arith.constant 0 : index
    %c0_14 = arith.constant 0 : index
    %14 = vector.load %arg3[%c0_13, %c0_14] : memref<8x1xf32, #tpu.memory_space<vmem>>, vector<8x1xf32>
    %15 = vector.broadcast %14 : vector<8x1xf32> to vector<8x128xf32>
    %16 = arith.addf %13, %15 : vector<8x128xf32>
    %cst_15 = arith.constant 2.000000e-01 : f32
    %17 = vector.broadcast %cst_15 : f32 to vector<8x128xf32>
    %18 = arith.mulf %17, %16 : vector<8x128xf32>
    %19 = arith.maximumf %16, %18 : vector<8x128xf32>
    %c0_16 = arith.constant 0 : index
    %c0_17 = arith.constant 0 : index
    %c0_18 = arith.constant 0 : index
    %20 = vector.load %arg4[%c0_16, %c0_17, %c0_18] : memref<1x8x128xf32, #tpu.memory_space<vmem>>, vector<1x8x128xf32>
    %21 = vector.shape_cast %20 : vector<1x8x128xf32> to vector<8x128xf32>
    %22 = vector.shape_cast %19 : vector<8x128xf32> to vector<1x8x128xf32>
    tpu.vector_store %arg4[%c0_16, %c0_17, %c0_18], %22 {strides = array<i32>} : memref<1x8x128xf32, #tpu.memory_space<vmem>>, vector<1x8x128xf32>,
    return
  }
  func.func @transform_0(%arg0: i32) -> (i32, i32, i32) {
    %c0_i32 = arith.constant 0 : i32
    %c0_i32_0 = arith.constant 0 : i32
    %c0_i32_1 = arith.constant 0 : i32
    return %arg0, %c0_i32, %c0_i32_0 : i32, i32, i32
  }
  func.func @transform_1(%arg0: i32) -> (i32, i32) {
    %c0_i32 = arith.constant 0 : i32
    %c0_i32_0 = arith.constant 0 : i32
    %c0_i32_1 = arith.constant 0 : i32
    return %c0_i32, %c0_i32_0 : i32, i32
  }
  func.func @transform_2(%arg0: i32) -> (i32, i32) {
    %c0_i32 = arith.constant 0 : i32
    %c0_i32_0 = arith.constant 0 : i32
    %c0_i32_1 = arith.constant 0 : i32
    return %c0_i32, %c0_i32_0 : i32, i32
  }
  func.func @transform_3(%arg0: i32) -> (i32, i32, i32) {
    %c0_i32 = arith.constant 0 : i32
    %c0_i32_0 = arith.constant 0 : i32
    %c0_i32_1 = arith.constant 0 : i32
    return %arg0, %c0_i32, %c0_i32_0 : i32, i32, i32
  }
}

module attributes {stable_mosaic.version = 11 : i64} {
  func.func @_conv3_kernel(%arg0: i32, %arg1: memref<1x8x256xf32, #tpu.memory_space<vmem>>, %arg2: memref<8x24xbf16, #tpu.memory_space<vmem>>, %arg3: memref<8x1xf32, #tpu.memory_space<vmem>>, %arg4: memref<1x8x256xf32, #tpu.memory_space<vmem>>, %arg5: memref<24x256xf32, #tpu.memory_space<vmem>>) attributes {dimension_semantics = [#tpu.dimension_semantics<parallel>], iteration_bounds = array<i64: 2>, scalar_prefetch = 0 : i64, scratch_operands = 1 : i64, tpu.core_type = #tpu.core_type<tc>, window_params = [{transform_indices = @transform_0, window_bounds = array<i64: 1, 8, 256>}, {pipeline_mode = #tpu.pipeline_mode<synchronous>, transform_indices = @transform_1, window_bounds = array<i64: 8, 24>}, {pipeline_mode = #tpu.pipeline_mode<synchronous>, transform_indices = @transform_2, window_bounds = array<i64: 8, 1>}, {transform_indices = @transform_3, window_bounds = array<i64: 1, 8, 256>}]} {
    %c0 = arith.constant 0 : index
    %c0_0 = arith.constant 0 : index
    %c0_1 = arith.constant 0 : index
    %0 = vector.load %arg1[%c0, %c0_0, %c0_1] : memref<1x8x256xf32, #tpu.memory_space<vmem>>, vector<1x8x256xf32>
    %1 = vector.shape_cast %0 : vector<1x8x256xf32> to vector<8x256xf32>
    %cst = arith.constant 0.000000e+00 : f32
    %2 = vector.broadcast %cst : f32 to vector<8x1xf32>
    %c0_2 = arith.constant 0 : index
    %c0_3 = arith.constant 0 : index
    %3 = vector.load %arg5[%c0_2, %c0_3] : memref<24x256xf32, #tpu.memory_space<vmem>>, vector<8x1xf32>
    tpu.vector_store %arg5[%c0_2, %c0_3], %2 {strides = array<i32>} : memref<24x256xf32, #tpu.memory_space<vmem>>, vector<8x1xf32>,
    %4 = vector.extract_strided_slice %1 {offsets = [0, 0], sizes = [8, 255], strides = [1, 1]} : vector<8x256xf32> to vector<8x255xf32>
    %c0_4 = arith.constant 0 : index
    %c1 = arith.constant 1 : index
    %5 = vector.load %arg5[%c0_4, %c1] : memref<24x256xf32, #tpu.memory_space<vmem>>, vector<8x255xf32>
    tpu.vector_store %arg5[%c0_4, %c1], %4 {strides = array<i32>} : memref<24x256xf32, #tpu.memory_space<vmem>>, vector<8x255xf32>,
    %c8 = arith.constant 8 : index
    %c0_5 = arith.constant 0 : index
    %6 = vector.load %arg5[%c8, %c0_5] : memref<24x256xf32, #tpu.memory_space<vmem>>, vector<8x256xf32>
    tpu.vector_store %arg5[%c8, %c0_5], %1 {strides = array<i32>} : memref<24x256xf32, #tpu.memory_space<vmem>>, vector<8x256xf32>,
    %7 = vector.extract_strided_slice %1 {offsets = [0, 1], sizes = [8, 255], strides = [1, 1]} : vector<8x256xf32> to vector<8x255xf32>
    %c16 = arith.constant 16 : index
    %c0_6 = arith.constant 0 : index
    %8 = vector.load %arg5[%c16, %c0_6] : memref<24x256xf32, #tpu.memory_space<vmem>>, vector<8x255xf32>
    tpu.vector_store %arg5[%c16, %c0_6], %7 {strides = array<i32>} : memref<24x256xf32, #tpu.memory_space<vmem>>, vector<8x255xf32>,
    %c16_7 = arith.constant 16 : index
    %c255 = arith.constant 255 : index
    %9 = vector.load %arg5[%c16_7, %c255] : memref<24x256xf32, #tpu.memory_space<vmem>>, vector<8x1xf32>
    tpu.vector_store %arg5[%c16_7, %c255], %2 {strides = array<i32>} : memref<24x256xf32, #tpu.memory_space<vmem>>, vector<8x1xf32>,
    %c0_8 = arith.constant 0 : index
    %c0_9 = arith.constant 0 : index
    %10 = vector.load %arg2[%c0_8, %c0_9] : memref<8x24xbf16, #tpu.memory_space<vmem>>, vector<8x24xbf16>
    %c0_10 = arith.constant 0 : index
    %c0_11 = arith.constant 0 : index
    %11 = vector.load %arg5[%c0_10, %c0_11] : memref<24x256xf32, #tpu.memory_space<vmem>>, vector<24x256xf32>
    %12 = arith.truncf %11 : vector<24x256xf32> to vector<24x256xbf16>
    %cst_12 = arith.constant dense<0.000000e+00> : vector<8x256xf32>
    %13 = tpu.matmul %10, %12, %cst_12 {dimension_numbers = #tpu.dot_dimension_numbers<[1], [0], [0], [1], [0, 0, 1, 1], [], []>} : vector<8x24xbf16>, vector<24x256xbf16>, vector<8x256xf32> -> vector<8x256xf32>
    %c0_13 = arith.constant 0 : index
    %c0_14 = arith.constant 0 : index
    %14 = vector.load %arg3[%c0_13, %c0_14] : memref<8x1xf32, #tpu.memory_space<vmem>>, vector<8x1xf32>
    %15 = vector.broadcast %14 : vector<8x1xf32> to vector<8x256xf32>
    %16 = arith.addf %13, %15 : vector<8x256xf32>
    %cst_15 = arith.constant 2.000000e-01 : f32
    %17 = vector.broadcast %cst_15 : f32 to vector<8x256xf32>
    %18 = arith.mulf %17, %16 : vector<8x256xf32>
    %19 = arith.maximumf %16, %18 : vector<8x256xf32>
    %c0_16 = arith.constant 0 : index
    %c0_17 = arith.constant 0 : index
    %c0_18 = arith.constant 0 : index
    %20 = vector.load %arg4[%c0_16, %c0_17, %c0_18] : memref<1x8x256xf32, #tpu.memory_space<vmem>>, vector<1x8x256xf32>
    %21 = vector.shape_cast %20 : vector<1x8x256xf32> to vector<8x256xf32>
    %22 = vector.shape_cast %19 : vector<8x256xf32> to vector<1x8x256xf32>
    tpu.vector_store %arg4[%c0_16, %c0_17, %c0_18], %22 {strides = array<i32>} : memref<1x8x256xf32, #tpu.memory_space<vmem>>, vector<1x8x256xf32>,
    return
  }
  func.func @transform_0(%arg0: i32) -> (i32, i32, i32) {
    %c0_i32 = arith.constant 0 : i32
    %c0_i32_0 = arith.constant 0 : i32
    %c0_i32_1 = arith.constant 0 : i32
    return %arg0, %c0_i32, %c0_i32_0 : i32, i32, i32
  }
  func.func @transform_1(%arg0: i32) -> (i32, i32) {
    %c0_i32 = arith.constant 0 : i32
    %c0_i32_0 = arith.constant 0 : i32
    %c0_i32_1 = arith.constant 0 : i32
    return %c0_i32, %c0_i32_0 : i32, i32
  }
  func.func @transform_2(%arg0: i32) -> (i32, i32) {
    %c0_i32 = arith.constant 0 : i32
    %c0_i32_0 = arith.constant 0 : i32
    %c0_i32_1 = arith.constant 0 : i32
    return %c0_i32, %c0_i32_0 : i32, i32
  }
  func.func @transform_3(%arg0: i32) -> (i32, i32, i32) {
    %c0_i32 = arith.constant 0 : i32
    %c0_i32_0 = arith.constant 0 : i32
    %c0_i32_1 = arith.constant 0 : i32
    return %arg0, %c0_i32, %c0_i32_0 : i32, i32, i32
  }
}

module attributes {stable_mosaic.version = 11 : i64} {
  func.func @_tail_kernel(%arg0: i32, %arg1: memref<1x8x256xf32, #tpu.memory_space<vmem>>, %arg2: memref<8x24xbf16, #tpu.memory_space<vmem>>, %arg3: memref<8x1xf32, #tpu.memory_space<vmem>>, %arg4: memref<8x24xbf16, #tpu.memory_space<vmem>>, %arg5: memref<8x1xf32, #tpu.memory_space<vmem>>, %arg6: memref<256x841xf32, #tpu.memory_space<vmem>>, %arg7: memref<1x8x841xf32, #tpu.memory_space<vmem>>, %arg8: memref<24x256xf32, #tpu.memory_space<vmem>>) attributes {dimension_semantics = [#tpu.dimension_semantics<parallel>], iteration_bounds = array<i64: 2>, scalar_prefetch = 0 : i64, scratch_operands = 1 : i64, tpu.core_type = #tpu.core_type<tc>, window_params = [{transform_indices = @transform_0, window_bounds = array<i64: 1, 8, 256>}, {pipeline_mode = #tpu.pipeline_mode<synchronous>, transform_indices = @transform_1, window_bounds = array<i64: 8, 24>}, {pipeline_mode = #tpu.pipeline_mode<synchronous>, transform_indices = @transform_2, window_bounds = array<i64: 8, 1>}, {pipeline_mode = #tpu.pipeline_mode<synchronous>, transform_indices = @transform_3, window_bounds = array<i64: 8, 24>}, {pipeline_mode = #tpu.pipeline_mode<synchronous>, transform_indices = @transform_4, window_bounds = array<i64: 8, 1>}, {pipeline_mode = #tpu.pipeline_mode<synchronous>, transform_indices = @transform_5, window_bounds = array<i64: 256, 841>}, {transform_indices = @transform_6, window_bounds = array<i64: 1, 8, 841>}]} {
    %c0 = arith.constant 0 : index
    %c0_0 = arith.constant 0 : index
    %c0_1 = arith.constant 0 : index
    %0 = vector.load %arg1[%c0, %c0_0, %c0_1] : memref<1x8x256xf32, #tpu.memory_space<vmem>>, vector<1x8x256xf32>
    %1 = vector.shape_cast %0 : vector<1x8x256xf32> to vector<8x256xf32>
    %cst = arith.constant 0.000000e+00 : f32
    %2 = vector.broadcast %cst : f32 to vector<8x1xf32>
    %c0_2 = arith.constant 0 : index
    %c0_3 = arith.constant 0 : index
    %3 = vector.load %arg8[%c0_2, %c0_3] : memref<24x256xf32, #tpu.memory_space<vmem>>, vector<8x1xf32>
    tpu.vector_store %arg8[%c0_2, %c0_3], %2 {strides = array<i32>} : memref<24x256xf32, #tpu.memory_space<vmem>>, vector<8x1xf32>,
    %4 = vector.extract_strided_slice %1 {offsets = [0, 0], sizes = [8, 255], strides = [1, 1]} : vector<8x256xf32> to vector<8x255xf32>
    %c0_4 = arith.constant 0 : index
    %c1 = arith.constant 1 : index
    %5 = vector.load %arg8[%c0_4, %c1] : memref<24x256xf32, #tpu.memory_space<vmem>>, vector<8x255xf32>
    tpu.vector_store %arg8[%c0_4, %c1], %4 {strides = array<i32>} : memref<24x256xf32, #tpu.memory_space<vmem>>, vector<8x255xf32>,
    %c8 = arith.constant 8 : index
    %c0_5 = arith.constant 0 : index
    %6 = vector.load %arg8[%c8, %c0_5] : memref<24x256xf32, #tpu.memory_space<vmem>>, vector<8x256xf32>
    tpu.vector_store %arg8[%c8, %c0_5], %1 {strides = array<i32>} : memref<24x256xf32, #tpu.memory_space<vmem>>, vector<8x256xf32>,
    %7 = vector.extract_strided_slice %1 {offsets = [0, 1], sizes = [8, 255], strides = [1, 1]} : vector<8x256xf32> to vector<8x255xf32>
    %c16 = arith.constant 16 : index
    %c0_6 = arith.constant 0 : index
    %8 = vector.load %arg8[%c16, %c0_6] : memref<24x256xf32, #tpu.memory_space<vmem>>, vector<8x255xf32>
    tpu.vector_store %arg8[%c16, %c0_6], %7 {strides = array<i32>} : memref<24x256xf32, #tpu.memory_space<vmem>>, vector<8x255xf32>,
    %c16_7 = arith.constant 16 : index
    %c255 = arith.constant 255 : index
    %9 = vector.load %arg8[%c16_7, %c255] : memref<24x256xf32, #tpu.memory_space<vmem>>, vector<8x1xf32>
    tpu.vector_store %arg8[%c16_7, %c255], %2 {strides = array<i32>} : memref<24x256xf32, #tpu.memory_space<vmem>>, vector<8x1xf32>,
    %c0_8 = arith.constant 0 : index
    %c0_9 = arith.constant 0 : index
    %10 = vector.load %arg2[%c0_8, %c0_9] : memref<8x24xbf16, #tpu.memory_space<vmem>>, vector<8x24xbf16>
    %c0_10 = arith.constant 0 : index
    %c0_11 = arith.constant 0 : index
    %11 = vector.load %arg8[%c0_10, %c0_11] : memref<24x256xf32, #tpu.memory_space<vmem>>, vector<24x256xf32>
    %12 = arith.truncf %11 : vector<24x256xf32> to vector<24x256xbf16>
    %cst_12 = arith.constant dense<0.000000e+00> : vector<8x256xf32>
    %13 = tpu.matmul %10, %12, %cst_12 {dimension_numbers = #tpu.dot_dimension_numbers<[1], [0], [0], [1], [0, 0, 1, 1], [], []>} : vector<8x24xbf16>, vector<24x256xbf16>, vector<8x256xf32> -> vector<8x256xf32>
    %c0_13 = arith.constant 0 : index
    %c0_14 = arith.constant 0 : index
    %14 = vector.load %arg3[%c0_13, %c0_14] : memref<8x1xf32, #tpu.memory_space<vmem>>, vector<8x1xf32>
    %15 = vector.broadcast %14 : vector<8x1xf32> to vector<8x256xf32>
    %16 = arith.addf %13, %15 : vector<8x256xf32>
    %cst_15 = arith.constant 2.000000e-01 : f32
    %17 = vector.broadcast %cst_15 : f32 to vector<8x256xf32>
    %18 = arith.mulf %17, %16 : vector<8x256xf32>
    %19 = arith.maximumf %16, %18 : vector<8x256xf32>
    %cst_16 = arith.constant 0.000000e+00 : f32
    %20 = vector.broadcast %cst_16 : f32 to vector<8x1xf32>
    %c0_17 = arith.constant 0 : index
    %c0_18 = arith.constant 0 : index
    %21 = vector.load %arg8[%c0_17, %c0_18] : memref<24x256xf32, #tpu.memory_space<vmem>>, vector<8x1xf32>
    tpu.vector_store %arg8[%c0_17, %c0_18], %20 {strides = array<i32>} : memref<24x256xf32, #tpu.memory_space<vmem>>, vector<8x1xf32>,
    %22 = vector.extract_strided_slice %19 {offsets = [0, 0], sizes = [8, 255], strides = [1, 1]} : vector<8x256xf32> to vector<8x255xf32>
    %c0_19 = arith.constant 0 : index
    %c1_20 = arith.constant 1 : index
    %23 = vector.load %arg8[%c0_19, %c1_20] : memref<24x256xf32, #tpu.memory_space<vmem>>, vector<8x255xf32>
    tpu.vector_store %arg8[%c0_19, %c1_20], %22 {strides = array<i32>} : memref<24x256xf32, #tpu.memory_space<vmem>>, vector<8x255xf32>,
    %c8_21 = arith.constant 8 : index
    %c0_22 = arith.constant 0 : index
    %24 = vector.load %arg8[%c8_21, %c0_22] : memref<24x256xf32, #tpu.memory_space<vmem>>, vector<8x256xf32>
    tpu.vector_store %arg8[%c8_21, %c0_22], %19 {strides = array<i32>} : memref<24x256xf32, #tpu.memory_space<vmem>>, vector<8x256xf32>,
    %25 = vector.extract_strided_slice %19 {offsets = [0, 1], sizes = [8, 255], strides = [1, 1]} : vector<8x256xf32> to vector<8x255xf32>
    %c16_23 = arith.constant 16 : index
    %c0_24 = arith.constant 0 : index
    %26 = vector.load %arg8[%c16_23, %c0_24] : memref<24x256xf32, #tpu.memory_space<vmem>>, vector<8x255xf32>
    tpu.vector_store %arg8[%c16_23, %c0_24], %25 {strides = array<i32>} : memref<24x256xf32, #tpu.memory_space<vmem>>, vector<8x255xf32>,
    %c16_25 = arith.constant 16 : index
    %c255_26 = arith.constant 255 : index
    %27 = vector.load %arg8[%c16_25, %c255_26] : memref<24x256xf32, #tpu.memory_space<vmem>>, vector<8x1xf32>
    tpu.vector_store %arg8[%c16_25, %c255_26], %20 {strides = array<i32>} : memref<24x256xf32, #tpu.memory_space<vmem>>, vector<8x1xf32>,
    %c0_27 = arith.constant 0 : index
    %c0_28 = arith.constant 0 : index
    %28 = vector.load %arg4[%c0_27, %c0_28] : memref<8x24xbf16, #tpu.memory_space<vmem>>, vector<8x24xbf16>
    %c0_29 = arith.constant 0 : index
    %c0_30 = arith.constant 0 : index
    %29 = vector.load %arg8[%c0_29, %c0_30] : memref<24x256xf32, #tpu.memory_space<vmem>>, vector<24x256xf32>
    %30 = arith.truncf %29 : vector<24x256xf32> to vector<24x256xbf16>
    %cst_31 = arith.constant dense<0.000000e+00> : vector<8x256xf32>
    %31 = tpu.matmul %28, %30, %cst_31 {dimension_numbers = #tpu.dot_dimension_numbers<[1], [0], [0], [1], [0, 0, 1, 1], [], []>} : vector<8x24xbf16>, vector<24x256xbf16>, vector<8x256xf32> -> vector<8x256xf32>
    %c0_32 = arith.constant 0 : index
    %c0_33 = arith.constant 0 : index
    %32 = vector.load %arg5[%c0_32, %c0_33] : memref<8x1xf32, #tpu.memory_space<vmem>>, vector<8x1xf32>
    %33 = vector.broadcast %32 : vector<8x1xf32> to vector<8x256xf32>
    %34 = arith.addf %31, %33 : vector<8x256xf32>
    %c0_34 = arith.constant 0 : index
    %c0_35 = arith.constant 0 : index
    %35 = vector.load %arg6[%c0_34, %c0_35] : memref<256x841xf32, #tpu.memory_space<vmem>>, vector<256x841xf32>
    %cst_36 = arith.constant dense<0.000000e+00> : vector<8x841xf32>
    %36 = tpu.matmul %34, %35, %cst_36 {dimension_numbers = #tpu.dot_dimension_numbers<[1], [0], [0], [1], [0, 0, 1, 1], [], []>} : vector<8x256xf32>, vector<256x841xf32>, vector<8x841xf32> -> vector<8x841xf32>
    %c0_37 = arith.constant 0 : index
    %c0_38 = arith.constant 0 : index
    %c0_39 = arith.constant 0 : index
    %37 = vector.load %arg7[%c0_37, %c0_38, %c0_39] : memref<1x8x841xf32, #tpu.memory_space<vmem>>, vector<1x8x841xf32>
    %38 = vector.shape_cast %37 : vector<1x8x841xf32> to vector<8x841xf32>
    %39 = vector.shape_cast %36 : vector<8x841xf32> to vector<1x8x841xf32>
    tpu.vector_store %arg7[%c0_37, %c0_38, %c0_39], %39 {strides = array<i32>} : memref<1x8x841xf32, #tpu.memory_space<vmem>>, vector<1x8x841xf32>,
    return
  }
  func.func @transform_0(%arg0: i32) -> (i32, i32, i32) {
    %c0_i32 = arith.constant 0 : i32
    %c0_i32_0 = arith.constant 0 : i32
    %c0_i32_1 = arith.constant 0 : i32
    return %arg0, %c0_i32, %c0_i32_0 : i32, i32, i32
  }
  func.func @transform_1(%arg0: i32) -> (i32, i32) {
    %c0_i32 = arith.constant 0 : i32
    %c0_i32_0 = arith.constant 0 : i32
    %c0_i32_1 = arith.constant 0 : i32
    return %c0_i32, %c0_i32_0 : i32, i32
  }
  func.func @transform_2(%arg0: i32) -> (i32, i32) {
    %c0_i32 = arith.constant 0 : i32
    %c0_i32_0 = arith.constant 0 : i32
    %c0_i32_1 = arith.constant 0 : i32
    return %c0_i32, %c0_i32_0 : i32, i32
  }
  func.func @transform_3(%arg0: i32) -> (i32, i32) {
    %c0_i32 = arith.constant 0 : i32
    %c0_i32_0 = arith.constant 0 : i32
    %c0_i32_1 = arith.constant 0 : i32
    return %c0_i32, %c0_i32_0 : i32, i32
  }
  func.func @transform_4(%arg0: i32) -> (i32, i32) {
    %c0_i32 = arith.constant 0 : i32
    %c0_i32_0 = arith.constant 0 : i32
    %c0_i32_1 = arith.constant 0 : i32
    return %c0_i32, %c0_i32_0 : i32, i32
  }
  func.func @transform_5(%arg0: i32) -> (i32, i32) {
    %c0_i32 = arith.constant 0 : i32
    %c0_i32_0 = arith.constant 0 : i32
    %c0_i32_1 = arith.constant 0 : i32
    return %c0_i32, %c0_i32_0 : i32, i32
  }
  func.func @transform_6(%arg0: i32) -> (i32, i32, i32) {
    %c0_i32 = arith.constant 0 : i32
    %c0_i32_0 = arith.constant 0 : i32
    %c0_i32_1 = arith.constant 0 : i32
    return %arg0, %c0_i32, %c0_i32_0 : i32, i32, i32
  }
}

</mosaic_0001>

<bundles_post_ra>
// kernel: _lambda_.7
= control target key start
LH: loop header
LB: loop body
LE: loop exit
PB: predicated region body
PF: predicated region fallthrough
CT: control target
= control target key end

     0   :  { %8 = vsyncpa [#allocation4], 0  ;;  %s740_s0 = inlined_call_operand.hbm [shape: f32[2,4,16], index: 0, kind: input, shape index: {}]   ;;  %s741_s1 = inlined_call_operand.hbm [shape: bf16[8,12], index: 1, kind: input, shape index: {}]   ;;  %s742_s2 = inlined_call_operand.hbm [shape: f32[8,1], index: 2, kind: input, shape index: {}]   ;;  %s743_s3 = inlined_call_operand.vmem [shape: f32[2,8,16], index: 3, kind: output, shape index: {}]  }
   0x1   :  { %10 = vsyncpa [#allocation4 + $0x1], 0 }
   0x2   :  { %11 = vsyncpa [#allocation6], 0  ;;  %s612_s12 = smov 0   ;;  %s614_s13 = smov 0  }
   0x3   :  { %s616_s14 = smov 0   ;;  %s618_s15 = smov 0  }
   0x4 LB: > { %s631_s16 = sadd.s32 4294967295, %s582_s15   ;;  %p37_p0 = scmp.ne.s32.totalorder %s574_s13, %s570_s12  ;;  %s582_s15 = sphi %s618_s15, %s758_s15   ;;  %s578_s14 = sphi %s616_s14, %s757_s14   ;;  %s574_s13 = sphi %s614_s13, %s756_s13   ;;  %s570_s12 = sphi %s612_s12, %s755_s12  }
   0x5   : > { %p744_p1 = scmp.eq.s32.totalorder %s631_s16, 0  ;;  %p375_p2 = scmp.ge.s32.totalorder %s582_s15, 1 }
   0x6   : > { %p116_p3 = scmp.lt.s32.totalorder %s582_s15, 3  ;;  %s584_s19 = smov [#allocation5]  }
   0x7   : > { %p639_p4 = por %p744_p1, %p37_p0  ;;  %s129_s20 = sshll.u32 %s584_s19, 4  ;;  %s130_s20 = int_to_ptr.vmem [resolvable:$true] %s129_s20 }
   0x8   : > { %p643_p5 = pnand %p375_p2, %p116_p3  ;;  %s585_s21 = smov [#allocation7]  }
   0x9   : > { %s747_s17 = scalar_select %p639_p4, 1, 0 }
   0xa   : > { %s748_s18 = scalar_select %p643_p5, 1, 0 }
   0xb   : > { %p407_p6 = pneg %p643_p5  ;;  %s140_s22 = sshll.u32 %s585_s21, 4  ;;  %s141_s22 = int_to_ptr.vmem [resolvable:$true] %s140_s22 }
   0xc   : > { %s656_s24 = sadd.s32 1, %s582_s15   ;;  %s475_s26 = scalar_lea.vmem %s130_s20, 64 }
   0xd   : > { %p651_p7 = pnand %p407_p6, %p744_p1  ;;  %s21_s25 = ssub.s32 %s582_s15, %s656_s24 }
   0xe   : > { %p476_p9 = scmp.ne.s32.totalorder %s130_s20, %s475_s26  ;;  %p483_p12 = scmp.lt.s32.totalorder %s130_s20, %s130_s20 }
   0xf   : > { %p466_p8 = pneg %p651_p7  ;;  %p484_p13 = scmp.lt.s32.totalorder %s475_s26, %s475_s26 }
  0x11   : > { %p478_p10 = pnand %p476_p9, %p466_p8  ;;  %p485_p0 = por %p484_p13, %p483_p12 }
  0x13   : > { %p479_p11 = pneg %p478_p10 }
  0x15   : > { %p486_p2 = pnand %p485_p0, %p479_p11 }
  0x17   : > { %489 = shalt.err (!%p486_p2)
}
  0x18   : > { %410 = dma.hbm_to_vmem [thread:$0]  (!%p651_p7), %s741_s1, 64, %s130_s20, [#allocation6]  }
  0x19   : > { %s501_s29 = scalar_lea.vmem %s141_s22, 128  ;;  %p509_p9 = scmp.lt.s32.totalorder %s141_s22, %s141_s22 }
  0x1a   : > { %p502_p3 = scmp.ne.s32.totalorder %s141_s22, %s501_s29  ;;  %p510_p10 = scmp.lt.s32.totalorder %s501_s29, %s501_s29 }
  0x1c   : > { %p504_p6 = pnand %p502_p3, %p466_p8  ;;  %p511_p4 = por %p510_p10, %p509_p9 }
  0x1e   : > { %p505_p1 = pneg %p504_p6 }
  0x20   : > { %p512_p5 = pnand %p511_p4, %p505_p1 }
  0x22   : > { %515 = shalt.err (!%p512_p5)
}
  0x23   : > { %413 = dma.hbm_to_vmem [thread:$0]  (!%p651_p7), %s742_s2, 128, %s141_s22, [#allocation6]  }
  0x24   : > { %p22_p8 = scmp.eq.s32.totalorder %s21_s25, 0  ;;  %s24_s5 = sadd.s32 1, %s578_s14 }
  0x25   : > { %p31_p11 = scmp.ne.s32.totalorder %s578_s14, %s574_s13  ;;  %p32_p12 = scmp.eq.s32.totalorder %s582_s15, 0 }
  0x26   : > { %s683_s6 = scalar_select %p22_p8, %s578_s14, %s24_s5  }
  0x27   : > { %p33_p1 = por %p32_p12, %p31_p11  ;;  %p420_p4 = scmp.lt.s32.totalorder %s582_s15, 2 }
  0x28   : > { %s151_s7 = sand.u32 1, %s578_s14   ;;  %s380_s8 = sshll.u32 %s582_s15, 6 }
  0x29   : > { %s379_s9 = sshll.u32 %s151_s7, 2  ;;  %s691_s12 = scalar_lea.hbm %s740_s0, %s380_s8 }
  0x2a   : > { %s155_s19 = scalar_lea.vmem [#allocation3], %s379_s9  ;;  %p693_p5 = pnand %p420_p4, %p33_p1 }
  0x2b   : > { %s162_s20 = sshll.u32 %s155_s19, 4  ;;  %s152_s22 = scalar_lea.sflag [#allocation4], %s151_s7  ;;  %s163_s20 = int_to_ptr.vmem [resolvable:$true] %s162_s20 }
  0x2c   : > { %s516_s23 = scalar_lea.hbm %s691_s12, 64  ;;  %p518_p13 = pneg %p693_p5 }
  0x2d   : > { %p517_p7 = scmp.ne.s32.totalorder %s691_s12, %s516_s23  ;;  %s521_s26 = scalar_lea.hbm %s740_s0, 128 }
  0x2e   : > { %p522_p3 = scmp.lt.s32.totalorder %s691_s12, %s740_s0  ;;  %p523_p6 = scmp.lt.s32.totalorder %s521_s26, %s516_s23 }
  0x2f   : > { %p519_p0 = pnand %p518_p13, %p517_p7 }
  0x30   : > { %p524_p9 = por %p523_p6, %p522_p3 }
  0x31   : > { %p520_p2 = pneg %p519_p0 }
  0x33   : > { %p525_p10 = pnand %p524_p9, %p520_p2 }
  0x35   : > { %528 = shalt.err (!%p525_p10)
}
  0x36   : > { %s529_s29 = scalar_lea.vmem %s163_s20, 64  ;;  %s586_s30 = smov [#allocation3]  }
  0x37   : > { %p530_p8 = scmp.ne.s32.totalorder %s163_s20, %s529_s29  ;;  %s534_s4 = sshll.u32 %s586_s30, 4  ;;  %s535_s4 = int_to_ptr.vmem [resolvable:$false] %s534_s4 }
  0x38   : > { %s536_s5 = scalar_lea.vmem %s535_s4, 128  ;;  %p537_p1 = scmp.lt.s32.totalorder %s163_s20, %s535_s4 }
  0x39   : > { %p532_p11 = pnand %p530_p8, %p518_p13  ;;  %p538_p4 = scmp.lt.s32.totalorder %s536_s5, %s529_s29 }
  0x3b   : > { %p533_p12 = pneg %p532_p11  ;;  %p539_p7 = por %p538_p4, %p537_p1 }
  0x3d   : > { %p540_p0 = pnand %p539_p7, %p533_p12 }
  0x3f   : > { %543 = shalt.err (!%p540_p0)
}
  0x40   : > { %417 = dma.hbm_to_vmem [thread:$0]  (!%p693_p5), %s691_s12, 64, %s163_s20, %s152_s22  }
  0x41   : > { %p751_p2 = scmp.ne.s32.totalorder %s748_s18, 0 }
  0x42   : > { %s173_s7 = sand.u32 (!%p751_p2), 1, %s574_s13   ;;  %p752_p13 = scmp.ne.s32.totalorder (!%p751_p2), %s747_s17, 0 }
  0x43   : > { %171 = sbr.rel (%p751_p2) target bundleno = 409 (0x199), region = 32  ;;  %s382_s8 = sshll.u32 (!%p751_p2), %s173_s7, 2 }
  0x44   : > { %s174_s9 = scalar_lea.sflag (!%p751_p2), [#allocation4], %s173_s7  ;;  %s177_s10 = scalar_lea.vmem (!%p751_p2), [#allocation3], %s382_s8 }
  0x48   : > { %561 = dma.done.wait (%p752_p13), %s174_s9, 64  }
  0x49   : > { %563 = vsyncadd (%p752_p13), %s174_s9, 4294967232  ;;  %p753_p3 = scmp.eq.s32.totalorder %s631_s16, 0 }
  0x4b   : > { %565 = dma.done.wait (%p753_p3), [#allocation6], 192   ;;  %p754_p6 = pmov %p753_p3 }
  0x4c   : > { %vm213_vm0 = vcmask 3072   ;;  %v587_v0 = vmov 0.0   ;;  %vm221_vm1 = vcmask 125952   ;;  %v212_v1 = vld [vmem:[%s177_s10] sm:$0xf]  ;;  %s588_s18 = smov 127  }
  0x4d   : > { %567 = vsyncadd (%p754_p6), [#allocation6], 4294967104  ;;  %214 = vst.msk [vmem:[#allocation2] sm:$0xf] %vm213_vm0, %v587_v0  ;;  %391 = vmatprep.subr.bf16.mxu0 %v587_v0  ;;  %223 = vrot.lane.b32.xlu0 %v212_v1, %s588_s18  ;;  %vm589_vm2 = vmmov 0   ;;  %s590_s11 = smov 1  }
  0x4e   : > { %222 = vst.msk [vmem:[#allocation2 + $0x4] sm:$0xf] %vm221_vm1, %v212_v1  ;;  %393 = vmatprep.mubr.msk.bf16.mxu0 %vm589_vm2, %v587_v0  ;;  %v234_v2 = vld [vmem:[#allocation7] sm:$0xff]  ;;  %v591_v3 = vmov 0   ;;  %vm226_vm3 = vcmask 117760   ;;  %vm228_vm4 = vcmask 126072  }
  0x4f   : > { %462 = vset.pattern.permute.xlu1 %v591_v3  ;;  %463 = vset.pattern.permute.xlu0 %v591_v3  ;;  %vm219_vm5 = vcmask 125960   ;;  %vm244_vm6 = vcmask 1045504   ;;  %v230_v10 = vld [vmem:[#allocation5] sm:$0xf]  ;;  %vm240_vm7 = vcmask 97280   ;;  %p207_p5 = scmp.lt.s32.totalorder %s631_s16, 1 }
  0x50   : > { %237 = vperm.xlu1 %462, %v234_v2   ;;  %vm288_vm8 = vcmask 130048  }
  0x51   : > { %216 = vrot.lane.b32.xlu0 %v212_v1, %s590_s11  ;;  %s760_s16 = smov (!%p207_p5, %s631_s16), 1 }
  0x52   : > { %s385_s17 = sshll.u32 %s760_s16, 3 }
  0x53   : > { %s210_s20 = scalar_lea.vmem %s743_s3, %s385_s17 }
  0xbf   : > { %v224_v4 = vpop.permute.xlu0 %223 }
  0xc0   : > { %227 = vst.msk [vmem:[#allocation2 + $0x8] sm:$0xf] %vm226_vm3, %v224_v4 }
  0xc1   : > { %229 = vst.msk [vmem:[#allocation2 + $0x8] sm:$0xf] %vm228_vm4, %v587_v0 }
  0xc3   : > { %v217_v5 = vpop.permute.xlu0 %216 }
  0xc4   : > { %220 = vst.msk [vmem:[#allocation2] sm:$0xf] %vm219_vm5, %v217_v5 }
  0xc8   : > { %v232_v6 = vld [vmem:[#allocation2 + $0x8] sm:$0xf] }
  0xcb   : > { %v231_v7 = vld [vmem:[#allocation2] sm:$0xff]  ;;  %v238_v11 = vpop.permute.xlu1 %237 }
  0xcc   : > { %v233_v8 = vpack.c.bf16 %v232_v6, %v231_v7 }
  0xce   : > { %v246_v9 = vsel %vm244_vm6, %v233_v8, 0 }
  0xcf   : > { %392 = vmatpush3.bf16.msra.mxu0 %v246_v9 }
  0xd2   : > { %394 = vmatmul.mubr.msk.bf16.vlgmr.msra.gmra.mxu0 %vm240_vm7, %v230_v10 }
 0x192   : > { %v282_v12 = vpop.f32.mrf.mxu0 }
 0x193   : > { %v283_v13 = vadd.f32 %v282_v12, %v238_v11 }
 0x194   : > { %v395_v14 = vpop.f32.mrf.mxu0 }
 0x195   : > { %289 = vst.msk [vmem:[%s210_s20] sm:$0xff] %vm288_vm8, %v283_v13 }
 0x196   : > { %v285_v15 = vpop.f32.mrf.mxu0 }
 0x198   : > { %v396_v16 = vpop.f32.mrf.mxu0 }
 0x199 PF: > { %p14_p9 = scmp.ge.s32.totalorder %s656_s24, 4   ;;  %s755_s12 = smov %s574_s13 }
 0x19a   : > { %s756_s13 = smov %s578_s14  ;;  %s757_s14 = smov %s683_s6 }
 0x19b   : > { %s758_s15 = smov %s656_s24  ;;  %16 = sbr.rel (!%p14_p9) target bundleno = 4 (0x4), region = 80 }
 0x1a0   :  { %309 = vsyncpa [#allocation4], 1 }
 0x1a1   :  { %311 = vsyncpa [#allocation4 + $0x1], 1 }
 0x1a2   :  { %312 = vsyncpa [#allocation6], 1 }

// kernel: _lambda_.9
= control target key start
LH: loop header
LB: loop body
LE: loop exit
PB: predicated region body
PF: predicated region fallthrough
CT: control target
= control target key end

     0   :  { %8 = vsyncpa [#allocation4], 0  ;;  %s576_s0 = inlined_call_operand.vmem [shape: f32[2,8,32], index: 0, kind: input, shape index: {}]   ;;  %s577_s1 = inlined_call_operand.hbm [shape: bf16[8,24], index: 1, kind: input, shape index: {}]   ;;  %s578_s2 = inlined_call_operand.hbm [shape: f32[8,1], index: 2, kind: input, shape index: {}]   ;;  %s579_s3 = inlined_call_operand.vmem [shape: f32[2,8,32], index: 3, kind: output, shape index: {}]  }
   0x1   :  { %9 = vsyncpa [#allocation6], 0  ;;  %s505_s12 = smov 0  }
   0x2 LB: > { %s511_s13 = sadd.s32 4294967295, %s476_s12   ;;  %p351_p0 = scmp.ge.s32.totalorder %s476_s12, 1  ;;  %s476_s12 = sphi %s505_s12, %s15_s12  }
   0x3   : > { %p114_p1 = scmp.lt.s32.totalorder %s476_s12, 3  ;;  %p580_p2 = scmp.eq.s32.totalorder %s511_s13, 0 }
   0x4   : > { %s478_s15 = smov [#allocation3]   ;;  %s479_s17 = smov [#allocation5]  }
   0x5   : > { %p516_p3 = pnand %p351_p0, %p114_p1  ;;  %s127_s16 = sshll.u32 %s478_s15, 4  ;;  %s128_s16 = int_to_ptr.vmem [resolvable:$true] %s127_s16 }
   0x6   : > { %s138_s18 = sshll.u32 %s479_s17, 4  ;;  %s421_s20 = scalar_lea.vmem %s128_s16, 64  ;;  %s139_s18 = int_to_ptr.vmem [resolvable:$true] %s138_s18 }
   0x7   : > { %s582_s14 = scalar_select %p516_p3, 1, 0 }
   0x8   : > { %p382_p4 = pneg %p516_p3  ;;  %p422_p7 = scmp.ne.s32.totalorder %s128_s16, %s421_s20 }
   0x9   : > { %p429_p10 = scmp.lt.s32.totalorder %s128_s16, %s128_s16  ;;  %p430_p11 = scmp.lt.s32.totalorder %s421_s20, %s421_s20 }
   0xa   : > { %p524_p5 = pnand %p580_p2, %p382_p4 }
   0xb   : > { %p431_p12 = por %p430_p11, %p429_p10 }
   0xc   : > { %p412_p6 = pneg %p524_p5 }
   0xe   : > { %p424_p8 = pnand %p422_p7, %p412_p6 }
  0x10   : > { %p425_p9 = pneg %p424_p8 }
  0x12   : > { %p432_p13 = pnand %p431_p12, %p425_p9 }
  0x14   : > { %435 = shalt.err (!%p432_p13)
}
  0x15   : > { %385 = dma.hbm_to_vmem [thread:$0]  (!%p524_p5), %s577_s1, 64, %s128_s16, [#allocation4]  }
  0x16   : > { %s447_s23 = scalar_lea.vmem %s139_s18, 128  ;;  %p455_p7 = scmp.lt.s32.totalorder %s139_s18, %s139_s18 }
  0x17   : > { %p448_p0 = scmp.ne.s32.totalorder %s139_s18, %s447_s23  ;;  %p456_p8 = scmp.lt.s32.totalorder %s447_s23, %s447_s23 }
  0x19   : > { %p450_p1 = pnand %p448_p0, %p412_p6  ;;  %p457_p2 = por %p456_p8, %p455_p7 }
  0x1b   : > { %p451_p4 = pneg %p450_p1 }
  0x1d   : > { %p458_p3 = pnand %p457_p2, %p451_p4 }
  0x1f   : > { %461 = shalt.err (!%p458_p3)
}
  0x20   : > { %388 = dma.hbm_to_vmem [thread:$0]  (!%p524_p5), %s578_s2, 128, %s139_s18, [#allocation6]  }
  0x21   : > { %p584_p9 = scmp.ne.s32.totalorder %s582_s14, 0 }
  0x22   : > { %p585_p10 = scmp.eq.s32.totalorder (!%p584_p9), %s511_s13, 0 }
  0x23   : > { %158 = sbr.rel (%p584_p9) target bundleno = 385 (0x181), region = 32 }
  0x28   : > { %467 = dma.done.wait (%p585_p10), [#allocation4], 64   ;;  %p586_p6 = pmov %p585_p10 }
  0x2a   : > { %469 = vsyncadd (%p586_p6), [#allocation4], 4294967232  ;;  %p587_p11 = pmov %p586_p6 }
  0x2b   : > { %p588_p2 = pmov %p586_p6 }
  0x2c   : > { %471 = dma.done.wait (%p587_p11), [#allocation6], 128  }
  0x2d   : > { %473 = vsyncadd (%p588_p2), [#allocation6], 4294967168  ;;  %p184_p3 = scmp.lt.s32.totalorder %s511_s13, 1  ;;  %vm194_vm0 = vcmask 7168   ;;  %v480_v0 = vmov 0.0   ;;  %vm202_vm1 = vcmask 261120  }
  0x2e   : > { %366 = vmatprep.subr.bf16.mxu0 %v480_v0  ;;  %195 = vst.msk [vmem:[#allocation2] sm:$0xff] %vm194_vm0, %v480_v0  ;;  %s481_s30 = smov 127   ;;  %s482_s4 = smov 1   ;;  %vm483_vm2 = vmmov 0   ;;  %v217_v2 = vld [vmem:[#allocation5] sm:$0xff]  ;;  %v484_v3 = vmov 0  }
  0x2f   : > { %s590_s13 = smov (!%p184_p3, %s511_s13), 1  ;;  %370 = vmatprep.mubr.msk.bf16.mxu0 %vm483_vm2, %v480_v0  ;;  %408 = vset.pattern.permute.xlu1 %v484_v3  ;;  %vm207_vm3 = vcmask 252928   ;;  %vm209_vm4 = vcmask 261368   ;;  %vm200_vm5 = vcmask 261128   ;;  %vm227_vm6 = vcmask 1043456  }
  0x30   : > { %s358_s26 = sshll.u32 %s590_s13, 3  ;;  %409 = vset.pattern.permute.xlu0 %v484_v3  ;;  %220 = vperm.xlu1 %408, %v217_v2   ;;  %v211_v12 = vld [vmem:[#allocation3] sm:$0xf]  ;;  %vm223_vm7 = vcmask 195584  }
  0x31   : > { %s187_s29 = scalar_lea.vmem %s576_s0, %s358_s26  ;;  %s191_s7 = scalar_lea.vmem %s579_s3, %s358_s26 }
  0x32   : > { %v193_v1 = vld [vmem:[%s187_s29] sm:$0xff] }
  0x33   : > { %204 = vrot.lane.b32.xlu0 %v193_v1, %s481_s30  ;;  %203 = vst.msk [vmem:[#allocation2 + $0x8] sm:$0xff] %vm202_vm1, %v193_v1 }
  0x37   : > { %197 = vrot.lane.b32.xlu0 %v193_v1, %s482_s4 }
  0x3a   : > { %v213_v8 = vld [vmem:[#allocation2 + $0x8] sm:$0xff] }
  0xa5   : > { %v205_v4 = vpop.permute.xlu0 %204 }
  0xa6   : > { %208 = vst.msk [vmem:[#allocation2 + $0x10] sm:$0xff] %vm207_vm3, %v205_v4 }
  0xa7   : > { %210 = vst.msk [vmem:[#allocation2 + $0x10] sm:$0xff] %vm209_vm4, %v480_v0 }
  0xa9   : > { %v198_v5 = vpop.permute.xlu0 %197 }
  0xaa   : > { %201 = vst.msk [vmem:[#allocation2] sm:$0xff] %vm200_vm5, %v198_v5 }
  0xab   : > { %v221_v13 = vpop.permute.xlu1 %220 }
  0xae   : > { %v214_v6 = vld [vmem:[#allocation2 + $0x10] sm:$0xff] }
  0xaf   : > { %v216_v7 = vpack.c.bf16 %v214_v6, %v214_v6 }
  0xb1   : > { %v229_v9 = vsel %vm227_vm6, %v216_v7, 0  ;;  %v212_v10 = vld [vmem:[#allocation2] sm:$0xff] }
  0xb2   : > { %367 = vmatpush3.bf16.msra.mxu0 %v229_v9  ;;  %v215_v11 = vpack.c.bf16 %v213_v8, %v212_v10 }
  0xb3   : > { %368 = vmatprep.subr.bf16.mxu0 %v480_v0 }
  0xb6   : > { %369 = vmatpush3.bf16.msra.mxu0 %v215_v11 }
  0xb9   : > { %371 = vmatmul.mubr.msk.bf16.vlgmr.msra.gmra.mxu0 %vm223_vm7, %v211_v12 }
 0x179   : > { %v265_v14 = vpop.f32.mrf.mxu0 }
 0x17a   : > { %v266_v15 = vadd.f32 %v265_v14, %v221_v13 }
 0x17b   : > { %v372_v16 = vpop.f32.mrf.mxu0 }
 0x17c   : > { %v271_v17 = vmul.f32 0.2, %v266_v15 }
 0x17d   : > { %v268_v18 = vpop.f32.mrf.mxu0 }
 0x17e   : > { %v272_v19 = vmax.f32 %v266_v15, %v271_v17 }
 0x17f   : > { %v373_v20 = vpop.f32.mrf.mxu0 }
 0x180   : > { %273 = vst.msk [vmem:[%s191_s7] sm:$0xff] %vm202_vm1, %v272_v19 }
 0x181 PF: > { %s15_s12 = sadd.s32 1, %s476_s12  }
 0x182   : > { %p12_p5 = scmp.ge.s32.totalorder %s15_s12, 4  }
 0x184   :  { %14 = sbr.rel (!%p12_p5) target bundleno = 2 (0x2), region = 71 }
 0x189   :  { %293 = vsyncpa [#allocation4], 1 }
 0x18a   :  { %295 = vsyncpa [#allocation4 + $0x1], 1 }
 0x18b   :  { %296 = vsyncpa [#allocation6], 1 }

// kernel: _lambda_.10
= control target key start
LH: loop header
LB: loop body
LE: loop exit
PB: predicated region body
PF: predicated region fallthrough
CT: control target
= control target key end

     0   :  { %8 = vsyncpa [#allocation4], 0  ;;  %s576_s0 = inlined_call_operand.vmem [shape: f32[2,8,64], index: 0, kind: input, shape index: {}]   ;;  %s577_s1 = inlined_call_operand.hbm [shape: bf16[8,24], index: 1, kind: input, shape index: {}]   ;;  %s578_s2 = inlined_call_operand.hbm [shape: f32[8,1], index: 2, kind: input, shape index: {}]   ;;  %s579_s3 = inlined_call_operand.vmem [shape: f32[2,8,64], index: 3, kind: output, shape index: {}]  }
   0x1   :  { %9 = vsyncpa [#allocation6], 0  ;;  %s505_s12 = smov 0  }
   0x2 LB: > { %s511_s13 = sadd.s32 4294967295, %s476_s12   ;;  %p351_p0 = scmp.ge.s32.totalorder %s476_s12, 1  ;;  %s476_s12 = sphi %s505_s12, %s15_s12  }
   0x3   : > { %p114_p1 = scmp.lt.s32.totalorder %s476_s12, 3  ;;  %p580_p2 = scmp.eq.s32.totalorder %s511_s13, 0 }
   0x4   : > { %s478_s15 = smov [#allocation3]   ;;  %s479_s17 = smov [#allocation5]  }
   0x5   : > { %p516_p3 = pnand %p351_p0, %p114_p1  ;;  %s127_s16 = sshll.u32 %s478_s15, 4  ;;  %s128_s16 = int_to_ptr.vmem [resolvable:$true] %s127_s16 }
   0x6   : > { %s138_s18 = sshll.u32 %s479_s17, 4  ;;  %s421_s20 = scalar_lea.vmem %s128_s16, 64  ;;  %s139_s18 = int_to_ptr.vmem [resolvable:$true] %s138_s18 }
   0x7   : > { %s582_s14 = scalar_select %p516_p3, 1, 0 }
   0x8   : > { %p382_p4 = pneg %p516_p3  ;;  %p422_p7 = scmp.ne.s32.totalorder %s128_s16, %s421_s20 }
   0x9   : > { %p429_p10 = scmp.lt.s32.totalorder %s128_s16, %s128_s16  ;;  %p430_p11 = scmp.lt.s32.totalorder %s421_s20, %s421_s20 }
   0xa   : > { %p524_p5 = pnand %p580_p2, %p382_p4 }
   0xb   : > { %p431_p12 = por %p430_p11, %p429_p10 }
   0xc   : > { %p412_p6 = pneg %p524_p5 }
   0xe   : > { %p424_p8 = pnand %p422_p7, %p412_p6 }
  0x10   : > { %p425_p9 = pneg %p424_p8 }
  0x12   : > { %p432_p13 = pnand %p431_p12, %p425_p9 }
  0x14   : > { %435 = shalt.err (!%p432_p13)
}
  0x15   : > { %385 = dma.hbm_to_vmem [thread:$0]  (!%p524_p5), %s577_s1, 64, %s128_s16, [#allocation4]  }
  0x16   : > { %s447_s23 = scalar_lea.vmem %s139_s18, 128  ;;  %p455_p7 = scmp.lt.s32.totalorder %s139_s18, %s139_s18 }
  0x17   : > { %p448_p0 = scmp.ne.s32.totalorder %s139_s18, %s447_s23  ;;  %p456_p8 = scmp.lt.s32.totalorder %s447_s23, %s447_s23 }
  0x19   : > { %p450_p1 = pnand %p448_p0, %p412_p6  ;;  %p457_p2 = por %p456_p8, %p455_p7 }
  0x1b   : > { %p451_p4 = pneg %p450_p1 }
  0x1d   : > { %p458_p3 = pnand %p457_p2, %p451_p4 }
  0x1f   : > { %461 = shalt.err (!%p458_p3)
}
  0x20   : > { %388 = dma.hbm_to_vmem [thread:$0]  (!%p524_p5), %s578_s2, 128, %s139_s18, [#allocation6]  }
  0x21   : > { %p584_p9 = scmp.ne.s32.totalorder %s582_s14, 0 }
  0x22   : > { %p585_p10 = scmp.eq.s32.totalorder (!%p584_p9), %s511_s13, 0 }
  0x23   : > { %158 = sbr.rel (%p584_p9) target bundleno = 385 (0x181), region = 32 }
  0x28   : > { %467 = dma.done.wait (%p585_p10), [#allocation4], 64   ;;  %p586_p6 = pmov %p585_p10 }
  0x2a   : > { %469 = vsyncadd (%p586_p6), [#allocation4], 4294967232  ;;  %p587_p11 = pmov %p586_p6 }
  0x2b   : > { %p588_p2 = pmov %p586_p6 }
  0x2c   : > { %471 = dma.done.wait (%p587_p11), [#allocation6], 128  }
  0x2d   : > { %473 = vsyncadd (%p588_p2), [#allocation6], 4294967168  ;;  %p184_p3 = scmp.lt.s32.totalorder %s511_s13, 1  ;;  %vm194_vm0 = vcmask 7168   ;;  %v480_v0 = vmov 0.0   ;;  %vm202_vm1 = vcmask 523264  }
  0x2e   : > { %366 = vmatprep.subr.bf16.mxu0 %v480_v0  ;;  %195 = vst.msk [vmem:[#allocation2] sm:$0xff] %vm194_vm0, %v480_v0  ;;  %s481_s30 = smov 127   ;;  %s482_s4 = smov 1   ;;  %vm483_vm2 = vmmov 0   ;;  %v217_v2 = vld [vmem:[#allocation5] sm:$0xff]  ;;  %v484_v3 = vmov 0  }
  0x2f   : > { %s590_s13 = smov (!%p184_p3, %s511_s13), 1  ;;  %370 = vmatprep.mubr.msk.bf16.mxu0 %vm483_vm2, %v480_v0  ;;  %408 = vset.pattern.permute.xlu1 %v484_v3  ;;  %vm207_vm3 = vcmask 515072   ;;  %vm209_vm4 = vcmask 523768   ;;  %vm200_vm5 = vcmask 523272   ;;  %vm227_vm6 = vcmask 1043456  }
  0x30   : > { %s358_s26 = sshll.u32 %s590_s13, 3  ;;  %409 = vset.pattern.permute.xlu0 %v484_v3  ;;  %220 = vperm.xlu1 %408, %v217_v2   ;;  %v211_v12 = vld [vmem:[#allocation3] sm:$0xf]  ;;  %vm223_vm7 = vcmask 195584  }
  0x31   : > { %s187_s29 = scalar_lea.vmem %s576_s0, %s358_s26  ;;  %s191_s7 = scalar_lea.vmem %s579_s3, %s358_s26 }
  0x32   : > { %v193_v1 = vld [vmem:[%s187_s29] sm:$0xff] }
  0x33   : > { %204 = vrot.lane.b32.xlu0 %v193_v1, %s481_s30  ;;  %203 = vst.msk [vmem:[#allocation2 + $0x8] sm:$0xff] %vm202_vm1, %v193_v1 }
  0x37   : > { %197 = vrot.lane.b32.xlu0 %v193_v1, %s482_s4 }
  0x3a   : > { %v213_v8 = vld [vmem:[#allocation2 + $0x8] sm:$0xff] }
  0xa5   : > { %v205_v4 = vpop.permute.xlu0 %204 }
  0xa6   : > { %208 = vst.msk [vmem:[#allocation2 + $0x10] sm:$0xff] %vm207_vm3, %v205_v4 }
  0xa7   : > { %210 = vst.msk [vmem:[#allocation2 + $0x10] sm:$0xff] %vm209_vm4, %v480_v0 }
  0xa9   : > { %v198_v5 = vpop.permute.xlu0 %197 }
  0xaa   : > { %201 = vst.msk [vmem:[#allocation2] sm:$0xff] %vm200_vm5, %v198_v5 }
  0xab   : > { %v221_v13 = vpop.permute.xlu1 %220 }
  0xae   : > { %v214_v6 = vld [vmem:[#allocation2 + $0x10] sm:$0xff] }
  0xaf   : > { %v216_v7 = vpack.c.bf16 %v214_v6, %v214_v6 }
  0xb1   : > { %v229_v9 = vsel %vm227_vm6, %v216_v7, 0  ;;  %v212_v10 = vld [vmem:[#allocation2] sm:$0xff] }
  0xb2   : > { %367 = vmatpush3.bf16.msra.mxu0 %v229_v9  ;;  %v215_v11 = vpack.c.bf16 %v213_v8, %v212_v10 }
  0xb3   : > { %368 = vmatprep.subr.bf16.mxu0 %v480_v0 }
  0xb6   : > { %369 = vmatpush3.bf16.msra.mxu0 %v215_v11 }
  0xb9   : > { %371 = vmatmul.mubr.msk.bf16.vlgmr.msra.gmra.mxu0 %vm223_vm7, %v211_v12 }
 0x179   : > { %v265_v14 = vpop.f32.mrf.mxu0 }
 0x17a   : > { %v266_v15 = vadd.f32 %v265_v14, %v221_v13 }
 0x17b   : > { %v372_v16 = vpop.f32.mrf.mxu0 }
 0x17c   : > { %v271_v17 = vmul.f32 0.2, %v266_v15 }
 0x17d   : > { %v268_v18 = vpop.f32.mrf.mxu0 }
 0x17e   : > { %v272_v19 = vmax.f32 %v266_v15, %v271_v17 }
 0x17f   : > { %v373_v20 = vpop.f32.mrf.mxu0 }
 0x180   : > { %273 = vst.msk [vmem:[%s191_s7] sm:$0xff] %vm202_vm1, %v272_v19 }
 0x181 PF: > { %s15_s12 = sadd.s32 1, %s476_s12  }
 0x182   : > { %p12_p5 = scmp.ge.s32.totalorder %s15_s12, 4  }
 0x184   :  { %14 = sbr.rel (!%p12_p5) target bundleno = 2 (0x2), region = 71 }
 0x189   :  { %293 = vsyncpa [#allocation4], 1 }
 0x18a   :  { %295 = vsyncpa [#allocation4 + $0x1], 1 }
 0x18b   :  { %296 = vsyncpa [#allocation6], 1 }

// kernel: _lambda_.11
= control target key start
LH: loop header
LB: loop body
LE: loop exit
PB: predicated region body
PF: predicated region fallthrough
CT: control target
= control target key end

     0   :  { %8 = vsyncpa [#allocation4], 0  ;;  %s573_s0 = inlined_call_operand.vmem [shape: f32[2,8,128], index: 0, kind: input, shape index: {}]   ;;  %s574_s1 = inlined_call_operand.hbm [shape: bf16[8,24], index: 1, kind: input, shape index: {}]   ;;  %s575_s2 = inlined_call_operand.hbm [shape: f32[8,1], index: 2, kind: input, shape index: {}]   ;;  %s576_s3 = inlined_call_operand.vmem [shape: f32[2,8,128], index: 3, kind: output, shape index: {}]  }
   0x1   :  { %9 = vsyncpa [#allocation6], 0  ;;  %s504_s12 = smov 0  }
   0x2 LB: > { %s510_s13 = sadd.s32 4294967295, %s475_s12   ;;  %p350_p0 = scmp.ge.s32.totalorder %s475_s12, 1  ;;  %s475_s12 = sphi %s504_s12, %s15_s12  }
   0x3   : > { %p114_p1 = scmp.lt.s32.totalorder %s475_s12, 3  ;;  %p577_p2 = scmp.eq.s32.totalorder %s510_s13, 0 }
   0x4   : > { %s477_s15 = smov [#allocation3]   ;;  %s478_s17 = smov [#allocation5]  }
   0x5   : > { %p515_p3 = pnand %p350_p0, %p114_p1  ;;  %s127_s16 = sshll.u32 %s477_s15, 4  ;;  %s128_s16 = int_to_ptr.vmem [resolvable:$true] %s127_s16 }
   0x6   : > { %s138_s18 = sshll.u32 %s478_s17, 4  ;;  %s420_s20 = scalar_lea.vmem %s128_s16, 64  ;;  %s139_s18 = int_to_ptr.vmem [resolvable:$true] %s138_s18 }
   0x7   : > { %s579_s14 = scalar_select %p515_p3, 1, 0 }
   0x8   : > { %p381_p4 = pneg %p515_p3  ;;  %p421_p7 = scmp.ne.s32.totalorder %s128_s16, %s420_s20 }
   0x9   : > { %p428_p10 = scmp.lt.s32.totalorder %s128_s16, %s128_s16  ;;  %p429_p11 = scmp.lt.s32.totalorder %s420_s20, %s420_s20 }
   0xa   : > { %p523_p5 = pnand %p577_p2, %p381_p4 }
   0xb   : > { %p430_p12 = por %p429_p11, %p428_p10 }
   0xc   : > { %p411_p6 = pneg %p523_p5 }
   0xe   : > { %p423_p8 = pnand %p421_p7, %p411_p6 }
  0x10   : > { %p424_p9 = pneg %p423_p8 }
  0x12   : > { %p431_p13 = pnand %p430_p12, %p424_p9 }
  0x14   : > { %434 = shalt.err (!%p431_p13)
}
  0x15   : > { %384 = dma.hbm_to_vmem [thread:$0]  (!%p523_p5), %s574_s1, 64, %s128_s16, [#allocation4]  }
  0x16   : > { %s446_s23 = scalar_lea.vmem %s139_s18, 128  ;;  %p454_p7 = scmp.lt.s32.totalorder %s139_s18, %s139_s18 }
  0x17   : > { %p447_p0 = scmp.ne.s32.totalorder %s139_s18, %s446_s23  ;;  %p455_p8 = scmp.lt.s32.totalorder %s446_s23, %s446_s23 }
  0x19   : > { %p449_p1 = pnand %p447_p0, %p411_p6  ;;  %p456_p2 = por %p455_p8, %p454_p7 }
  0x1b   : > { %p450_p4 = pneg %p449_p1 }
  0x1d   : > { %p457_p3 = pnand %p456_p2, %p450_p4 }
  0x1f   : > { %460 = shalt.err (!%p457_p3)
}
  0x20   : > { %387 = dma.hbm_to_vmem [thread:$0]  (!%p523_p5), %s575_s2, 128, %s139_s18, [#allocation6]  }
  0x21   : > { %p581_p9 = scmp.ne.s32.totalorder %s579_s14, 0 }
  0x22   : > { %p582_p10 = scmp.eq.s32.totalorder (!%p581_p9), %s510_s13, 0 }
  0x23   : > { %158 = sbr.rel (%p581_p9) target bundleno = 385 (0x181), region = 32 }
  0x28   : > { %466 = dma.done.wait (%p582_p10), [#allocation4], 64   ;;  %p583_p6 = pmov %p582_p10 }
  0x2a   : > { %468 = vsyncadd (%p583_p6), [#allocation4], 4294967232  ;;  %p584_p11 = pmov %p583_p6 }
  0x2b   : > { %p585_p2 = pmov %p583_p6 }
  0x2c   : > { %470 = dma.done.wait (%p584_p11), [#allocation6], 128  }
  0x2d   : > { %472 = vsyncadd (%p585_p2), [#allocation6], 4294967168  ;;  %p184_p3 = scmp.lt.s32.totalorder %s510_s13, 1  ;;  %vm194_vm0 = vcmask 7168   ;;  %v479_v0 = vmov 0.0   ;;  %s480_s30 = smov 127  }
  0x2e   : > { %365 = vmatprep.subr.bf16.mxu0 %v479_v0  ;;  %195 = vst.msk [vmem:[#allocation2] sm:$0xff] %vm194_vm0, %v479_v0  ;;  %s481_s4 = smov 1   ;;  %vm482_vm1 = vmmov 0   ;;  %v216_v2 = vld [vmem:[#allocation5] sm:$0xff]  ;;  %v483_v3 = vmov 0   ;;  %vm206_vm2 = vcmask 1039360  }
  0x2f   : > { %s587_s13 = smov (!%p184_p3, %s510_s13), 1  ;;  %369 = vmatprep.mubr.msk.bf16.mxu0 %vm482_vm1, %v479_v0  ;;  %407 = vset.pattern.permute.xlu1 %v483_v3  ;;  %vm208_vm3 = vcmask 1048568   ;;  %vm200_vm4 = vcmask 1047560   ;;  %vm226_vm5 = vcmask 1043456   ;;  %v210_v11 = vld [vmem:[#allocation3] sm:$0xf] }
  0x30   : > { %s357_s26 = sshll.u32 %s587_s13, 3  ;;  %408 = vset.pattern.permute.xlu0 %v483_v3  ;;  %219 = vperm.xlu1 %407, %v216_v2   ;;  %vm222_vm6 = vcmask 195584  }
  0x31   : > { %s187_s29 = scalar_lea.vmem %s573_s0, %s357_s26  ;;  %s191_s7 = scalar_lea.vmem %s576_s3, %s357_s26 }
  0x32   : > { %v193_v1 = vld [vmem:[%s187_s29] sm:$0xff] }
  0x33   : > { %203 = vrot.lane.b32.xlu0 %v193_v1, %s480_s30 }
  0x37   : > { %197 = vrot.lane.b32.xlu0 %v193_v1, %s481_s4 }
  0xa5   : > { %v204_v4 = vpop.permute.xlu0 %203 }
  0xa6   : > { %207 = vst.msk [vmem:[#allocation2 + $0x10] sm:$0xff] %vm206_vm2, %v204_v4 }
  0xa7   : > { %209 = vst.msk [vmem:[#allocation2 + $0x10] sm:$0xff] %vm208_vm3, %v479_v0 }
  0xa9   : > { %v198_v5 = vpop.permute.xlu0 %197 }
  0xaa   : > { %201 = vst.msk [vmem:[#allocation2] sm:$0xff] %vm200_vm4, %v198_v5 }
  0xab   : > { %v220_v12 = vpop.permute.xlu1 %219 }
  0xae   : > { %v213_v6 = vld [vmem:[#allocation2 + $0x10] sm:$0xff] }
  0xaf   : > { %v215_v7 = vpack.c.bf16 %v213_v6, %v213_v6 }
  0xb1   : > { %v228_v8 = vsel %vm226_vm5, %v215_v7, 0  ;;  %v211_v9 = vld [vmem:[#allocation2] sm:$0xff] }
  0xb2   : > { %366 = vmatpush3.bf16.msra.mxu0 %v228_v8  ;;  %v214_v10 = vpack.c.bf16 %v193_v1, %v211_v9 }
  0xb3   : > { %367 = vmatprep.subr.bf16.mxu0 %v479_v0 }
  0xb6   : > { %368 = vmatpush3.bf16.msra.mxu0 %v214_v10 }
  0xb9   : > { %370 = vmatmul.mubr.msk.bf16.vlgmr.msra.gmra.mxu0 %vm222_vm6, %v210_v11 }
 0x179   : > { %v264_v13 = vpop.f32.mrf.mxu0 }
 0x17a   : > { %v265_v14 = vadd.f32 %v264_v13, %v220_v12 }
 0x17b   : > { %v371_v15 = vpop.f32.mrf.mxu0 }
 0x17c   : > { %v270_v16 = vmul.f32 0.2, %v265_v14 }
 0x17d   : > { %v267_v17 = vpop.f32.mrf.mxu0 }
 0x17e   : > { %v271_v18 = vmax.f32 %v265_v14, %v270_v16 }
 0x17f   : > { %v372_v19 = vpop.f32.mrf.mxu0 }
 0x180   : > { %272 = vst [vmem:[%s191_s7] sm:$0xff] %v271_v18 }
 0x181 PF: > { %s15_s12 = sadd.s32 1, %s475_s12  }
 0x182   : > { %p12_p5 = scmp.ge.s32.totalorder %s15_s12, 4  }
 0x184   :  { %14 = sbr.rel (!%p12_p5) target bundleno = 2 (0x2), region = 71 }
 0x189   :  { %292 = vsyncpa [#allocation4], 1 }
 0x18a   :  { %294 = vsyncpa [#allocation4 + $0x1], 1 }
 0x18b   :  { %295 = vsyncpa [#allocation6], 1 }

// kernel: _lambda_.8
= control target key start
LH: loop header
LB: loop body
LE: loop exit
PB: predicated region body
PF: predicated region fallthrough
CT: control target
= control target key end

     0   :  { %13 = vsyncpa [#allocation4], 0  ;;  %s2882_s0 = inlined_call_operand.vmem [shape: f32[2,8,16], index: 0, kind: input, shape index: {}]   ;;  %s2883_s1 = inlined_call_operand.hbm [shape: bf16[3,4,24], index: 1, kind: input, shape index: {}]   ;;  %s2884_s2 = inlined_call_operand.hbm [shape: bf16[3,4,36], index: 2, kind: input, shape index: {}]   ;;  %s2885_s3 = inlined_call_operand.hbm [shape: bf16[3,4,48], index: 3, kind: input, shape index: {}]   ;;  %s2886_s4 = inlined_call_operand.hbm [shape: bf16[3,4,60], index: 4, kind: input, shape index: {}]   ;;  %s2887_s5 = inlined_call_operand.hbm [shape: bf16[3,8,72], index: 5, kind: input, shape index: {}]   ;;  %s2888_s6 = inlined_call_operand.hbm [shape: bf16[8,24], index: 6, kind: input, shape index: {}]   ;;  %s2889_s7 = inlined_call_operand.hbm [shape: f32[80,1], index: 7, kind: input, shape index: {}]   ;;  %s2890_s8 = inlined_call_operand.vmem [shape: f32[2,8,16], index: 8, kind: output, shape index: {}]  }
   0x1   :  { %14 = vsyncpa [#allocation6], 0 }
   0x2   :  { %15 = vsyncpa [#allocation9], 0 }
   0x3   :  { %16 = vsyncpa [#allocation12], 0  ;;  %s2406_s27 = smov 0  }
   0x4 LB: > { %s2412_s28 = sadd.s32 4294967295, %s2341_s27   ;;  %p1769_p0 = scmp.ge.s32.totalorder %s2341_s27, 1  ;;  %s2341_s27 = sphi %s2406_s27, %s22_s27  }
   0x5   : > { %p226_p1 = scmp.lt.s32.totalorder %s2341_s27, 3  ;;  %p2095_p2 = scmp.eq.s32.totalorder %s2412_s28, 0 }
   0x6   : > { %s2343_s30 = smov [#allocation5]   ;;  %s2344_s10 = smov [#allocation8]  }
   0x7   : > { %p2417_p3 = pnand %p1769_p0, %p226_p1  ;;  %s251_s9 = sshll.u32 %s2343_s30, 4  ;;  %s252_s9 = int_to_ptr.vmem [resolvable:$true] %s251_s9 }
   0x8   : > { %s277_s11 = sshll.u32 %s2344_s10, 4  ;;  %s2345_s13 = smov [#allocation11]   ;;  %s2423_s11 = int_to_ptr.vmem [resolvable:$true] %s277_s11 }
   0x9   : > { %p2073_p4 = pneg %p2417_p3  ;;  %s304_s14 = sshll.u32 %s2345_s13, 4  ;;  %s2431_s14 = int_to_ptr.vmem [resolvable:$true] %s304_s14 }
   0xa   : > { %s2346_s15 = smov [#allocation3]   ;;  %s2148_s18 = scalar_lea.vmem %s252_s9, 96 }
   0xb   : > { %p2427_p5 = pnand %p2095_p2, %p2073_p4  ;;  %s2433_s16 = sshll.u32 %s2346_s15, 4  ;;  %s239_s16 = int_to_ptr.vmem [resolvable:$true] %s2433_s16 }
   0xc   : > { %p2149_p7 = scmp.ne.s32.totalorder %s252_s9, %s2148_s18  ;;  %p2156_p10 = scmp.lt.s32.totalorder %s252_s9, %s252_s9 }
   0xd   : > { %p2437_p6 = pneg %p2427_p5  ;;  %p2157_p11 = scmp.lt.s32.totalorder %s2148_s18, %s2148_s18 }
   0xf   : > { %p2151_p8 = pnand %p2149_p7, %p2437_p6  ;;  %p2158_p12 = por %p2157_p11, %p2156_p10 }
  0x11   : > { %p2152_p9 = pneg %p2151_p8 }
  0x13   : > { %p2159_p13 = pnand %p2158_p12, %p2152_p9 }
  0x15   : > { %2162 = shalt.err (!%p2159_p13)
}
  0x16   : > { %s2347_s19 = smov 32   ;;  %s2348_s20 = smov 2  }
  0x17   : > { %2079 = dma.hbm_to_vmem [thread:$0]  (!%p2427_p5), %s2884_s2, 96, %s252_s9, [#allocation6], %s2347_s19, %s2347_s19, %s2348_s20  }
  0x18   : > { %s2174_s23 = scalar_lea.vmem %s2423_s11, 96  ;;  %p2182_p7 = scmp.lt.s32.totalorder %s2423_s11, %s2423_s11 }
  0x19   : > { %p2175_p0 = scmp.ne.s32.totalorder %s2423_s11, %s2174_s23  ;;  %p2183_p8 = scmp.lt.s32.totalorder %s2174_s23, %s2174_s23 }
  0x1b   : > { %p2177_p1 = pnand %p2175_p0, %p2437_p6  ;;  %p2184_p9 = por %p2183_p8, %p2182_p7 }
  0x1d   : > { %p2178_p4 = pneg %p2177_p1 }
  0x1f   : > { %p2185_p10 = pnand %p2184_p9, %p2178_p4 }
  0x21   : > { %2188 = shalt.err (!%p2185_p10)
}
  0x22   : > { %2085 = dma.hbm_to_vmem [thread:$0]  (!%p2427_p5), %s2886_s4, 96, %s2423_s11, [#allocation9], %s2347_s19, %s2347_s19, %s2348_s20  }
  0x23   : > { %s2200_s26 = scalar_lea.vmem %s2431_s14, 64  ;;  %p2208_p0 = scmp.lt.s32.totalorder %s2431_s14, %s2431_s14 }
  0x24   : > { %p2201_p11 = scmp.ne.s32.totalorder %s2431_s14, %s2200_s26  ;;  %p2209_p1 = scmp.lt.s32.totalorder %s2200_s26, %s2200_s26 }
  0x26   : > { %p2203_p12 = pnand %p2201_p11, %p2437_p6  ;;  %p2210_p4 = por %p2209_p1, %p2208_p0 }
  0x28   : > { %p2204_p13 = pneg %p2203_p12 }
  0x2a   : > { %p2211_p7 = pnand %p2210_p4, %p2204_p13 }
  0x2c   : > { %2214 = shalt.err (!%p2211_p7)
}
  0x2d   : > { %2091 = dma.hbm_to_vmem [thread:$0]  (!%p2427_p5), %s2888_s6, 64, %s2431_s14, [#allocation12]  }
  0x2e   : > { %s2226_s10 = scalar_lea.vmem %s239_s16, 96  ;;  %p2234_p11 = scmp.lt.s32.totalorder %s239_s16, %s239_s16 }
  0x2f   : > { %p2227_p8 = scmp.ne.s32.totalorder %s239_s16, %s2226_s10  ;;  %p2235_p12 = scmp.lt.s32.totalorder %s2226_s10, %s2226_s10 }
  0x31   : > { %p2229_p9 = pnand %p2227_p8, %p2437_p6  ;;  %p2236_p0 = por %p2235_p12, %p2234_p11 }
  0x33   : > { %p2230_p10 = pneg %p2229_p9 }
  0x35   : > { %p2237_p13 = pnand %p2236_p0, %p2230_p10 }
  0x37   : > { %2240 = shalt.err (!%p2237_p13)
}
  0x38   : > { %2076 = dma.hbm_to_vmem [thread:$0]  (!%p2427_p5), %s2883_s1, 96, %s239_s16, [#allocation4], %s2347_s19, %s2347_s19, %s2348_s20  }
  0x39   : > { %s2349_s14 = smov [#allocation7]   ;;  %s2350_s18 = smov [#allocation10]  }
  0x3a   : > { %s264_s15 = sshll.u32 %s2349_s14, 4  ;;  %s290_s21 = sshll.u32 %s2350_s18, 4  ;;  %s265_s15 = int_to_ptr.vmem [resolvable:$true] %s264_s15  ;;  %s291_s21 = int_to_ptr.vmem [resolvable:$true] %s290_s21 }
  0x3b   : > { %s2252_s22 = scalar_lea.vmem %s265_s15, 96  ;;  %p2260_p8 = scmp.lt.s32.totalorder %s265_s15, %s265_s15 }
  0x3c   : > { %p2253_p1 = scmp.ne.s32.totalorder %s265_s15, %s2252_s22  ;;  %p2261_p9 = scmp.lt.s32.totalorder %s2252_s22, %s2252_s22 }
  0x3e   : > { %p2255_p4 = pnand %p2253_p1, %p2437_p6  ;;  %p2262_p10 = por %p2261_p9, %p2260_p8 }
  0x40   : > { %p2256_p7 = pneg %p2255_p4 }
  0x42   : > { %p2263_p11 = pnand %p2262_p10, %p2256_p7 }
  0x44   : > { %2266 = shalt.err (!%p2263_p11)
}
  0x45   : > { %2082 = dma.hbm_to_vmem [thread:$0]  (!%p2427_p5), %s2885_s3, 96, %s265_s15, [#allocation6], %s2347_s19, %s2347_s19, %s2348_s20  }
  0x46   : > { %s2278_s24 = scalar_lea.vmem %s291_s21, 192  ;;  %p2286_p1 = scmp.lt.s32.totalorder %s291_s21, %s291_s21 }
  0x47   : > { %p2279_p12 = scmp.ne.s32.totalorder %s291_s21, %s2278_s24  ;;  %p2287_p4 = scmp.lt.s32.totalorder %s2278_s24, %s2278_s24 }
  0x49   : > { %p2281_p0 = pnand %p2279_p12, %p2437_p6  ;;  %p2288_p7 = por %p2287_p4, %p2286_p1 }
  0x4b   : > { %p2282_p13 = pneg %p2281_p0 }
  0x4d   : > { %p2289_p8 = pnand %p2288_p7, %p2282_p13 }
  0x4f   : > { %2292 = shalt.err (!%p2289_p8)
}
  0x50   : > { %s2351_s25 = smov 64   ;;  %s2352_s26 = smov 4  }
  0x51   : > { %2088 = dma.hbm_to_vmem [thread:$0]  (!%p2427_p5), %s2887_s5, 192, %s291_s21, [#allocation9], %s2351_s25, %s2351_s25, %s2352_s26  }
  0x52   : > { %s2353_s19 = smov [#allocation13]  }
  0x53   : > { %s314_s20 = sshll.u32 %s2353_s19, 4  ;;  %s315_s20 = int_to_ptr.vmem [resolvable:$true] %s314_s20 }
  0x54   : > { %s2304_s10 = scalar_lea.vmem %s315_s20, 1280  ;;  %p2312_p12 = scmp.lt.s32.totalorder %s315_s20, %s315_s20 }
  0x55   : > { %p2305_p9 = scmp.ne.s32.totalorder %s315_s20, %s2304_s10  ;;  %p2313_p0 = scmp.lt.s32.totalorder %s2304_s10, %s2304_s10 }
  0x57   : > { %p2307_p10 = pnand %p2305_p9, %p2437_p6  ;;  %p2314_p13 = por %p2313_p0, %p2312_p12 }
  0x59   : > { %p2308_p11 = pneg %p2307_p10 }
  0x5b   : > { %p2315_p1 = pnand %p2314_p13, %p2308_p11 }
  0x5d   : > { %2318 = shalt.err (!%p2315_p1)
}
  0x5e   : > { %s2354_s11 = smov 128   ;;  %s2355_s13 = smov 8  }
  0x5f   : > { %2094 = dma.hbm_to_vmem [thread:$0]  (!%p2427_p5), %s2889_s7, 1280, %s315_s20, [#allocation12], %s2354_s11, %s2354_s11, %s2355_s13  }
  0x60   : > { %337 = sbr.rel (%p2417_p3) target bundleno = 5544 (0x15a8), region = 52 }
  0x65   : > { %2324 = dma.done.wait (%p2095_p2), [#allocation4], 96  }
  0x66   : > { %2326 = vsyncadd (%p2095_p2), [#allocation4], 4294967200 }
  0x67   : > { %2328 = dma.done.wait (%p2095_p2), [#allocation6], 192  }
  0x68   : > { %2330 = vsyncadd (%p2095_p2), [#allocation6], 4294967104 }
  0x69   : > { %2332 = dma.done.wait (%p2095_p2), [#allocation9], 288  }
  0x6a   : > { %2334 = vsyncadd (%p2095_p2), [#allocation9], 4294967008 }
  0x6b   : > { %2336 = dma.done.wait (%p2095_p2), [#allocation12], 1344  }
  0x6c   : > { %2338 = vsyncadd (%p2095_p2), [#allocation12], 4294965952  ;;  %p393_p3 = scmp.lt.s32.totalorder %s2412_s28, 1  ;;  %vm403_vm0 = vcmask 7168   ;;  %v2356_v0 = vmov 0.0   ;;  %vm411_vm1 = vcmask 130048  }
  0x6d   : > { %1875 = vmatprep.subr.bf16.mxu0 %v2356_v0  ;;  %1883 = vmatprep.subr.bf16.mxu1 %v2356_v0  ;;  %404 = vst.msk [vmem:[#allocation2] sm:$0xff] %vm403_vm0, %v2356_v0  ;;  %s2357_s21 = smov 127   ;;  %s2358_s22 = smov 1   ;;  %vm2359_vm2 = vmmov 0   ;;  %v426_v2 = vld [vmem:[#allocation13] sm:$0xf] }
  0x6e   : > { %s2906_s28 = smov (!%p393_p3, %s2412_s28), 1  ;;  %1879 = vmatprep.mubr.msk.bf16.mxu0 %vm2359_vm2, %v2356_v0  ;;  %1889 = vmatprep.mubr.msk.bf16.mxu1 %vm2359_vm2, %v2356_v0  ;;  %v2360_v3 = vmov 0   ;;  %vm416_vm3 = vcmask 121856   ;;  %vm418_vm4 = vcmask 130168   ;;  %vm409_vm5 = vcmask 130056  }
  0x6f   : > { %s1786_s29 = sshll.u32 %s2906_s28, 3  ;;  %2135 = vset.pattern.permute.xlu1 %v2360_v3  ;;  %2136 = vset.pattern.permute.xlu0 %v2360_v3  ;;  %vm436_vm6 = vcmask 1043456   ;;  %v420_v12 = vld [vmem:[#allocation3] sm:$0x3]  ;;  %vm2894_vm7 = vcmask 195584   ;;  %vm482_vm8 = vcmask 3072  }
  0x70   : > { %s396_s18 = scalar_lea.vmem %s2882_s0, %s1786_s29  ;;  %429 = vperm.xlu1 %2135, %v426_v2   ;;  %483 = vst.msk [vmem:[#allocation2 + $0x18] sm:$0xf] %vm482_vm8, %v2356_v0  ;;  %564 = vst.msk [vmem:[#allocation2 + $0x24] sm:$0xf] %vm482_vm8, %v2356_v0  ;;  %vm490_vm9 = vcmask 125952   ;;  %vm488_vm10 = vcmask 125960   ;;  %s400_s24 = scalar_lea.vmem %s2890_s8, %s1786_s29 }
  0x71   : > { %v2545_v1 = vld [vmem:[%s396_s18] sm:$0xff]  ;;  %638 = vst.msk [vmem:[#allocation2 + $0x30] sm:$0xf] %vm482_vm8, %v2356_v0  ;;  %719 = vst.msk [vmem:[#allocation2 + $0x3c] sm:$0xf] %vm482_vm8, %v2356_v0  ;;  %vm495_vm11 = vcmask 117760  }
  0x72   : > { %413 = vrot.lane.b32.xlu0 %v2545_v1, %s2357_s21  ;;  %412 = vst.msk [vmem:[#allocation2 + $0x8] sm:$0xff] %vm411_vm1, %v2545_v1  ;;  %v508_v21 = vld [vmem:[#allocation13 + $0x4] sm:$0xf]  ;;  %vm497_vm12 = vcmask 126072   ;;  %vm518_vm13 = vcmask 1041408   ;;  %vm2892_vm14 = vcmask 293888  }
  0x73   : > { %v499_v29 = vld [vmem:[#allocation5] sm:$0x3]  ;;  %v586_v38 = vld [vmem:[#allocation13 + $0x8] sm:$0xf]  ;;  %v663_v39 = vld [vmem:[#allocation13 + $0xc] sm:$0xf] }
  0x74   : > { %v576_v45 = vld [vmem:[#allocation7] sm:$0x3]  ;;  %vm2891_vm15 = vcmask 392192   ;;  %v650_v60 = vld [vmem:[#allocation8] sm:$0x3] }
  0x76   : > { %406 = vrot.lane.b32.xlu0 %v2545_v1, %s2358_s22 }
  0x79   : > { %v422_v8 = vld [vmem:[#allocation2 + $0x8] sm:$0xff] }
  0xe4   : > { %v414_v4 = vpop.permute.xlu0 %413 }
  0xe5   : > { %417 = vst.msk [vmem:[#allocation2 + $0x10] sm:$0xff] %vm416_vm3, %v414_v4 }
  0xe6   : > { %419 = vst.msk [vmem:[#allocation2 + $0x10] sm:$0xff] %vm418_vm4, %v2356_v0 }
  0xe8   : > { %v407_v5 = vpop.permute.xlu0 %406 }
  0xe9   : > { %410 = vst.msk [vmem:[#allocation2] sm:$0xff] %vm409_vm5, %v407_v5 }
  0xeb   : > { %v430_v13 = vpop.permute.xlu1 %429 }
  0xed   : > { %v423_v6 = vld [vmem:[#allocation2 + $0x10] sm:$0xff] }
  0xee   : > { %v425_v7 = vpack.c.bf16 %v423_v6, %v423_v6 }
  0xf0   : > { %v438_v9 = vsel %vm436_vm6, %v425_v7, 0  ;;  %v421_v10 = vld [vmem:[#allocation2] sm:$0xff] }
  0xf1   : > { %1876 = vmatpush3.bf16.msra.mxu0 %v438_v9  ;;  %v2562_v11 = vpack.c.bf16 %v422_v8, %v421_v10  ;;  %801 = vst.msk [vmem:[#allocation2] sm:$0xff] %vm403_vm0, %v2356_v0  ;;  %v746_v7 = vld [vmem:[#allocation13 + $0x10] sm:$0xff] }
  0xf2   : > { %1877 = vmatprep.subr.bf16.mxu0 %v2356_v0 }
  0xf5   : > { %1878 = vmatpush3.bf16.msra.mxu0 %v2562_v11 }
  0xf6   : > { %1893 = vmatprep.subr.bf16.mxu0 %v2356_v0 }
  0xf8   : > { %1880 = vmatmul.mubr.msk.bf16.vlgmr.msra.gmra.mxu0 %vm2894_vm7, %v420_v12 }
  0xf9   : > { %1899 = vmatprep.mubr.msk.bf16.mxu0 %vm2359_vm2, %v2356_v0 }
 0x1b8   : > { %v474_v14 = vpop.f32.mrf.mxu0 }
 0x1b9   : > { %v475_v15 = vadd.f32 %v474_v14, %v430_v13 }
 0x1ba   : > { %v1881_v16 = vpop.f32.mrf.mxu0 }
 0x1bb   : > { %v480_v17 = vmul.f32 0.2, %v475_v15  ;;  %v731_v16 = vld [vmem:[#allocation10] sm:$0xf] }
 0x1bc   : > { %v477_v18 = vpop.f32.mrf.mxu0 }
 0x1bd   : > { %v481_v19 = vmax.f32 %v475_v15, %v480_v17 }
 0x1be   : > { %v1882_v20 = vpop.f32.mrf.mxu0 }
 0x1bf   : > { %491 = vst.msk [vmem:[#allocation2 + $0x1c] sm:$0xf] %vm490_vm9, %v481_v19  ;;  %485 = vrot.lane.b32.xlu0 %v481_v19, %s2358_s22  ;;  %492 = vrot.lane.b32.xlu1 %v481_v19, %s2357_s21 }
 0x1c3   : > { %511 = vperm.xlu1 %2135, %v508_v21  }
 0x231   : > { %v486_v22 = vpop.permute.xlu0 %485  ;;  %v493_v23 = vpop.permute.xlu1 %492 }
 0x232   : > { %489 = vst.msk [vmem:[#allocation2 + $0x18] sm:$0xf] %vm488_vm10, %v486_v22 }
 0x233   : > { %496 = vst.msk [vmem:[#allocation2 + $0x20] sm:$0xf] %vm495_vm11, %v493_v23 }
 0x234   : > { %498 = vst.msk [vmem:[#allocation2 + $0x20] sm:$0xf] %vm497_vm12, %v2356_v0 }
 0x239   : > { %v503_v24 = vld [vmem:[#allocation2 + $0x18] sm:$0xff] }
 0x23a   : > { %874 = vst.msk [vmem:[#allocation2 + $0x18] sm:$0xf] %vm482_vm8, %v2356_v0  ;;  %v2591_v28 = vpack.c.bf16 %v503_v24, %v423_v6 }
 0x23b   : > { %v504_v25 = vld [vmem:[#allocation2 + $0x20] sm:$0xf] }
 0x23c   : > { %v507_v26 = vpack.c.bf16 %v504_v25, %v504_v25 }
 0x23e   : > { %v520_v27 = vsel %vm518_vm13, %v507_v26, 0  ;;  %v512_v30 = vpop.permute.xlu1 %511 }
 0x23f   : > { %1884 = vmatpush3.bf16.msra.mxu1 %v520_v27 }
 0x240   : > { %1885 = vmatprep.subr.bf16.mxu1 %v2356_v0 }
 0x243   : > { %1886 = vmatpush3.bf16.msra.mxu1 %v2591_v28 }
 0x244   : > { %1887 = vmatprep.subr.bf16.mxu1 %v2356_v0 }
 0x247   : > { %1888 = vmatpush3.bf16.msra.mxu1 %v2562_v11 }
 0x248   : > { %1903 = vmatprep.subr.bf16.mxu1 %v2356_v0 }
 0x24a   : > { %1890 = vmatmul.mubr.msk.bf16.vlgmr.msra.gmra.mxu1 %vm2892_vm14, %v499_v29  ;;  %vm2893_vm14 = vcmask 490496  }
 0x24b   : > { %1911 = vmatprep.mubr.msk.bf16.mxu1 %vm2359_vm2, %v2356_v0 }
 0x30a   : > { %v556_v31 = vpop.f32.mrf.mxu1 }
 0x30b   : > { %v557_v32 = vadd.f32 %v556_v31, %v512_v30 }
 0x30c   : > { %v1891_v33 = vpop.f32.mrf.mxu1 }
 0x30d   : > { %v562_v34 = vmul.f32 0.2, %v557_v32  ;;  %v814_v33 = vld [vmem:[#allocation3 + $0x2] sm:$0x3] }
 0x30e   : > { %v559_v35 = vpop.f32.mrf.mxu1 }
 0x30f   : > { %v563_v36 = vmax.f32 %v557_v32, %v562_v34 }
 0x310   : > { %v1892_v37 = vpop.f32.mrf.mxu1 }
 0x311   : > { %570 = vst.msk [vmem:[#allocation2 + $0x28] sm:$0xf] %vm490_vm9, %v563_v36  ;;  %566 = vrot.lane.b32.xlu1 %v563_v36, %s2358_s22  ;;  %571 = vrot.lane.b32.xlu0 %v563_v36, %s2357_s21 }
 0x315   : > { %589 = vperm.xlu0 %2136, %v586_v38  }
 0x319   : > { %666 = vperm.xlu0 %2136, %v663_v39  }
 0x383   : > { %v567_v40 = vpop.permute.xlu1 %566  ;;  %v572_v41 = vpop.permute.xlu0 %571 }
 0x384   : > { %569 = vst.msk [vmem:[#allocation2 + $0x24] sm:$0xf] %vm488_vm10, %v567_v40 }
 0x385   : > { %574 = vst.msk [vmem:[#allocation2 + $0x2c] sm:$0xf] %vm495_vm11, %v572_v41 }
 0x386   : > { %575 = vst.msk [vmem:[#allocation2 + $0x2c] sm:$0xf] %vm497_vm12, %v2356_v0 }
 0x38b   : > { %v581_v42 = vld [vmem:[#allocation2 + $0x20] sm:$0xff] }
 0x38c   : > { %950 = vst.msk [vmem:[#allocation2 + $0x24] sm:$0xf] %vm482_vm8, %v2356_v0 }
 0x38d   : > { %v582_v43 = vld [vmem:[#allocation2 + $0x28] sm:$0xff] }
 0x38e   : > { %v2609_v44 = vpack.c.bf16 %v582_v43, %v581_v42  ;;  %v896_v42 = vld [vmem:[#allocation13 + $0x1c] sm:$0xf] }
 0x390   : > { %1894 = vmatpush3.bf16.msra.mxu0 %v2609_v44  ;;  %v590_v46 = vpop.permute.xlu0 %589 }
 0x391   : > { %1895 = vmatprep.subr.bf16.mxu0 %v2356_v0 }
 0x394   : > { %1896 = vmatpush3.bf16.msra.mxu0 %v2591_v28  ;;  %v667_v61 = vpop.permute.xlu0 %666 }
 0x395   : > { %1897 = vmatprep.subr.bf16.mxu0 %v2356_v0 }
 0x398   : > { %1898 = vmatpush3.bf16.msra.mxu0 %v2562_v11 }
 0x399   : > { %1915 = vmatprep.subr.bf16.mxu0 %v2356_v0 }
 0x39b   : > { %1900 = vmatmul.mubr.msk.bf16.vlgmr.msra.gmra.mxu0 %vm2891_vm15, %v576_v45  ;;  %vm673_vm15 = vcmask 1045504  }
 0x39c   : > { %1925 = vmatprep.mubr.msk.bf16.mxu0 %vm2359_vm2, %v2356_v0 }
 0x45b   : > { %v630_v47 = vpop.f32.mrf.mxu0 }
 0x45c   : > { %v631_v48 = vadd.f32 %v630_v47, %v590_v46 }
 0x45d   : > { %v1901_v49 = vpop.f32.mrf.mxu0 }
 0x45e   : > { %v636_v50 = vmul.f32 0.2, %v631_v48 }
 0x45f   : > { %v633_v51 = vpop.f32.mrf.mxu0 }
 0x460   : > { %v637_v52 = vmax.f32 %v631_v48, %v636_v50  ;;  %v887_v50 = vld [vmem:[#allocation5 + $0x2] sm:$0x3] }
 0x461   : > { %v1902_v53 = vpop.f32.mrf.mxu0 }
 0x462   : > { %644 = vst.msk [vmem:[#allocation2 + $0x34] sm:$0xf] %vm490_vm9, %v637_v52  ;;  %645 = vrot.lane.b32.xlu1 %v637_v52, %s2357_s21 }
 0x466   : > { %640 = vrot.lane.b32.xlu1 %v637_v52, %s2358_s22 }
 0x4d4   : > { %v646_v54 = vpop.permute.xlu1 %645 }
 0x4d5   : > { %648 = vst.msk [vmem:[#allocation2 + $0x38] sm:$0xf] %vm495_vm11, %v646_v54 }
 0x4d6   : > { %649 = vst.msk [vmem:[#allocation2 + $0x38] sm:$0xf] %vm497_vm12, %v2356_v0 }
 0x4d8   : > { %v641_v55 = vpop.permute.xlu1 %640 }
 0x4d9   : > { %643 = vst.msk [vmem:[#allocation2 + $0x30] sm:$0xf] %vm488_vm10, %v641_v55 }
 0x4dd   : > { %v658_v56 = vld [vmem:[#allocation2 + $0x38] sm:$0xf] }
 0x4e0   : > { %v657_v57 = vld [vmem:[#allocation2 + $0x30] sm:$0xff] }
 0x4e1   : > { %1024 = vst.msk [vmem:[#allocation2 + $0x30] sm:$0xf] %vm482_vm8, %v2356_v0  ;;  %v662_v58 = vpack.c.bf16 %v658_v56, %v657_v57 }
 0x4e3   : > { %v675_v59 = vsel %vm673_vm15, %v662_v58, 0 }
 0x4e4   : > { %1904 = vmatpush3.bf16.msra.mxu1 %v675_v59  ;;  %v973_v59 = vld [vmem:[#allocation13 + $0x20] sm:$0xf] }
 0x4e5   : > { %1905 = vmatprep.subr.bf16.mxu1 %v2356_v0 }
 0x4e8   : > { %1906 = vmatpush3.bf16.msra.mxu1 %v2609_v44 }
 0x4e9   : > { %1907 = vmatprep.subr.bf16.mxu1 %v2356_v0 }
 0x4ec   : > { %1908 = vmatpush3.bf16.msra.mxu1 %v2591_v28 }
 0x4ed   : > { %1909 = vmatprep.subr.bf16.mxu1 %v2356_v0 }
 0x4f0   : > { %1910 = vmatpush3.bf16.msra.mxu1 %v2562_v11 }
 0x4f1   : > { %1929 = vmatprep.subr.bf16.mxu1 %v2356_v0 }
 0x4f3   : > { %1912 = vmatmul.mubr.msk.bf16.vlgmr.msra.gmra.mxu1 %vm2893_vm14, %v650_v60  ;;  %vm752_vm14 = vcmask 588800  }
 0x4f4   : > { %1933 = vmatprep.mubr.msk.bf16.mxu1 %vm2359_vm2, %v2356_v0 }
 0x5b3   : > { %v711_v62 = vpop.f32.mrf.mxu1 }
 0x5b4   : > { %v712_v63 = vadd.f32 %v711_v62, %v667_v61 }
 0x5b5   : > { %v1913_v2 = vpop.f32.mrf.mxu1 }
 0x5b6   : > { %v717_v3 = vmul.f32 0.2, %v712_v63 }
 0x5b7   : > { %v714_v4 = vpop.f32.mrf.mxu1 }
 0x5b8   : > { %v718_v5 = vmax.f32 %v712_v63, %v717_v3  ;;  %v963_v3 = vld [vmem:[#allocation7 + $0x2] sm:$0x3] }
 0x5b9   : > { %v1914_v6 = vpop.f32.mrf.mxu1 }
 0x5ba   : > { %725 = vst.msk [vmem:[#allocation2 + $0x40] sm:$0xf] %vm490_vm9, %v718_v5  ;;  %721 = vrot.lane.b32.xlu0 %v718_v5, %s2358_s22  ;;  %726 = vrot.lane.b32.xlu1 %v718_v5, %s2357_s21 }
 0x5be   : > { %749 = vperm.xlu1 %2135, %v746_v7  }
 0x62c   : > { %v722_v8 = vpop.permute.xlu0 %721  ;;  %v727_v9 = vpop.permute.xlu1 %726 }
 0x62d   : > { %724 = vst.msk [vmem:[#allocation2 + $0x3c] sm:$0xf] %vm488_vm10, %v722_v8 }
 0x62e   : > { %729 = vst.msk [vmem:[#allocation2 + $0x44] sm:$0xf] %vm495_vm11, %v727_v9 }
 0x62f   : > { %730 = vst.msk [vmem:[#allocation2 + $0x44] sm:$0xf] %vm497_vm12, %v2356_v0 }
 0x634   : > { %v739_v10 = vld [vmem:[#allocation2 + $0x38] sm:$0xff] }
 0x635   : > { %1104 = vst.msk [vmem:[#allocation2 + $0x3c] sm:$0xf] %vm482_vm8, %v2356_v0  ;;  %v744_v15 = vpack.c.bf16 %v739_v10, %v657_v57 }
 0x636   : > { %v740_v12 = vld [vmem:[#allocation2 + $0x40] sm:$0xff] }
 0x637   : > { %v745_v13 = vpack.c.bf16 %v740_v12, %v740_v12 }
 0x639   : > { %v757_v14 = vsel %vm436_vm6, %v745_v13, 0  ;;  %v750_v17 = vpop.permute.xlu1 %749  ;;  %v1050_v13 = vld [vmem:[#allocation13 + $0x24] sm:$0xf] }
 0x63a   : > { %1916 = vmatpush3.bf16.msra.mxu0 %v757_v14 }
 0x63b   : > { %1917 = vmatprep.subr.bf16.mxu0 %v2356_v0 }
 0x63e   : > { %1918 = vmatpush3.bf16.msra.mxu0 %v744_v15 }
 0x63f   : > { %1919 = vmatprep.subr.bf16.mxu0 %v2356_v0 }
 0x642   : > { %1920 = vmatpush3.bf16.msra.mxu0 %v2609_v44 }
 0x643   : > { %1921 = vmatprep.subr.bf16.mxu0 %v2356_v0 }
 0x646   : > { %1922 = vmatpush3.bf16.msra.mxu0 %v2591_v28 }
 0x647   : > { %1923 = vmatprep.subr.bf16.mxu0 %v2356_v0 }
 0x64a   : > { %1924 = vmatpush3.bf16.msra.mxu0 %v2562_v11  ;;  %v820_v11 = vld [vmem:[#allocation13 + $0x18] sm:$0xf] }
 0x64b   : > { %1947 = vmatprep.subr.bf16.mxu0 %v2356_v0 }
 0x64d   : > { %1926 = vmatmul.mubr.msk.bf16.vlgmr.msra.gmra.mxu0 %vm752_vm14, %v731_v16 }
 0x64e   : > { %1953 = vmatprep.mubr.msk.bf16.mxu0 %vm2359_vm2, %v2356_v0 }
 0x70d   : > { %v793_v18 = vpop.f32.mrf.mxu0 }
 0x70e   : > { %v794_v19 = vadd.f32 %v793_v18, %v750_v17 }
 0x70f   : > { %v1927_v20 = vpop.f32.mrf.mxu0 }
 0x710   : > { %v799_v21 = vmul.f32 0.2, %v794_v19  ;;  %v1037_v20 = vld [vmem:[#allocation8 + $0x2] sm:$0x3] }
 0x711   : > { %v796_v22 = vpop.f32.mrf.mxu0 }
 0x712   : > { %v2662_v23 = vadd.f32 %v799_v21, %v2545_v1 }
 0x713   : > { %v1928_v24 = vpop.f32.mrf.mxu0 }
 0x714   : > { %807 = vst.msk [vmem:[#allocation2 + $0x8] sm:$0xff] %vm411_vm1, %v2662_v23  ;;  %803 = vrot.lane.b32.xlu1 %v2662_v23, %s2358_s22  ;;  %808 = vrot.lane.b32.xlu0 %v2662_v23, %s2357_s21 }
 0x718   : > { %823 = vperm.xlu0 %2136, %v820_v11  }
 0x71b   : > { %v816_v31 = vld [vmem:[#allocation2 + $0x8] sm:$0xff] }
 0x786   : > { %v804_v25 = vpop.permute.xlu1 %803  ;;  %v809_v26 = vpop.permute.xlu0 %808 }
 0x787   : > { %806 = vst.msk [vmem:[#allocation2] sm:$0xff] %vm409_vm5, %v804_v25 }
 0x788   : > { %811 = vst.msk [vmem:[#allocation2 + $0x10] sm:$0xff] %vm416_vm3, %v809_v26 }
 0x789   : > { %812 = vst.msk [vmem:[#allocation2 + $0x10] sm:$0xff] %vm418_vm4, %v2356_v0 }
 0x78e   : > { %v815_v27 = vld [vmem:[#allocation2] sm:$0xff] }
 0x78f   : > { %1186 = vst.msk [vmem:[#allocation2] sm:$0xff] %vm403_vm0, %v2356_v0  ;;  %v2678_v32 = vpack.c.bf16 %v816_v31, %v815_v27 }
 0x790   : > { %v817_v28 = vld [vmem:[#allocation2 + $0x10] sm:$0xff] }
 0x791   : > { %v819_v29 = vpack.c.bf16 %v817_v28, %v817_v28 }
 0x793   : > { %v830_v30 = vsel %vm436_vm6, %v819_v29, 0  ;;  %v824_v34 = vpop.permute.xlu0 %823  ;;  %v1132_v29 = vld [vmem:[#allocation13 + $0x28] sm:$0xff] }
 0x794   : > { %1930 = vmatpush3.bf16.msra.mxu1 %v830_v30 }
 0x795   : > { %1931 = vmatprep.subr.bf16.mxu1 %v2356_v0 }
 0x798   : > { %1932 = vmatpush3.bf16.msra.mxu1 %v2678_v32 }
 0x799   : > { %1937 = vmatprep.subr.bf16.mxu1 %v2356_v0 }
 0x79b   : > { %1934 = vmatmul.mubr.msk.bf16.vlgmr.msra.gmra.mxu1 %vm2894_vm7, %v814_v33  ;;  %vm2898_vm7 = vcmask 293888  }
 0x79c   : > { %1943 = vmatprep.mubr.msk.bf16.mxu1 %vm2359_vm2, %v2356_v0 }
 0x85b   : > { %v866_v35 = vpop.f32.mrf.mxu1 }
 0x85c   : > { %v867_v36 = vadd.f32 %v866_v35, %v824_v34 }
 0x85d   : > { %v1935_v37 = vpop.f32.mrf.mxu1 }
 0x85e   : > { %v872_v38 = vmul.f32 0.2, %v867_v36 }
 0x85f   : > { %v869_v39 = vpop.f32.mrf.mxu1 }
 0x860   : > { %v873_v40 = vmax.f32 %v867_v36, %v872_v38  ;;  %v1117_v38 = vld [vmem:[#allocation10 + $0x4] sm:$0xf] }
 0x861   : > { %v1936_v41 = vpop.f32.mrf.mxu1 }
 0x862   : > { %880 = vst.msk [vmem:[#allocation2 + $0x1c] sm:$0xf] %vm490_vm9, %v873_v40  ;;  %876 = vrot.lane.b32.xlu0 %v873_v40, %s2358_s22  ;;  %881 = vrot.lane.b32.xlu1 %v873_v40, %s2357_s21 }
 0x866   : > { %899 = vperm.xlu1 %2135, %v896_v42  }
 0x8d4   : > { %v877_v43 = vpop.permute.xlu0 %876  ;;  %v882_v44 = vpop.permute.xlu1 %881 }
 0x8d5   : > { %879 = vst.msk [vmem:[#allocation2 + $0x18] sm:$0xf] %vm488_vm10, %v877_v43 }
 0x8d6   : > { %884 = vst.msk [vmem:[#allocation2 + $0x20] sm:$0xf] %vm495_vm11, %v882_v44 }
 0x8d7   : > { %885 = vst.msk [vmem:[#allocation2 + $0x20] sm:$0xf] %vm497_vm12, %v2356_v0 }
 0x8dc   : > { %v891_v45 = vld [vmem:[#allocation2 + $0x18] sm:$0xff] }
 0x8dd   : > { %1259 = vst.msk [vmem:[#allocation2 + $0x18] sm:$0xf] %vm482_vm8, %v2356_v0  ;;  %v2696_v49 = vpack.c.bf16 %v891_v45, %v817_v28 }
 0x8de   : > { %v892_v46 = vld [vmem:[#allocation2 + $0x20] sm:$0xf] }
 0x8df   : > { %v895_v47 = vpack.c.bf16 %v892_v46, %v892_v46 }
 0x8e1   : > { %v906_v48 = vsel %vm518_vm13, %v895_v47, 0  ;;  %v900_v51 = vpop.permute.xlu1 %899 }
 0x8e2   : > { %1938 = vmatpush3.bf16.msra.mxu1 %v906_v48 }
 0x8e3   : > { %1939 = vmatprep.subr.bf16.mxu1 %v2356_v0 }
 0x8e6   : > { %1940 = vmatpush3.bf16.msra.mxu1 %v2696_v49 }
 0x8e7   : > { %1941 = vmatprep.subr.bf16.mxu1 %v2356_v0 }
 0x8ea   : > { %1942 = vmatpush3.bf16.msra.mxu1 %v2678_v32 }
 0x8eb   : > { %1957 = vmatprep.subr.bf16.mxu1 %v2356_v0 }
 0x8ed   : > { %1944 = vmatmul.mubr.msk.bf16.vlgmr.msra.gmra.mxu1 %vm2898_vm7, %v887_v50  ;;  %vm2899_vm7 = vcmask 392192  }
 0x8ee   : > { %1965 = vmatprep.mubr.msk.bf16.mxu1 %vm2359_vm2, %v2356_v0 }
 0x9ad   : > { %v942_v52 = vpop.f32.mrf.mxu1 }
 0x9ae   : > { %v943_v53 = vadd.f32 %v942_v52, %v900_v51 }
 0x9af   : > { %v1945_v54 = vpop.f32.mrf.mxu1 }
 0x9b0   : > { %v948_v55 = vmul.f32 0.2, %v943_v53  ;;  %v1199_v54 = vld [vmem:[#allocation3 + $0x4] sm:$0x3] }
 0x9b1   : > { %v945_v56 = vpop.f32.mrf.mxu1 }
 0x9b2   : > { %v949_v57 = vmax.f32 %v943_v53, %v948_v55 }
 0x9b3   : > { %v1946_v58 = vpop.f32.mrf.mxu1 }
 0x9b4   : > { %956 = vst.msk [vmem:[#allocation2 + $0x28] sm:$0xf] %vm490_vm9, %v949_v57  ;;  %952 = vrot.lane.b32.xlu1 %v949_v57, %s2358_s22  ;;  %957 = vrot.lane.b32.xlu0 %v949_v57, %s2357_s21 }
 0x9b8   : > { %976 = vperm.xlu0 %2136, %v973_v59  }
 0xa26   : > { %v953_v60 = vpop.permute.xlu1 %952  ;;  %v958_v61 = vpop.permute.xlu0 %957 }
 0xa27   : > { %955 = vst.msk [vmem:[#allocation2 + $0x24] sm:$0xf] %vm488_vm10, %v953_v60 }
 0xa28   : > { %960 = vst.msk [vmem:[#allocation2 + $0x2c] sm:$0xf] %vm495_vm11, %v958_v61 }
 0xa29   : > { %961 = vst.msk [vmem:[#allocation2 + $0x2c] sm:$0xf] %vm497_vm12, %v2356_v0 }
 0xa2e   : > { %v968_v62 = vld [vmem:[#allocation2 + $0x20] sm:$0xff] }
 0xa2f   : > { %1335 = vst.msk [vmem:[#allocation2 + $0x24] sm:$0xf] %vm482_vm8, %v2356_v0 }
 0xa30   : > { %v969_v63 = vld [vmem:[#allocation2 + $0x28] sm:$0xff] }
 0xa31   : > { %v2714_v2 = vpack.c.bf16 %v969_v63, %v968_v62  ;;  %v1281_v63 = vld [vmem:[#allocation13 + $0x34] sm:$0xf] }
 0xa33   : > { %1948 = vmatpush3.bf16.msra.mxu0 %v2714_v2  ;;  %v977_v4 = vpop.permute.xlu0 %976 }
 0xa34   : > { %1949 = vmatprep.subr.bf16.mxu0 %v2356_v0 }
 0xa37   : > { %1950 = vmatpush3.bf16.msra.mxu0 %v2696_v49 }
 0xa38   : > { %1951 = vmatprep.subr.bf16.mxu0 %v2356_v0 }
 0xa3b   : > { %1952 = vmatpush3.bf16.msra.mxu0 %v2678_v32 }
 0xa3c   : > { %1969 = vmatprep.subr.bf16.mxu0 %v2356_v0 }
 0xa3e   : > { %1954 = vmatmul.mubr.msk.bf16.vlgmr.msra.gmra.mxu0 %vm2899_vm7, %v963_v3  ;;  %vm2900_vm7 = vcmask 490496  }
 0xa3f   : > { %1979 = vmatprep.mubr.msk.bf16.mxu0 %vm2359_vm2, %v2356_v0 }
 0xafe   : > { %v1016_v5 = vpop.f32.mrf.mxu0 }
 0xaff   : > { %v1017_v6 = vadd.f32 %v1016_v5, %v977_v4 }
 0xb00   : > { %v1955_v7 = vpop.f32.mrf.mxu0 }
 0xb01   : > { %v1022_v8 = vmul.f32 0.2, %v1017_v6 }
 0xb02   : > { %v1019_v9 = vpop.f32.mrf.mxu0 }
 0xb03   : > { %v1023_v10 = vmax.f32 %v1017_v6, %v1022_v8  ;;  %v1272_v9 = vld [vmem:[#allocation5 + $0x4] sm:$0x3] }
 0xb04   : > { %v1956_v12 = vpop.f32.mrf.mxu0 }
 0xb05   : > { %1030 = vst.msk [vmem:[#allocation2 + $0x34] sm:$0xf] %vm490_vm9, %v1023_v10  ;;  %1026 = vrot.lane.b32.xlu0 %v1023_v10, %s2358_s22  ;;  %1031 = vrot.lane.b32.xlu1 %v1023_v10, %s2357_s21 }
 0xb09   : > { %1053 = vperm.xlu1 %2135, %v1050_v13  }
 0xb77   : > { %v1027_v14 = vpop.permute.xlu0 %1026  ;;  %v1032_v15 = vpop.permute.xlu1 %1031 }
 0xb78   : > { %1029 = vst.msk [vmem:[#allocation2 + $0x30] sm:$0xf] %vm488_vm10, %v1027_v14 }
 0xb79   : > { %1034 = vst.msk [vmem:[#allocation2 + $0x38] sm:$0xf] %vm495_vm11, %v1032_v15 }
 0xb7a   : > { %1035 = vst.msk [vmem:[#allocation2 + $0x38] sm:$0xf] %vm497_vm12, %v2356_v0 }
 0xb7f   : > { %v1044_v16 = vld [vmem:[#allocation2 + $0x30] sm:$0xff] }
 0xb80   : > { %1409 = vst.msk [vmem:[#allocation2 + $0x30] sm:$0xf] %vm482_vm8, %v2356_v0 }
 0xb81   : > { %v1045_v17 = vld [vmem:[#allocation2 + $0x38] sm:$0xf] }
 0xb82   : > { %v1049_v18 = vpack.c.bf16 %v1045_v17, %v1044_v16 }
 0xb84   : > { %v1060_v19 = vsel %vm673_vm15, %v1049_v18, 0  ;;  %v1054_v21 = vpop.permute.xlu1 %1053 }
 0xb85   : > { %1958 = vmatpush3.bf16.msra.mxu1 %v1060_v19  ;;  %v1358_v19 = vld [vmem:[#allocation13 + $0x38] sm:$0xf] }
 0xb86   : > { %1959 = vmatprep.subr.bf16.mxu1 %v2356_v0 }
 0xb89   : > { %1960 = vmatpush3.bf16.msra.mxu1 %v2714_v2 }
 0xb8a   : > { %1961 = vmatprep.subr.bf16.mxu1 %v2356_v0 }
 0xb8d   : > { %1962 = vmatpush3.bf16.msra.mxu1 %v2696_v49 }
 0xb8e   : > { %1963 = vmatprep.subr.bf16.mxu1 %v2356_v0 }
 0xb91   : > { %1964 = vmatpush3.bf16.msra.mxu1 %v2678_v32 }
 0xb92   : > { %1983 = vmatprep.subr.bf16.mxu1 %v2356_v0 }
 0xb94   : > { %1966 = vmatmul.mubr.msk.bf16.vlgmr.msra.gmra.mxu1 %vm2900_vm7, %v1037_v20 }
 0xb95   : > { %1987 = vmatprep.mubr.msk.bf16.mxu1 %vm2359_vm2, %v2356_v0 }
 0xc54   : > { %v1096_v22 = vpop.f32.mrf.mxu1 }
 0xc55   : > { %v1097_v24 = vadd.f32 %v1096_v22, %v1054_v21 }
 0xc56   : > { %v1967_v11 = vpop.f32.mrf.mxu1 }
 0xc57   : > { %v1102_v25 = vmul.f32 0.2, %v1097_v24 }
 0xc58   : > { %v1099_v26 = vpop.f32.mrf.mxu1 }
 0xc59   : > { %v1103_v27 = vmax.f32 %v1097_v24, %v1102_v25  ;;  %v1348_v25 = vld [vmem:[#allocation7 + $0x4] sm:$0x3] }
 0xc5a   : > { %v1968_v28 = vpop.f32.mrf.mxu1 }
 0xc5b   : > { %1110 = vst.msk [vmem:[#allocation2 + $0x40] sm:$0xf] %vm490_vm9, %v1103_v27  ;;  %1106 = vrot.lane.b32.xlu1 %v1103_v27, %s2358_s22  ;;  %1111 = vrot.lane.b32.xlu0 %v1103_v27, %s2357_s21 }
 0xc5f   : > { %1135 = vperm.xlu0 %2136, %v1132_v29  }
 0xccd   : > { %v1107_v30 = vpop.permute.xlu1 %1106  ;;  %v1112_v31 = vpop.permute.xlu0 %1111 }
 0xcce   : > { %1109 = vst.msk [vmem:[#allocation2 + $0x3c] sm:$0xf] %vm488_vm10, %v1107_v30 }
 0xccf   : > { %1114 = vst.msk [vmem:[#allocation2 + $0x44] sm:$0xf] %vm495_vm11, %v1112_v31 }
 0xcd0   : > { %1115 = vst.msk [vmem:[#allocation2 + $0x44] sm:$0xf] %vm497_vm12, %v2356_v0 }
 0xcd5   : > { %v1125_v33 = vld [vmem:[#allocation2 + $0x38] sm:$0xff] }
 0xcd6   : > { %1489 = vst.msk [vmem:[#allocation2 + $0x3c] sm:$0xf] %vm482_vm8, %v2356_v0  ;;  %v1130_v37 = vpack.c.bf16 %v1125_v33, %v1044_v16  ;;  %vm2901_vm8 = vcmask 195584  }
 0xcd7   : > { %v1126_v34 = vld [vmem:[#allocation2 + $0x40] sm:$0xff] }
 0xcd8   : > { %v1131_v35 = vpack.c.bf16 %v1126_v34, %v1126_v34 }
 0xcda   : > { %v1142_v36 = vsel %vm436_vm6, %v1131_v35, 0  ;;  %v1136_v39 = vpop.permute.xlu0 %1135  ;;  %v1435_v35 = vld [vmem:[#allocation13 + $0x3c] sm:$0xf] }
 0xcdb   : > { %1970 = vmatpush3.bf16.msra.mxu0 %v1142_v36 }
 0xcdc   : > { %1971 = vmatprep.subr.bf16.mxu0 %v2356_v0 }
 0xcdf   : > { %1972 = vmatpush3.bf16.msra.mxu0 %v1130_v37 }
 0xce0   : > { %1973 = vmatprep.subr.bf16.mxu0 %v2356_v0 }
 0xce3   : > { %1974 = vmatpush3.bf16.msra.mxu0 %v2714_v2 }
 0xce4   : > { %1975 = vmatprep.subr.bf16.mxu0 %v2356_v0 }
 0xce7   : > { %1976 = vmatpush3.bf16.msra.mxu0 %v2696_v49 }
 0xce8   : > { %1977 = vmatprep.subr.bf16.mxu0 %v2356_v0 }
 0xceb   : > { %1978 = vmatpush3.bf16.msra.mxu0 %v2678_v32  ;;  %v1205_v32 = vld [vmem:[#allocation13 + $0x30] sm:$0xf] }
 0xcec   : > { %1991 = vmatprep.subr.bf16.mxu0 %v2356_v0 }
 0xcee   : > { %1980 = vmatmul.mubr.msk.bf16.vlgmr.msra.gmra.mxu0 %vm752_vm14, %v1117_v38 }
 0xcef   : > { %1997 = vmatprep.mubr.msk.bf16.mxu0 %vm2359_vm2, %v2356_v0 }
 0xdae   : > { %v1178_v40 = vpop.f32.mrf.mxu0 }
 0xdaf   : > { %v1179_v41 = vadd.f32 %v1178_v40, %v1136_v39 }
 0xdb0   : > { %v1981_v42 = vpop.f32.mrf.mxu0 }
 0xdb1   : > { %v1184_v43 = vmul.f32 0.2, %v1179_v41  ;;  %v1422_v42 = vld [vmem:[#allocation8 + $0x4] sm:$0x3] }
 0xdb2   : > { %v1181_v44 = vpop.f32.mrf.mxu0 }
 0xdb3   : > { %v2767_v45 = vadd.f32 %v1184_v43, %v2662_v23 }
 0xdb4   : > { %v1982_v46 = vpop.f32.mrf.mxu0 }
 0xdb5   : > { %1192 = vst.msk [vmem:[#allocation2 + $0x8] sm:$0xff] %vm411_vm1, %v2767_v45  ;;  %1188 = vrot.lane.b32.xlu0 %v2767_v45, %s2358_s22  ;;  %1193 = vrot.lane.b32.xlu1 %v2767_v45, %s2357_s21 }
 0xdb9   : > { %1208 = vperm.xlu1 %2135, %v1205_v32  }
 0xdbc   : > { %v1201_v52 = vld [vmem:[#allocation2 + $0x8] sm:$0xff] }
 0xe27   : > { %v1189_v47 = vpop.permute.xlu0 %1188  ;;  %v1194_v48 = vpop.permute.xlu1 %1193 }
 0xe28   : > { %1191 = vst.msk [vmem:[#allocation2] sm:$0xff] %vm409_vm5, %v1189_v47 }
 0xe29   : > { %1196 = vst.msk [vmem:[#allocation2 + $0x10] sm:$0xff] %vm416_vm3, %v1194_v48 }
 0xe2a   : > { %1197 = vst.msk [vmem:[#allocation2 + $0x10] sm:$0xff] %vm418_vm4, %v2356_v0 }
 0xe2f   : > { %v1200_v23 = vld [vmem:[#allocation2] sm:$0xff] }
 0xe30   : > { %1573 = vst.msk [vmem:[#allocation2] sm:$0xff] %vm403_vm0, %v2356_v0  ;;  %v2783_v53 = vpack.c.bf16 %v1201_v52, %v1200_v23  ;;  %vm2902_vm0 = vcmask 293888  }
 0xe31   : > { %v1202_v49 = vld [vmem:[#allocation2 + $0x10] sm:$0xff] }
 0xe32   : > { %v1204_v50 = vpack.c.bf16 %v1202_v49, %v1202_v49 }
 0xe34   : > { %v1215_v51 = vsel %vm436_vm6, %v1204_v50, 0  ;;  %v1209_v55 = vpop.permute.xlu1 %1208  ;;  %v1517_v50 = vld [vmem:[#allocation13 + $0x40] sm:$0xff] }
 0xe35   : > { %1984 = vmatpush3.bf16.msra.mxu1 %v1215_v51 }
 0xe36   : > { %1985 = vmatprep.subr.bf16.mxu1 %v2356_v0 }
 0xe39   : > { %1986 = vmatpush3.bf16.msra.mxu1 %v2783_v53 }
 0xe3a   : > { %2001 = vmatprep.subr.bf16.mxu1 %v2356_v0 }
 0xe3c   : > { %1988 = vmatmul.mubr.msk.bf16.vlgmr.msra.gmra.mxu1 %vm2901_vm8, %v1199_v54 }
 0xe3d   : > { %2007 = vmatprep.mubr.msk.bf16.mxu1 %vm2359_vm2, %v2356_v0 }
 0xefc   : > { %v1251_v56 = vpop.f32.mrf.mxu1 }
 0xefd   : > { %v1252_v57 = vadd.f32 %v1251_v56, %v1209_v55 }
 0xefe   : > { %v1989_v58 = vpop.f32.mrf.mxu1 }
 0xeff   : > { %v1257_v59 = vmul.f32 0.2, %v1252_v57 }
 0xf00   : > { %v1254_v60 = vpop.f32.mrf.mxu1 }
 0xf01   : > { %v1258_v61 = vmax.f32 %v1252_v57, %v1257_v59  ;;  %v1502_v59 = vld [vmem:[#allocation10 + $0x8] sm:$0xf] }
 0xf02   : > { %v1990_v62 = vpop.f32.mrf.mxu1 }
 0xf03   : > { %1265 = vst.msk [vmem:[#allocation2 + $0x1c] sm:$0xf] %vm490_vm9, %v1258_v61  ;;  %1261 = vrot.lane.b32.xlu1 %v1258_v61, %s2358_s22  ;;  %1266 = vrot.lane.b32.xlu0 %v1258_v61, %s2357_s21 }
 0xf07   : > { %1284 = vperm.xlu0 %2136, %v1281_v63  }
 0xf75   : > { %v1262_v2 = vpop.permute.xlu1 %1261  ;;  %v1267_v3 = vpop.permute.xlu0 %1266 }
 0xf76   : > { %1264 = vst.msk [vmem:[#allocation2 + $0x18] sm:$0xf] %vm488_vm10, %v1262_v2 }
 0xf77   : > { %1269 = vst.msk [vmem:[#allocation2 + $0x20] sm:$0xf] %vm495_vm11, %v1267_v3 }
 0xf78   : > { %1270 = vst.msk [vmem:[#allocation2 + $0x20] sm:$0xf] %vm497_vm12, %v2356_v0 }
 0xf7d   : > { %v1276_v7 = vld [vmem:[#allocation2 + $0x18] sm:$0xff] }
 0xf7e   : > { %v2799_v8 = vpack.c.bf16 %v1276_v7, %v1202_v49 }
 0xf7f   : > { %v1277_v4 = vld [vmem:[#allocation2 + $0x20] sm:$0xf] }
 0xf80   : > { %v1280_v5 = vpack.c.bf16 %v1277_v4, %v1277_v4 }
 0xf82   : > { %v1291_v6 = vsel %vm518_vm13, %v1280_v5, 0  ;;  %v1285_v10 = vpop.permute.xlu0 %1284  ;;  %vm2903_vm13 = vcmask 392192  }
 0xf83   : > { %1992 = vmatpush3.bf16.msra.mxu0 %v1291_v6 }
 0xf84   : > { %1993 = vmatprep.subr.bf16.mxu0 %v2356_v0 }
 0xf87   : > { %1994 = vmatpush3.bf16.msra.mxu0 %v2799_v8 }
 0xf88   : > { %1995 = vmatprep.subr.bf16.mxu0 %v2356_v0 }
 0xf8b   : > { %1996 = vmatpush3.bf16.msra.mxu0 %v2783_v53 }
 0xf8c   : > { %2011 = vmatprep.subr.bf16.mxu0 %v2356_v0 }
 0xf8e   : > { %1998 = vmatmul.mubr.msk.bf16.vlgmr.msra.gmra.mxu0 %vm2902_vm0, %v1272_v9 }
 0xf8f   : > { %2019 = vmatprep.mubr.msk.bf16.mxu0 %vm2359_vm2, %v2356_v0 }
0x104e   : > { %v1327_v12 = vpop.f32.mrf.mxu0 }
0x104f   : > { %v1328_v13 = vadd.f32 %v1327_v12, %v1285_v10 }
0x1050   : > { %v1999_v14 = vpop.f32.mrf.mxu0 }
0x1051   : > { %v1333_v15 = vmul.f32 0.2, %v1328_v13 }
0x1052   : > { %v1330_v16 = vpop.f32.mrf.mxu0 }
0x1053   : > { %v1334_v17 = vmax.f32 %v1328_v13, %v1333_v15  ;;  %v1585_v16 = vld [vmem:[#allocation11] sm:$0xf] }
0x1054   : > { %v2000_v18 = vpop.f32.mrf.mxu0 }
0x1055   : > { %1341 = vst.msk [vmem:[#allocation2 + $0x28] sm:$0xf] %vm490_vm9, %v1334_v17  ;;  %1337 = vrot.lane.b32.xlu0 %v1334_v17, %s2358_s22  ;;  %1342 = vrot.lane.b32.xlu1 %v1334_v17, %s2357_s21 }
0x1059   : > { %1361 = vperm.xlu1 %2135, %v1358_v19  }
0x10c7   : > { %v1338_v20 = vpop.permute.xlu0 %1337  ;;  %v1343_v21 = vpop.permute.xlu1 %1342 }
0x10c8   : > { %1340 = vst.msk [vmem:[#allocation2 + $0x24] sm:$0xf] %vm488_vm10, %v1338_v20 }
0x10c9   : > { %1345 = vst.msk [vmem:[#allocation2 + $0x2c] sm:$0xf] %vm495_vm11, %v1343_v21 }
0x10ca   : > { %1346 = vst.msk [vmem:[#allocation2 + $0x2c] sm:$0xf] %vm497_vm12, %v2356_v0 }
0x10cf   : > { %v1353_v22 = vld [vmem:[#allocation2 + $0x20] sm:$0xff] }
0x10d1   : > { %v1354_v24 = vld [vmem:[#allocation2 + $0x28] sm:$0xff] }
0x10d2   : > { %v2815_v11 = vpack.c.bf16 %v1354_v24, %v1353_v22 }
0x10d4   : > { %2002 = vmatpush3.bf16.msra.mxu1 %v2815_v11  ;;  %v1362_v26 = vpop.permute.xlu1 %1361 }
0x10d5   : > { %2003 = vmatprep.subr.bf16.mxu1 %v2356_v0 }
0x10d8   : > { %2004 = vmatpush3.bf16.msra.mxu1 %v2799_v8 }
0x10d9   : > { %2005 = vmatprep.subr.bf16.mxu1 %v2356_v0 }
0x10dc   : > { %2006 = vmatpush3.bf16.msra.mxu1 %v2783_v53 }
0x10dd   : > { %2023 = vmatprep.subr.bf16.mxu1 %v2356_v0 }
0x10df   : > { %2008 = vmatmul.mubr.msk.bf16.vlgmr.msra.gmra.mxu1 %vm2903_vm13, %v1348_v25 }
0x10e0   : > { %2033 = vmatprep.mubr.msk.bf16.mxu1 %vm2359_vm2, %v2356_v0 }
0x119f   : > { %v1401_v27 = vpop.f32.mrf.mxu1 }
0x11a0   : > { %v1402_v28 = vadd.f32 %v1401_v27, %v1362_v26 }
0x11a1   : > { %v2009_v29 = vpop.f32.mrf.mxu1 }
0x11a2   : > { %v1407_v30 = vmul.f32 0.2, %v1402_v28 }
0x11a3   : > { %v1404_v31 = vpop.f32.mrf.mxu1 }
0x11a4   : > { %v1408_v33 = vmax.f32 %v1402_v28, %v1407_v30 }
0x11a5   : > { %v2010_v34 = vpop.f32.mrf.mxu1 }
0x11a6   : > { %1415 = vst.msk [vmem:[#allocation2 + $0x34] sm:$0xf] %vm490_vm9, %v1408_v33  ;;  %1411 = vrot.lane.b32.xlu1 %v1408_v33, %s2358_s22  ;;  %1416 = vrot.lane.b32.xlu0 %v1408_v33, %s2357_s21 }
0x11aa   : > { %1438 = vperm.xlu0 %2136, %v1435_v35  }
0x1218   : > { %v1412_v36 = vpop.permute.xlu1 %1411  ;;  %v1417_v37 = vpop.permute.xlu0 %1416 }
0x1219   : > { %1414 = vst.msk [vmem:[#allocation2 + $0x30] sm:$0xf] %vm488_vm10, %v1412_v36 }
0x121a   : > { %1419 = vst.msk [vmem:[#allocation2 + $0x38] sm:$0xf] %vm495_vm11, %v1417_v37 }
0x121b   : > { %1420 = vst.msk [vmem:[#allocation2 + $0x38] sm:$0xf] %vm497_vm12, %v2356_v0 }
0x1220   : > { %v1429_v38 = vld [vmem:[#allocation2 + $0x30] sm:$0xff] }
0x1222   : > { %v1430_v39 = vld [vmem:[#allocation2 + $0x38] sm:$0xf] }
0x1223   : > { %v1434_v40 = vpack.c.bf16 %v1430_v39, %v1429_v38 }
0x1225   : > { %v1445_v41 = vsel %vm673_vm15, %v1434_v40, 0  ;;  %v1439_v43 = vpop.permute.xlu0 %1438 }
0x1226   : > { %2012 = vmatpush3.bf16.msra.mxu0 %v1445_v41 }
0x1227   : > { %2013 = vmatprep.subr.bf16.mxu0 %v2356_v0 }
0x122a   : > { %2014 = vmatpush3.bf16.msra.mxu0 %v2815_v11 }
0x122b   : > { %2015 = vmatprep.subr.bf16.mxu0 %v2356_v0 }
0x122e   : > { %2016 = vmatpush3.bf16.msra.mxu0 %v2799_v8 }
0x122f   : > { %2017 = vmatprep.subr.bf16.mxu0 %v2356_v0 }
0x1232   : > { %2018 = vmatpush3.bf16.msra.mxu0 %v2783_v53 }
0x1233   : > { %2037 = vmatprep.subr.bf16.mxu0 %v2356_v0 }
0x1235   : > { %2020 = vmatmul.mubr.msk.bf16.vlgmr.msra.gmra.mxu0 %vm2900_vm7, %v1422_v42 }
0x1236   : > { %2041 = vmatprep.mubr.msk.bf16.mxu0 %vm2359_vm2, %v2356_v0  ;;  %vm2904_vm2 = vmmov %vm2901_vm8 }
0x12f5   : > { %v1481_v44 = vpop.f32.mrf.mxu0 }
0x12f6   : > { %v1482_v46 = vadd.f32 %v1481_v44, %v1439_v43 }
0x12f7   : > { %v2021_v32 = vpop.f32.mrf.mxu0 }
0x12f8   : > { %v1487_v47 = vmul.f32 0.2, %v1482_v46 }
0x12f9   : > { %v1484_v48 = vpop.f32.mrf.mxu0 }
0x12fa   : > { %v1488_v23 = vmax.f32 %v1482_v46, %v1487_v47 }
0x12fb   : > { %v2022_v49 = vpop.f32.mrf.mxu0 }
0x12fc   : > { %1495 = vst.msk [vmem:[#allocation2 + $0x40] sm:$0xf] %vm490_vm9, %v1488_v23  ;;  %1491 = vrot.lane.b32.xlu0 %v1488_v23, %s2358_s22  ;;  %1496 = vrot.lane.b32.xlu1 %v1488_v23, %s2357_s21 }
0x1300   : > { %1520 = vperm.xlu1 %2135, %v1517_v50  }
0x136e   : > { %v1492_v51 = vpop.permute.xlu0 %1491  ;;  %v1497_v52 = vpop.permute.xlu1 %1496 }
0x136f   : > { %1494 = vst.msk [vmem:[#allocation2 + $0x3c] sm:$0xf] %vm488_vm10, %v1492_v51 }
0x1370   : > { %1499 = vst.msk [vmem:[#allocation2 + $0x44] sm:$0xf] %vm495_vm11, %v1497_v52 }
0x1371   : > { %1500 = vst.msk [vmem:[#allocation2 + $0x44] sm:$0xf] %vm497_vm12, %v2356_v0 }
0x1376   : > { %v1510_v57 = vld [vmem:[#allocation2 + $0x38] sm:$0xff] }
0x1377   : > { %v1515_v58 = vpack.c.bf16 %v1510_v57, %v1429_v38 }
0x1378   : > { %v1511_v54 = vld [vmem:[#allocation2 + $0x40] sm:$0xff] }
0x1379   : > { %v1516_v55 = vpack.c.bf16 %v1511_v54, %v1511_v54 }
0x137b   : > { %v1527_v56 = vsel %vm436_vm6, %v1516_v55, 0  ;;  %v1521_v60 = vpop.permute.xlu1 %1520 }
0x137c   : > { %2024 = vmatpush3.bf16.msra.mxu1 %v1527_v56 }
0x137d   : > { %2025 = vmatprep.subr.bf16.mxu1 %v2356_v0 }
0x1380   : > { %2026 = vmatpush3.bf16.msra.mxu1 %v1515_v58 }
0x1381   : > { %2027 = vmatprep.subr.bf16.mxu1 %v2356_v0 }
0x1384   : > { %2028 = vmatpush3.bf16.msra.mxu1 %v2815_v11 }
0x1385   : > { %2029 = vmatprep.subr.bf16.mxu1 %v2356_v0 }
0x1388   : > { %2030 = vmatpush3.bf16.msra.mxu1 %v2799_v8 }
0x1389   : > { %2031 = vmatprep.subr.bf16.mxu1 %v2356_v0 }
0x138c   : > { %2032 = vmatpush3.bf16.msra.mxu1 %v2783_v53  ;;  %v1591_v53 = vld [vmem:[#allocation13 + $0x48] sm:$0xff] }
0x138f   : > { %2034 = vmatmul.mubr.msk.bf16.vlgmr.msra.gmra.mxu1 %vm752_vm14, %v1502_v59 }
0x144f   : > { %v1563_v61 = vpop.f32.mrf.mxu1 }
0x1450   : > { %v1564_v62 = vadd.f32 %v1563_v61, %v1521_v60 }
0x1451   : > { %v2035_v63 = vpop.f32.mrf.mxu1 }
0x1452   : > { %v1569_v2 = vmul.f32 0.2, %v1564_v62 }
0x1453   : > { %v1566_v3 = vpop.f32.mrf.mxu1 }
0x1454   : > { %v1570_v4 = vadd.f32 %v1569_v2, %v2767_v45 }
0x1455   : > { %v2036_v5 = vpop.f32.mrf.mxu1 }
0x1456   : > { %v1571_v6 = vmul.f32 0.2, %v1570_v4 }
0x1458   : > { %v1572_v7 = vadd.f32 %v1571_v6, %v2545_v1 }
0x145a   : > { %1575 = vrot.lane.b32.xlu1 %v1572_v7, %s2358_s22  ;;  %1579 = vst.msk [vmem:[#allocation2 + $0x8] sm:$0xff] %vm411_vm1, %v1572_v7  ;;  %1580 = vrot.lane.b32.xlu0 %v1572_v7, %s2357_s21 }
0x145e   : > { %1594 = vperm.xlu0 %2136, %v1591_v53  }
0x1461   : > { %v1587_v14 = vld [vmem:[#allocation2 + $0x8] sm:$0xff] }
0x14cc   : > { %v1576_v8 = vpop.permute.xlu1 %1575  ;;  %v1581_v9 = vpop.permute.xlu0 %1580 }
0x14cd   : > { %1578 = vst.msk [vmem:[#allocation2] sm:$0xff] %vm409_vm5, %v1576_v8 }
0x14ce   : > { %1583 = vst.msk [vmem:[#allocation2 + $0x10] sm:$0xff] %vm416_vm3, %v1581_v9 }
0x14cf   : > { %1584 = vst.msk [vmem:[#allocation2 + $0x10] sm:$0xff] %vm418_vm4, %v2356_v0 }
0x14d4   : > { %v1586_v13 = vld [vmem:[#allocation2] sm:$0xff] }
0x14d5   : > { %v1589_v15 = vpack.c.bf16 %v1587_v14, %v1586_v13 }
0x14d6   : > { %v1588_v45 = vld [vmem:[#allocation2 + $0x10] sm:$0xff] }
0x14d7   : > { %v1590_v10 = vpack.c.bf16 %v1588_v45, %v1588_v45 }
0x14d9   : > { %v1601_v12 = vsel %vm436_vm6, %v1590_v10, 0  ;;  %v1595_v17 = vpop.permute.xlu0 %1594 }
0x14da   : > { %2038 = vmatpush3.bf16.msra.mxu0 %v1601_v12 }
0x14db   : > { %2039 = vmatprep.subr.bf16.mxu0 %v2356_v0 }
0x14de   : > { %2040 = vmatpush3.bf16.msra.mxu0 %v1589_v15 }
0x14e1   : > { %2042 = vmatmul.mubr.msk.bf16.vlgmr.msra.gmra.mxu0 %vm2904_vm2, %v1585_v16 }
0x15a1   : > { %v1637_v18 = vpop.f32.mrf.mxu0 }
0x15a2   : > { %v1638_v19 = vadd.f32 %v1637_v18, %v1595_v17 }
0x15a3   : > { %v2043_v20 = vpop.f32.mrf.mxu0 }
0x15a4   : > { %v1643_v21 = vadd.f32 %v1638_v19, %v2545_v1 }
0x15a5   : > { %v1640_v22 = vpop.f32.mrf.mxu0 }
0x15a6   : > { %1644 = vst.msk [vmem:[%s400_s24] sm:$0xff] %vm411_vm1, %v1643_v21 }
0x15a7   : > { %v2044_v0 = vpop.f32.mrf.mxu0 }
0x15a8 PF: > { %s22_s27 = sadd.s32 1, %s2341_s27  }
0x15a9   : > { %p19_p2 = scmp.ge.s32.totalorder %s22_s27, 4  }
0x15ab   :  { %21 = sbr.rel (!%p19_p2) target bundleno = 4 (0x4), region = 121 }
0x15b0   :  { %1664 = vsyncpa [#allocation4], 1 }
0x15b1   :  { %1666 = vsyncpa [#allocation4 + $0x1], 1 }
0x15b2   :  { %1667 = vsyncpa [#allocation6], 1 }
0x15b3   :  { %1668 = vsyncpa [#allocation9], 1 }
0x15b4   :  { %1669 = vsyncpa [#allocation12], 1 }

// kernel: _lambda_.12
= control target key start
LH: loop header
LB: loop body
LE: loop exit
PB: predicated region body
PF: predicated region fallthrough
CT: control target
= control target key end

     0   :  { %s392_s12 = smov 0   ;;  %s424_s0 = inlined_call_operand.vmem [shape: f32[2,8,256], index: 0, kind: input, shape index: {}]   ;;  %s425_s1 = inlined_call_operand.vmem [shape: bf16[8,24], index: 1, kind: input, shape index: {}]   ;;  %s426_s2 = inlined_call_operand.vmem [shape: f32[8,1], index: 2, kind: input, shape index: {}]   ;;  %s427_s3 = inlined_call_operand.vmem [shape: f32[2,8,256], index: 3, kind: output, shape index: {}]  }
   0x1 LB: > { %s332_s13 = sadd.s32 4294967295, %s366_s12   ;;  %p336_p0 = scmp.ge.s32.totalorder %s366_s12, 1  ;;  %s366_s12 = sphi %s392_s12, %s13_s12  }
   0x2   : > { %p137_p1 = scmp.lt.s32.totalorder %s366_s12, 3 }
   0x4   : > { %p138_p2 = pnand %p336_p0, %p137_p1 }
   0x5   : > { %p161_p3 = scmp.lt.s32.totalorder (!%p138_p2), %s332_s13, 1  ;;  %s369_s18 = smov (!%p138_p2), 1  }
   0x6   : > { %141 = sbr.rel (%p138_p2) target bundleno = 355 (0x163), region = 32  ;;  %s370_s19 = smov (!%p138_p2), 127  }
   0xb   : > { %vm174_vm0 = vcmask 7168   ;;  %v368_v0 = vmov 0.0   ;;  %s429_s13 = smov (!%p161_p3, %s332_s13), 1  ;;  %v371_v3 = vmov 0   ;;  %v213_v4 = vld [vmem:[%s426_s2] sm:$0xff]  ;;  %vm185_vm1 = vcmask 1047560  }
   0xc   : > { %175 = vst.msk [vmem:[#allocation2] sm:$0xff] %vm174_vm0, %v368_v0  ;;  %s345_s14 = sshll.u32 %s429_s13, 4  ;;  %262 = vmatprep.mubr.bf16.mxu0 %v371_v3  ;;  %359 = vset.pattern.permute.xlu0 %v371_v3  ;;  %vm194_vm2 = vcmask 1039360   ;;  %vm200_vm3 = vcmask 1048568   ;;  %vm223_vm4 = vcmask 1043456   ;;  %vm219_vm5 = vcmask 195584  }
   0xd   : > { %s165_s17 = scalar_lea.vmem %s424_s0, %s345_s14  ;;  %v202_v18 = vld [vmem:[%s425_s1] sm:$0xf]  ;;  %s170_s26 = scalar_lea.vmem %s427_s3, %s345_s14 }
   0xe   : > { %v172_v1 = vld [vmem:[%s165_s17] sm:$0xff]  ;;  %v173_v2 = vld [vmem:[%s165_s17 + $0x8] sm:$0xff] }
   0xf   : > { %178 = vrot.lane.b32.xlu1 %v172_v1, %s369_s18  ;;  %190 = vrot.lane.b32.xlu0 %v172_v1, %s370_s19 }
  0x13   : > { %180 = vrot.lane.b32.xlu1 %v173_v2, %s369_s18  ;;  %192 = vrot.lane.b32.xlu0 %v173_v2, %s370_s19 }
  0x17   : > { %216 = vperm.xlu0 %359, %v213_v4  }
  0x81   : > { %v179_v5 = vpop.permute.xlu1 %178  ;;  %v191_v6 = vpop.permute.xlu0 %190 }
  0x82   : > { %186 = vst.msk [vmem:[#allocation2] sm:$0xff] %vm185_vm1, %v179_v5 }
  0x85   : > { %v181_v7 = vpop.permute.xlu1 %180  ;;  %v193_v8 = vpop.permute.xlu0 %192 }
  0x86   : > { %v182_v9 = vsel %vm174_vm0, %v179_v5, %v181_v7  ;;  %v195_v10 = vsel %vm194_vm2, %v191_v6, %v193_v8  ;;  %199 = vst.msk [vmem:[#allocation2 + $0x28] sm:$0xff] %vm194_vm2, %v193_v8 }
  0x87   : > { %201 = vst.msk [vmem:[#allocation2 + $0x28] sm:$0xff] %vm200_vm3, %v368_v0  ;;  %v211_v11 = vpack.c.bf16 %v195_v10, %v195_v10  ;;  %v210_v16 = vpack.c.bf16 %v173_v2, %v182_v9 }
  0x89   : > { %v203_v14 = vld [vmem:[#allocation2] sm:$0xff]  ;;  %v225_v15 = vsel %vm223_vm4, %v211_v11, 0 }
  0x8a   : > { %v209_v17 = vpack.c.bf16 %v172_v1, %v203_v14 }
  0x8e   : > { %v208_v12 = vld [vmem:[#allocation2 + $0x28] sm:$0xff] }
  0x8f   : > { %v212_v13 = vpack.c.bf16 %v208_v12, %v208_v12 }
  0x91   : > { %341 = vmatprep.subr.msk.bf16.mxu0 %vm223_vm4, %v212_v13 }
  0x92   : > { %243 = vmatpush1.bf16.msra.mxu0 %v225_v15  ;;  %v217_v19 = vpop.permute.xlu0 %216 }
  0x93   : > { %244 = vmatprep.subr.bf16.mxu0 %v210_v16 }
  0x96   : > { %245 = vmatpush1.bf16.msra.mxu0 %v209_v17 }
  0x99   : > { %342 = vmatmul.mubr.msk.bf16.vlgmr.msra.gmra.mxu0 %vm219_vm5, %v202_v18 }
 0x159   : > { %v264_v20 = vpop.f32.mrf.mxu0 }
 0x15a   : > { %v265_v21 = vadd.f32 %v264_v20, %v217_v19 }
 0x15b   : > { %v266_v22 = vpop.f32.mrf.mxu0 }
 0x15c   : > { %v271_v23 = vmul.f32 0.2, %v265_v21  ;;  %v267_v24 = vadd.f32 %v266_v22, %v217_v19 }
 0x15d   : > { %v268_v25 = vpop.f32.mrf.mxu0 }
 0x15e   : > { %v273_v26 = vmax.f32 %v265_v21, %v271_v23  ;;  %v272_v27 = vmul.f32 0.2, %v267_v24 }
 0x15f   : > { %v269_v28 = vpop.f32.mrf.mxu0 }
 0x160   : > { %275 = vst [vmem:[%s170_s26] sm:$0xff] %v273_v26  ;;  %v274_v29 = vmax.f32 %v267_v24, %v272_v27 }
 0x162   : > { %276 = vst [vmem:[%s170_s26 + $0x8] sm:$0xff] %v274_v29 }
 0x163 PF: > { %s13_s12 = sadd.s32 1, %s366_s12  }
 0x164   : > { %p10_p4 = scmp.ge.s32.totalorder %s13_s12, 4  }
 0x166   :  { %12 = sbr.rel (!%p10_p4) target bundleno = 1 (0x1), region = 62 }

// kernel: _lambda_.13
= control target key start
LH: loop header
LB: loop body
LE: loop exit
PB: predicated region body
PF: predicated region fallthrough
CT: control target
= control target key end

     0   :  { %11 = vsyncpa [#allocation4], 0  ;;  %s2054_s0 = inlined_call_operand.vmem [shape: f32[2,8,256], index: 0, kind: input, shape index: {}]   ;;  %s2055_s1 = inlined_call_operand.vmem [shape: bf16[8,24], index: 1, kind: input, shape index: {}]   ;;  %s2056_s2 = inlined_call_operand.vmem [shape: f32[8,1], index: 2, kind: input, shape index: {}]   ;;  %s2057_s3 = inlined_call_operand.vmem [shape: bf16[8,24], index: 3, kind: input, shape index: {}]   ;;  %s2058_s4 = inlined_call_operand.vmem [shape: f32[8,1], index: 4, kind: input, shape index: {}]   ;;  %s2059_s5 = inlined_call_operand.vmem [shape: f32[256,841], index: 5, kind: input, shape index: {}]   ;;  %s2060_s6 = inlined_call_operand.hbm [shape: f32[2,8,841], index: 6, kind: output, shape index: {}]  }
   0x1   :  { %13 = vsyncpa [#allocation4 + $0x1], 0  ;;  %s1231_s21 = smov 0   ;;  %s1233_s22 = smov 0  }
   0x2   :  { %s1235_s23 = smov 0   ;;  %s1237_s24 = smov 0  }
   0x3 LB: > { %s1252_s25 = sadd.s32 4294967295, %s1189_s24   ;;  %s1034_s26 = sadd.s32 4294967294, %s1189_s24   ;;  %s1189_s24 = sphi %s1237_s24, %s2066_s24   ;;  %s1185_s23 = sphi %s1235_s23, %s2065_s23   ;;  %s1181_s22 = sphi %s1233_s22, %s2064_s22   ;;  %s1177_s21 = sphi %s1231_s21, %s2063_s21  }
   0x4   : > { %s1256_s27 = sadd.s32 1, %s1189_s24   ;;  %s157_s28 = sadd.s32 1, %s1185_s23 }
   0x5   : > { %s154_s29 = ssub.s32 %s1189_s24, %s1256_s27  ;;  %p167_p0 = scmp.ne.s32.totalorder %s1185_s23, %s1181_s22 }
   0x6   : > { %p155_p1 = scmp.eq.s32.totalorder %s154_s29, 0  ;;  %p168_p2 = scmp.eq.s32.totalorder %s1252_s25, 1 }
   0x7   : > { %p173_p3 = scmp.ne.s32.totalorder %s1181_s22, %s1177_s21  ;;  %p174_p4 = scmp.eq.s32.totalorder %s1034_s26, 1 }
   0x8   : > { %s1267_s30 = scalar_select %p155_p1, %s1185_s23, %s157_s28  }
   0x9   : > { %p1269_p5 = por %p168_p2, %p167_p0  ;;  %p1273_p6 = por %p174_p4, %p173_p3 }
   0xa   : > { %p1037_p7 = scmp.ge.s32.totalorder %s1189_s24, 1  ;;  %p215_p8 = scmp.lt.s32.totalorder %s1189_s24, 3 }
   0xc   : > { %p216_p9 = pnand %p1037_p7, %p215_p8 }
   0xd   : > { %p245_p10 = scmp.lt.s32.totalorder (!%p216_p9), %s1252_s25, 1  ;;  %s1192_s14 = smov (!%p216_p9), 1  }
   0xe   : > { %219 = sbr.rel (%p216_p9) target bundleno = 970 (0x3ca), region = 44  ;;  %s1193_s15 = smov (!%p216_p9), 127  }
   0xf   : > { %s242_s28 = sand.u32 (!%p216_p9), 1, %s1181_s22   ;;  %s1195_s17 = smov (!%p216_p9), [#allocation3]  }
  0x10   : > { %s1083_s29 = smul.u32 (!%p216_p9), 56, %s242_s28  ;;  %s1133_s18 = sshll.u32 (!%p216_p9), %s1195_s17, 4  ;;  %s1134_s18 = int_to_ptr.vmem [resolvable:$false] %s1133_s18 }
  0x13   : > { %vm253_vm0 = vcmask 7168   ;;  %v1191_v0 = vmov 0.0   ;;  %s246_s9 = scalar_select %p245_p10, %s1252_s25, 1  ;;  %v1194_v3 = vmov 0   ;;  %v292_v4 = vld [vmem:[%s2056_s2] sm:$0xff]  ;;  %vm264_vm1 = vcmask 1047560  }
  0x14   : > { %254 = vst.msk [vmem:[#allocation2] sm:$0xff] %vm253_vm0, %v1191_v0  ;;  %341 = vmatprep.mubr.bf16.mxu1 %v1194_v3  ;;  %1128 = vset.pattern.permute.xlu0 %v1194_v3  ;;  %vm273_vm2 = vcmask 1039360   ;;  %vm279_vm3 = vcmask 1048568   ;;  %vm302_vm4 = vcmask 1043456   ;;  %v281_v18 = vld [vmem:[%s2055_s1] sm:$0xf] }
  0x15   : > { %s1047_s10 = sshll.u32 %s246_s9, 4  ;;  %vm298_vm5 = vcmask 195584   ;;  %v389_v30 = vld [vmem:[%s2058_s4] sm:$0xff]  ;;  %v551_v31 = vld [vmem:[%s2059_s5 + $0x350] sm:$0xff]  ;;  %v550_v32 = vld [vmem:[%s2059_s5 + $0x348] sm:$0xff]  ;;  %s244_s9 = scalar_lea.vmem [#allocation3], %s1083_s29 }
  0x16   : > { %s249_s13 = scalar_lea.vmem %s2054_s0, %s1047_s10  ;;  %669 = vmatprep.subr.mxu0 %v551_v31  ;;  %v544_v33 = vld [vmem:[%s2059_s5 + $0x318] sm:$0xff]  ;;  %v543_v34 = vld [vmem:[%s2059_s5 + $0x310] sm:$0xff]  ;;  %v537_v35 = vld [vmem:[%s2059_s5 + $0x2e0] sm:$0xff]  ;;  %vm958_vm6 = vcmask 596992   ;;  %s1084_s10 = smul.u32 896, %s1252_s25 }
  0x17   : > { %v251_v1 = vld [vmem:[%s249_s13] sm:$0xff]  ;;  %v252_v2 = vld [vmem:[%s249_s13 + $0x8] sm:$0xff]  ;;  %670 = vmatpush1.msra.mxu0 %v550_v32  ;;  %v536_v36 = vld [vmem:[%s2059_s5 + $0x2d8] sm:$0xff]  ;;  %s975_s11 = sshll.u32 %s244_s9, 4  ;;  %s1135_s25 = scalar_lea.vmem %s1134_s18, 1792  ;;  %s976_s11 = int_to_ptr.vmem [resolvable:$true] %s975_s11 }
  0x18   : > { %257 = vrot.lane.b32.xlu1 %v251_v1, %s1192_s14  ;;  %269 = vrot.lane.b32.xlu0 %v251_v1, %s1193_s15  ;;  %v530_v37 = vld [vmem:[%s2059_s5 + $0x2a8] sm:$0xff]  ;;  %v529_v38 = vld [vmem:[%s2059_s5 + $0x2a0] sm:$0xff]  ;;  %s2019_s16 = scalar_lea.hbm %s2060_s6, %s1084_s10  ;;  %p1136_p0 = scmp.lt.s32.totalorder %s976_s11, %s1134_s18 }
  0x19   : > { %671 = vmatprep.subr.mxu0 %v544_v33  ;;  %v523_v39 = vld [vmem:[%s2059_s5 + $0x270] sm:$0xff]  ;;  %v522_v40 = vld [vmem:[%s2059_s5 + $0x268] sm:$0xff]  ;;  %v516_v41 = vld [vmem:[%s2059_s5 + $0x238] sm:$0xff] }
  0x1a   : > { %672 = vmatpush1.msra.mxu0 %v543_v34  ;;  %v515_v42 = vld [vmem:[%s2059_s5 + $0x230] sm:$0xff]  ;;  %v509_v43 = vld [vmem:[%s2059_s5 + $0x200] sm:$0xff]  ;;  %v508_v44 = vld [vmem:[%s2059_s5 + $0x1f8] sm:$0xff] }
  0x1b   : > { %673 = vmatprep.subr.mxu0 %v537_v35  ;;  %v502_v45 = vld [vmem:[%s2059_s5 + $0x1c8] sm:$0xff]  ;;  %v501_v46 = vld [vmem:[%s2059_s5 + $0x1c0] sm:$0xff]  ;;  %v495_v47 = vld [vmem:[%s2059_s5 + $0x190] sm:$0xff] }
  0x1c   : > { %259 = vrot.lane.b32.xlu1 %v252_v2, %s1192_s14  ;;  %271 = vrot.lane.b32.xlu0 %v252_v2, %s1193_s15  ;;  %v494_v48 = vld [vmem:[%s2059_s5 + $0x188] sm:$0xff]  ;;  %v488_v49 = vld [vmem:[%s2059_s5 + $0x158] sm:$0xff] }
  0x1d   : > { %674 = vmatpush1.msra.mxu0 %v536_v36  ;;  %v487_v50 = vld [vmem:[%s2059_s5 + $0x150] sm:$0xff]  ;;  %v481_v51 = vld [vmem:[%s2059_s5 + $0x120] sm:$0xff]  ;;  %v480_v52 = vld [vmem:[%s2059_s5 + $0x118] sm:$0xff] }
  0x1e   : > { %675 = vmatprep.subr.mxu0 %v530_v37  ;;  %v474_v53 = vld [vmem:[%s2059_s5 + $0xe8] sm:$0xff]  ;;  %v473_v54 = vld [vmem:[%s2059_s5 + $0xe0] sm:$0xff]  ;;  %v467_v55 = vld [vmem:[%s2059_s5 + $0xb0] sm:$0xff] }
  0x1f   : > { %676 = vmatpush1.msra.mxu0 %v529_v38  ;;  %v466_v56 = vld [vmem:[%s2059_s5 + $0xa8] sm:$0xff]  ;;  %v460_v57 = vld [vmem:[%s2059_s5 + $0x78] sm:$0xff]  ;;  %v459_v58 = vld [vmem:[%s2059_s5 + $0x70] sm:$0xff] }
  0x20   : > { %295 = vperm.xlu0 %1128, %v292_v4   ;;  %677 = vmatprep.subr.mxu0 %v523_v39  ;;  %v453_v59 = vld [vmem:[%s2059_s5 + $0x40] sm:$0xff]  ;;  %v452_v60 = vld [vmem:[%s2059_s5 + $0x38] sm:$0xff]  ;;  %v446_v61 = vld [vmem:[%s2059_s5 + $0x8] sm:$0xff] }
  0x21   : > { %678 = vmatpush1.msra.mxu0 %v522_v40  ;;  %v445_v62 = vld [vmem:[%s2059_s5] sm:$0xff]  ;;  %v663_v63 = vld [vmem:[%s2059_s5 + $0x6d0] sm:$0xff] }
  0x22   : > { %679 = vmatprep.subr.mxu0 %v516_v41  ;;  %v649_v4 = vld [vmem:[%s2059_s5 + $0x660] sm:$0xff] }
  0x23   : > { %680 = vmatpush1.msra.mxu0 %v515_v42  ;;  %v378_v42 = vld [vmem:[%s2057_s3] sm:$0xf] }
  0x24   : > { %681 = vmatprep.subr.mxu0 %v509_v43  ;;  %v552_v43 = vld [vmem:[%s2059_s5 + $0x358] sm:$0xff] }
  0x25   : > { %682 = vmatpush1.msra.mxu0 %v508_v44  ;;  %v539_v44 = vld [vmem:[%s2059_s5 + $0x2f0] sm:$0xff] }
  0x26   : > { %683 = vmatprep.subr.mxu0 %v502_v45  ;;  %v538_v45 = vld [vmem:[%s2059_s5 + $0x2e8] sm:$0xff] }
  0x27   : > { %684 = vmatpush1.msra.mxu0 %v501_v46  ;;  %v532_v46 = vld [vmem:[%s2059_s5 + $0x2b8] sm:$0xff] }
  0x28   : > { %685 = vmatprep.subr.mxu0 %v495_v47  ;;  %v531_v47 = vld [vmem:[%s2059_s5 + $0x2b0] sm:$0xff] }
  0x29   : > { %686 = vmatpush1.msra.mxu0 %v494_v48  ;;  %v525_v48 = vld [vmem:[%s2059_s5 + $0x280] sm:$0xff] }
  0x2a   : > { %687 = vmatprep.subr.mxu0 %v488_v49  ;;  %v524_v49 = vld [vmem:[%s2059_s5 + $0x278] sm:$0xff] }
  0x2b   : > { %688 = vmatpush1.msra.mxu0 %v487_v50  ;;  %v518_v50 = vld [vmem:[%s2059_s5 + $0x248] sm:$0xff] }
  0x2c   : > { %689 = vmatprep.subr.mxu0 %v481_v51  ;;  %v517_v51 = vld [vmem:[%s2059_s5 + $0x240] sm:$0xff] }
  0x2d   : > { %690 = vmatpush1.msra.mxu0 %v480_v52  ;;  %v511_v52 = vld [vmem:[%s2059_s5 + $0x210] sm:$0xff] }
  0x2e   : > { %691 = vmatprep.subr.mxu0 %v474_v53  ;;  %v510_v53 = vld [vmem:[%s2059_s5 + $0x208] sm:$0xff] }
  0x2f   : > { %692 = vmatpush1.msra.mxu0 %v473_v54  ;;  %v504_v54 = vld [vmem:[%s2059_s5 + $0x1d8] sm:$0xff] }
  0x30   : > { %693 = vmatprep.subr.mxu0 %v467_v55  ;;  %v503_v55 = vld [vmem:[%s2059_s5 + $0x1d0] sm:$0xff] }
  0x31   : > { %694 = vmatpush1.msra.mxu0 %v466_v56  ;;  %v497_v56 = vld [vmem:[%s2059_s5 + $0x1a0] sm:$0xff] }
  0x32   : > { %695 = vmatprep.subr.mxu0 %v460_v57  ;;  %v496_v57 = vld [vmem:[%s2059_s5 + $0x198] sm:$0xff] }
  0x33   : > { %696 = vmatpush1.msra.mxu0 %v459_v58  ;;  %v490_v58 = vld [vmem:[%s2059_s5 + $0x168] sm:$0xff] }
  0x34   : > { %697 = vmatprep.subr.mxu0 %v453_v59  ;;  %v489_v59 = vld [vmem:[%s2059_s5 + $0x160] sm:$0xff] }
  0x35   : > { %698 = vmatpush1.msra.mxu0 %v452_v60  ;;  %v483_v60 = vld [vmem:[%s2059_s5 + $0x130] sm:$0xff] }
  0x36   : > { %699 = vmatprep.subr.mxu0 %v446_v61  ;;  %v482_v61 = vld [vmem:[%s2059_s5 + $0x128] sm:$0xff] }
  0x37   : > { %700 = vmatpush1.msra.mxu0 %v445_v62  ;;  %v476_v62 = vld [vmem:[%s2059_s5 + $0xf8] sm:$0xff] }
  0x38   : > { %701 = vmatprep.subr.mxu0 %v663_v63  ;;  %v475_v63 = vld [vmem:[%s2059_s5 + $0xf0] sm:$0xff] }
  0x8a   : > { %v258_v5 = vpop.permute.xlu1 %257  ;;  %v270_v6 = vpop.permute.xlu0 %269 }
  0x8b   : > { %265 = vst.msk [vmem:[#allocation2] sm:$0xff] %vm264_vm1, %v258_v5 }
  0x8e   : > { %v272_v7 = vpop.permute.xlu0 %271  ;;  %v260_v10 = vpop.permute.xlu1 %259 }
  0x8f   : > { %278 = vst.msk [vmem:[#allocation2 + $0x28] sm:$0xff] %vm273_vm2, %v272_v7  ;;  %v274_v9 = vsel %vm273_vm2, %v270_v6, %v272_v7  ;;  %v261_v12 = vsel %vm253_vm0, %v258_v5, %v260_v10  ;;  %v648_v5 = vld [vmem:[%s2059_s5 + $0x658] sm:$0xff]  ;;  %v642_v6 = vld [vmem:[%s2059_s5 + $0x628] sm:$0xff]  ;;  %v641_v7 = vld [vmem:[%s2059_s5 + $0x620] sm:$0xff] }
  0x90   : > { %280 = vst.msk [vmem:[#allocation2 + $0x28] sm:$0xff] %vm279_vm3, %v1191_v0  ;;  %v290_v11 = vpack.c.bf16 %v274_v9, %v274_v9  ;;  %v289_v16 = vpack.c.bf16 %v252_v2, %v261_v12  ;;  %v656_v2 = vld [vmem:[%s2059_s5 + $0x698] sm:$0xff]  ;;  %v634_v9 = vld [vmem:[%s2059_s5 + $0x5e8] sm:$0xff]  ;;  %v621_v12 = vld [vmem:[%s2059_s5 + $0x580] sm:$0xff] }
  0x91   : > { %v628_v10 = vld [vmem:[%s2059_s5 + $0x5b8] sm:$0xff] }
  0x92   : > { %v282_v8 = vld [vmem:[#allocation2] sm:$0xff]  ;;  %v304_v15 = vsel %vm302_vm4, %v290_v11, 0  ;;  %v627_v11 = vld [vmem:[%s2059_s5 + $0x5b0] sm:$0xff] }
  0x93   : > { %354 = vst.msk [vmem:[#allocation2] sm:$0xff] %vm253_vm0, %v1191_v0  ;;  %v288_v17 = vpack.c.bf16 %v251_v1, %v282_v8  ;;  %v662_v1 = vld [vmem:[%s2059_s5 + $0x6c8] sm:$0xff]  ;;  %v635_v8 = vld [vmem:[%s2059_s5 + $0x5f0] sm:$0xff] }
  0x94   : > { %702 = vmatpush2.msra.mxu0 %v662_v1  ;;  %v469_v1 = vld [vmem:[%s2059_s5 + $0xc0] sm:$0xff] }
  0x95   : > { %703 = vmatprep.subr.mxu0 %v656_v2  ;;  %v468_v2 = vld [vmem:[%s2059_s5 + $0xb8] sm:$0xff] }
  0x97   : > { %v287_v13 = vld [vmem:[#allocation2 + $0x28] sm:$0xff] }
  0x98   : > { %v291_v14 = vpack.c.bf16 %v287_v13, %v287_v13  ;;  %v620_v13 = vld [vmem:[%s2059_s5 + $0x578] sm:$0xff] }
  0x9a   : > { %1040 = vmatprep.subr.msk.bf16.mxu1 %vm302_vm4, %v291_v14  ;;  %v614_v14 = vld [vmem:[%s2059_s5 + $0x548] sm:$0xff] }
  0x9b   : > { %322 = vmatpush1.bf16.msra.mxu1 %v304_v15  ;;  %v296_v19 = vpop.permute.xlu0 %295  ;;  %v613_v15 = vld [vmem:[%s2059_s5 + $0x540] sm:$0xff] }
  0x9c   : > { %323 = vmatprep.subr.bf16.mxu1 %v289_v16  ;;  %v607_v16 = vld [vmem:[%s2059_s5 + $0x510] sm:$0xff] }
  0x9f   : > { %324 = vmatpush1.bf16.msra.mxu1 %v288_v17  ;;  %v606_v17 = vld [vmem:[%s2059_s5 + $0x508] sm:$0xff] }
  0xa2   : > { %1041 = vmatmul.mubr.msk.bf16.vlgmr.msra.gmra.mxu1 %vm298_vm5, %v281_v18  ;;  %v600_v18 = vld [vmem:[%s2059_s5 + $0x4d8] sm:$0xff] }
  0xa3   : > { %436 = vmatprep.mubr.bf16.mxu1 %v1194_v3  ;;  %v655_v3 = vld [vmem:[%s2059_s5 + $0x690] sm:$0xff] }
  0xa4   : > { %704 = vmatpush2.msra.mxu0 %v655_v3  ;;  %v462_v3 = vld [vmem:[%s2059_s5 + $0x88] sm:$0xff] }
  0xa5   : > { %705 = vmatprep.subr.mxu0 %v649_v4  ;;  %v461_v4 = vld [vmem:[%s2059_s5 + $0x80] sm:$0xff] }
  0xa6   : > { %706 = vmatpush2.msra.mxu0 %v648_v5  ;;  %v455_v5 = vld [vmem:[%s2059_s5 + $0x50] sm:$0xff] }
  0xa7   : > { %707 = vmatprep.subr.mxu0 %v642_v6  ;;  %v454_v6 = vld [vmem:[%s2059_s5 + $0x48] sm:$0xff] }
  0xa8   : > { %708 = vmatpush2.msra.mxu0 %v641_v7  ;;  %v448_v7 = vld [vmem:[%s2059_s5 + $0x18] sm:$0xff] }
  0xa9   : > { %709 = vmatprep.subr.mxu0 %v635_v8  ;;  %v447_v8 = vld [vmem:[%s2059_s5 + $0x10] sm:$0xff] }
  0xaa   : > { %710 = vmatpush2.msra.mxu0 %v634_v9  ;;  %v665_v9 = vld [vmem:[%s2059_s5 + $0x6e0] sm:$0xff] }
  0xab   : > { %711 = vmatprep.subr.mxu0 %v628_v10  ;;  %v664_v10 = vld [vmem:[%s2059_s5 + $0x6d8] sm:$0xff] }
  0xac   : > { %712 = vmatpush2.msra.mxu0 %v627_v11  ;;  %v658_v11 = vld [vmem:[%s2059_s5 + $0x6a8] sm:$0xff] }
  0xad   : > { %713 = vmatprep.subr.mxu0 %v621_v12  ;;  %v657_v12 = vld [vmem:[%s2059_s5 + $0x6a0] sm:$0xff] }
  0xae   : > { %714 = vmatpush2.msra.mxu0 %v620_v13  ;;  %v651_v13 = vld [vmem:[%s2059_s5 + $0x670] sm:$0xff] }
  0xaf   : > { %715 = vmatprep.subr.mxu0 %v614_v14  ;;  %v650_v14 = vld [vmem:[%s2059_s5 + $0x668] sm:$0xff] }
  0xb0   : > { %716 = vmatpush2.msra.mxu0 %v613_v15  ;;  %v644_v15 = vld [vmem:[%s2059_s5 + $0x638] sm:$0xff] }
  0xb1   : > { %717 = vmatprep.subr.mxu0 %v607_v16  ;;  %v643_v16 = vld [vmem:[%s2059_s5 + $0x630] sm:$0xff] }
  0xb2   : > { %718 = vmatpush2.msra.mxu0 %v606_v17  ;;  %v637_v17 = vld [vmem:[%s2059_s5 + $0x600] sm:$0xff] }
  0xb3   : > { %719 = vmatprep.subr.mxu0 %v600_v18  ;;  %v636_v18 = vld [vmem:[%s2059_s5 + $0x5f8] sm:$0xff] }
 0x162   : > { %v343_v20 = vpop.f32.mrf.mxu1 }
 0x163   : > { %v344_v21 = vadd.f32 %v343_v20, %v296_v19  ;;  %v593_v20 = vld [vmem:[%s2059_s5 + $0x4a0] sm:$0xff] }
 0x164   : > { %v345_v22 = vpop.f32.mrf.mxu1 }
 0x165   : > { %v350_v23 = vmul.f32 0.2, %v344_v21  ;;  %v346_v24 = vadd.f32 %v345_v22, %v296_v19  ;;  %v599_v19 = vld [vmem:[%s2059_s5 + $0x4d0] sm:$0xff]  ;;  %v586_v22 = vld [vmem:[%s2059_s5 + $0x468] sm:$0xff] }
 0x166   : > { %v347_v25 = vpop.f32.mrf.mxu1  ;;  %720 = vmatpush2.msra.mxu0 %v599_v19  ;;  %v630_v19 = vld [vmem:[%s2059_s5 + $0x5c8] sm:$0xff] }
 0x167   : > { %v1307_v26 = vmax.f32 %v344_v21, %v350_v23  ;;  %v351_v27 = vmul.f32 0.2, %v346_v24  ;;  %v592_v21 = vld [vmem:[%s2059_s5 + $0x498] sm:$0xff]  ;;  %721 = vmatprep.subr.mxu0 %v593_v20  ;;  %v585_v23 = vld [vmem:[%s2059_s5 + $0x460] sm:$0xff]  ;;  %v578_v25 = vld [vmem:[%s2059_s5 + $0x428] sm:$0xff] }
 0x168   : > { %v348_v28 = vpop.f32.mrf.mxu1  ;;  %722 = vmatpush2.msra.mxu0 %v592_v21  ;;  %v629_v20 = vld [vmem:[%s2059_s5 + $0x5c0] sm:$0xff]  ;;  %v623_v21 = vld [vmem:[%s2059_s5 + $0x590] sm:$0xff] }
 0x169   : > { %v1309_v29 = vmax.f32 %v346_v24, %v351_v27  ;;  %357 = vrot.lane.b32.xlu0 %v1307_v26, %s1192_s14  ;;  %368 = vrot.lane.b32.xlu1 %v1307_v26, %s1193_s15  ;;  %v579_v24 = vld [vmem:[%s2059_s5 + $0x430] sm:$0xff]  ;;  %v572_v27 = vld [vmem:[%s2059_s5 + $0x3f8] sm:$0xff] }
 0x16a   : > { %723 = vmatprep.subr.mxu0 %v586_v22  ;;  %v622_v22 = vld [vmem:[%s2059_s5 + $0x588] sm:$0xff] }
 0x16b   : > { %724 = vmatpush2.msra.mxu0 %v585_v23  ;;  %v616_v23 = vld [vmem:[%s2059_s5 + $0x558] sm:$0xff] }
 0x16c   : > { %725 = vmatprep.subr.mxu0 %v579_v24  ;;  %v615_v24 = vld [vmem:[%s2059_s5 + $0x550] sm:$0xff] }
 0x16d   : > { %392 = vperm.xlu0 %1128, %v389_v30   ;;  %370 = vrot.lane.b32.xlu1 %v1309_v29, %s1193_s15  ;;  %s1129_s15 = scalar_lea.vmem %s976_s11, 896 }
 0x16e   : > { %726 = vmatpush2.msra.mxu0 %v578_v25  ;;  %v609_v25 = vld [vmem:[%s2059_s5 + $0x520] sm:$0xff]  ;;  %p1130_p11 = scmp.ne.s32.totalorder %s976_s11, %s1129_s15  ;;  %p1137_p1 = scmp.lt.s32.totalorder %s1135_s25, %s1129_s15 }
 0x16f   : > { %727 = vmatprep.subr.mxu0 %v572_v27  ;;  %v608_v27 = vld [vmem:[%s2059_s5 + $0x518] sm:$0xff] }
 0x170   : > { %p1131_p12 = pnand %p1130_p11, %p1269_p5  ;;  %p1138_p2 = por %p1137_p1, %p1136_p0 }
 0x171   : > { %359 = vrot.lane.b32.xlu1 %v1309_v29, %s1192_s14  ;;  %s961_s14 = scalar_lea.sflag [#allocation4], %s242_s28 }
 0x172   : > { %p1132_p13 = pneg %p1131_p12 }
 0x174   : > { %p1139_p3 = pnand %p1138_p2, %p1132_p13 }
 0x1db   : > { %v358_v28 = vpop.permute.xlu0 %357  ;;  %v369_v30 = vpop.permute.xlu1 %368 }
 0x1dc   : > { %364 = vst.msk [vmem:[#allocation2] sm:$0xff] %vm264_vm1, %v358_v28 }
 0x1df   : > { %v371_v31 = vpop.permute.xlu1 %370 }
 0x1e0   : > { %v372_v32 = vsel %vm273_vm2, %v369_v30, %v371_v31  ;;  %376 = vst.msk [vmem:[#allocation2 + $0x28] sm:$0xff] %vm273_vm2, %v371_v31  ;;  %v601_v30 = vld [vmem:[%s2059_s5 + $0x4e0] sm:$0xff]  ;;  %v595_v31 = vld [vmem:[%s2059_s5 + $0x4b0] sm:$0xff] }
 0x1e1   : > { %377 = vst.msk [vmem:[#allocation2 + $0x28] sm:$0xff] %vm279_vm3, %v1191_v0  ;;  %v387_v35 = vpack.c.bf16 %v372_v32, %v372_v32  ;;  %v553_v0 = vld [vmem:[%s2059_s5 + $0x360] sm:$0xff]  ;;  %v594_v32 = vld [vmem:[%s2059_s5 + $0x4a8] sm:$0xff] }
 0x1e3   : > { %v360_v33 = vpop.permute.xlu1 %359  ;;  %v399_v38 = vsel %vm302_vm4, %v387_v35, 0  ;;  %v379_v40 = vld [vmem:[#allocation2] sm:$0xff] }
 0x1e4   : > { %v361_v34 = vsel %vm253_vm0, %v358_v28, %v360_v33  ;;  %v385_v41 = vpack.c.bf16 %v1307_v26, %v379_v40  ;;  %v545_v26 = vld [vmem:[%s2059_s5 + $0x320] sm:$0xff]  ;;  %v602_v28 = vld [vmem:[%s2059_s5 + $0x4e8] sm:$0xff]  ;;  %v588_v33 = vld [vmem:[%s2059_s5 + $0x478] sm:$0xff] }
 0x1e5   : > { %v386_v39 = vpack.c.bf16 %v1309_v29, %v361_v34  ;;  %v546_v29 = vld [vmem:[%s2059_s5 + $0x328] sm:$0xff]  ;;  %v587_v34 = vld [vmem:[%s2059_s5 + $0x470] sm:$0xff]  ;;  %v581_v35 = vld [vmem:[%s2059_s5 + $0x440] sm:$0xff] }
 0x1e6   : > { %v565_v40 = vld [vmem:[%s2059_s5 + $0x3c0] sm:$0xff] }
 0x1e8   : > { %v384_v36 = vld [vmem:[#allocation2 + $0x28] sm:$0xff] }
 0x1e9   : > { %v388_v37 = vpack.c.bf16 %v384_v36, %v384_v36  ;;  %v580_v36 = vld [vmem:[%s2059_s5 + $0x438] sm:$0xff] }
 0x1eb   : > { %1042 = vmatprep.subr.msk.bf16.mxu1 %vm302_vm4, %v388_v37  ;;  %v574_v37 = vld [vmem:[%s2059_s5 + $0x408] sm:$0xff] }
 0x1ec   : > { %417 = vmatpush1.bf16.msra.mxu1 %v399_v38  ;;  %v571_v38 = vld [vmem:[%s2059_s5 + $0x3f0] sm:$0xff] }
 0x1ed   : > { %418 = vmatprep.subr.bf16.mxu1 %v386_v39  ;;  %v573_v39 = vld [vmem:[%s2059_s5 + $0x400] sm:$0xff]  ;;  %728 = vmatpush2.msra.mxu0 %v571_v38  ;;  %v479_v38 = vld [vmem:[%s2059_s5 + $0x110] sm:$0xff] }
 0x1ee   : > { %729 = vmatprep.subr.mxu0 %v565_v40  ;;  %v584_v40 = vld [vmem:[%s2059_s5 + $0x458] sm:$0xff] }
 0x1f0   : > { %419 = vmatpush1.bf16.msra.mxu1 %v385_v41  ;;  %v567_v41 = vld [vmem:[%s2059_s5 + $0x3d0] sm:$0xff] }
 0x1f1   : > { %740 = vmatprep.subr.mxu1 %v553_v0  ;;  %v564_v0 = vld [vmem:[%s2059_s5 + $0x3b8] sm:$0xff] }
 0x1f2   : > { %730 = vmatpush2.msra.mxu0 %v564_v0  ;;  %v472_v0 = vld [vmem:[%s2059_s5 + $0xd8] sm:$0xff] }
 0x1f3   : > { %1043 = vmatmul.mubr.msk.bf16.vlgmr.msra.gmra.mxu1 %vm298_vm5, %v378_v42  ;;  %v566_v42 = vld [vmem:[%s2059_s5 + $0x3c8] sm:$0xff] }
 0x1f4   : > { %741 = vmatpush1.msra.mxu1 %v552_v43  ;;  %v558_v43 = vld [vmem:[%s2059_s5 + $0x388] sm:$0xff] }
 0x1f5   : > { %742 = vmatprep.subr.mxu1 %v546_v29  ;;  %v560_v29 = vld [vmem:[%s2059_s5 + $0x398] sm:$0xff]  ;;  %731 = vmatprep.subr.mxu0 %v558_v43  ;;  %v577_v43 = vld [vmem:[%s2059_s5 + $0x420] sm:$0xff] }
 0x1f6   : > { %743 = vmatpush1.msra.mxu1 %v545_v26  ;;  %v557_v26 = vld [vmem:[%s2059_s5 + $0x380] sm:$0xff] }
 0x1f7   : > { %744 = vmatprep.subr.mxu1 %v539_v44  ;;  %v559_v44 = vld [vmem:[%s2059_s5 + $0x390] sm:$0xff]  ;;  %732 = vmatpush2.msra.mxu0 %v557_v26  ;;  %v465_v26 = vld [vmem:[%s2059_s5 + $0xa0] sm:$0xff] }
 0x1f8   : > { %745 = vmatpush1.msra.mxu1 %v538_v45  ;;  %v555_v45 = vld [vmem:[%s2059_s5 + $0x370] sm:$0xff] }
 0x1f9   : > { %746 = vmatprep.subr.mxu1 %v532_v46  ;;  %v668_v46 = vld [vmem:[%s2059_s5 + $0x6f8] sm:$0xff]  ;;  %811 = vmatprep.subr.mxu0 %v555_v45  ;;  %v570_v45 = vld [vmem:[%s2059_s5 + $0x3e8] sm:$0xff] }
 0x1fa   : > { %747 = vmatpush1.msra.mxu1 %v531_v47 }
 0x1fb   : > { %748 = vmatprep.subr.mxu1 %v525_v48  ;;  %v393_v48 = vpop.permute.xlu0 %392 }
 0x1fc   : > { %749 = vmatpush1.msra.mxu1 %v524_v49 }
 0x1fd   : > { %750 = vmatprep.subr.mxu1 %v518_v50 }
 0x1fe   : > { %751 = vmatpush1.msra.mxu1 %v517_v51 }
 0x1ff   : > { %752 = vmatprep.subr.mxu1 %v511_v52 }
 0x200   : > { %753 = vmatpush1.msra.mxu1 %v510_v53  ;;  %v554_v53 = vld [vmem:[%s2059_s5 + $0x368] sm:$0xff] }
 0x201   : > { %754 = vmatprep.subr.mxu1 %v504_v54  ;;  %v556_v54 = vld [vmem:[%s2059_s5 + $0x378] sm:$0xff] }
 0x202   : > { %755 = vmatpush1.msra.mxu1 %v503_v55  ;;  %v548_v55 = vld [vmem:[%s2059_s5 + $0x338] sm:$0xff] }
 0x203   : > { %756 = vmatprep.subr.mxu1 %v497_v56 }
 0x204   : > { %757 = vmatpush1.msra.mxu1 %v496_v57  ;;  %v661_v57 = vld [vmem:[%s2059_s5 + $0x6c0] sm:$0xff] }
 0x205   : > { %758 = vmatprep.subr.mxu1 %v490_v58  ;;  %v547_v58 = vld [vmem:[%s2059_s5 + $0x330] sm:$0xff] }
 0x206   : > { %759 = vmatpush1.msra.mxu1 %v489_v59  ;;  %v549_v59 = vld [vmem:[%s2059_s5 + $0x340] sm:$0xff] }
 0x207   : > { %760 = vmatprep.subr.mxu1 %v483_v60  ;;  %v541_v60 = vld [vmem:[%s2059_s5 + $0x300] sm:$0xff] }
 0x208   : > { %761 = vmatpush1.msra.mxu1 %v482_v61  ;;  %v654_v61 = vld [vmem:[%s2059_s5 + $0x688] sm:$0xff] }
 0x209   : > { %762 = vmatprep.subr.mxu1 %v476_v62  ;;  %v540_v62 = vld [vmem:[%s2059_s5 + $0x2f8] sm:$0xff] }
 0x20a   : > { %763 = vmatpush1.msra.mxu1 %v475_v63  ;;  %v542_v63 = vld [vmem:[%s2059_s5 + $0x308] sm:$0xff] }
 0x20b   : > { %764 = vmatprep.subr.mxu1 %v469_v1  ;;  %v534_v1 = vld [vmem:[%s2059_s5 + $0x2c8] sm:$0xff] }
 0x20c   : > { %765 = vmatpush1.msra.mxu1 %v468_v2  ;;  %v647_v2 = vld [vmem:[%s2059_s5 + $0x650] sm:$0xff] }
 0x20d   : > { %766 = vmatprep.subr.mxu1 %v462_v3  ;;  %v533_v3 = vld [vmem:[%s2059_s5 + $0x2c0] sm:$0xff] }
 0x20e   : > { %767 = vmatpush1.msra.mxu1 %v461_v4  ;;  %v535_v4 = vld [vmem:[%s2059_s5 + $0x2d0] sm:$0xff] }
 0x20f   : > { %768 = vmatprep.subr.mxu1 %v455_v5  ;;  %v527_v5 = vld [vmem:[%s2059_s5 + $0x290] sm:$0xff] }
 0x210   : > { %769 = vmatpush1.msra.mxu1 %v454_v6  ;;  %v640_v6 = vld [vmem:[%s2059_s5 + $0x618] sm:$0xff] }
 0x211   : > { %770 = vmatprep.subr.mxu1 %v448_v7  ;;  %v526_v7 = vld [vmem:[%s2059_s5 + $0x288] sm:$0xff] }
 0x212   : > { %771 = vmatpush1.msra.mxu1 %v447_v8  ;;  %v528_v8 = vld [vmem:[%s2059_s5 + $0x298] sm:$0xff] }
 0x213   : > { %772 = vmatprep.subr.mxu1 %v665_v9  ;;  %v520_v9 = vld [vmem:[%s2059_s5 + $0x258] sm:$0xff] }
 0x214   : > { %773 = vmatpush2.msra.mxu1 %v664_v10  ;;  %v633_v10 = vld [vmem:[%s2059_s5 + $0x5e0] sm:$0xff] }
 0x215   : > { %774 = vmatprep.subr.mxu1 %v658_v11  ;;  %v519_v11 = vld [vmem:[%s2059_s5 + $0x250] sm:$0xff] }
 0x216   : > { %775 = vmatpush2.msra.mxu1 %v657_v12  ;;  %v521_v12 = vld [vmem:[%s2059_s5 + $0x260] sm:$0xff] }
 0x217   : > { %776 = vmatprep.subr.mxu1 %v651_v13  ;;  %v513_v13 = vld [vmem:[%s2059_s5 + $0x220] sm:$0xff] }
 0x218   : > { %777 = vmatpush2.msra.mxu1 %v650_v14  ;;  %v626_v14 = vld [vmem:[%s2059_s5 + $0x5a8] sm:$0xff] }
 0x219   : > { %778 = vmatprep.subr.mxu1 %v644_v15  ;;  %v512_v15 = vld [vmem:[%s2059_s5 + $0x218] sm:$0xff] }
 0x21a   : > { %779 = vmatpush2.msra.mxu1 %v643_v16  ;;  %v514_v16 = vld [vmem:[%s2059_s5 + $0x228] sm:$0xff] }
 0x21b   : > { %780 = vmatprep.subr.mxu1 %v637_v17  ;;  %v506_v17 = vld [vmem:[%s2059_s5 + $0x1e8] sm:$0xff] }
 0x21c   : > { %781 = vmatpush2.msra.mxu1 %v636_v18  ;;  %v619_v18 = vld [vmem:[%s2059_s5 + $0x570] sm:$0xff] }
 0x21d   : > { %782 = vmatprep.subr.mxu1 %v630_v19  ;;  %v505_v19 = vld [vmem:[%s2059_s5 + $0x1e0] sm:$0xff] }
 0x21e   : > { %783 = vmatpush2.msra.mxu1 %v629_v20  ;;  %v507_v20 = vld [vmem:[%s2059_s5 + $0x1f0] sm:$0xff] }
 0x21f   : > { %784 = vmatprep.subr.mxu1 %v623_v21  ;;  %v499_v21 = vld [vmem:[%s2059_s5 + $0x1b0] sm:$0xff] }
 0x220   : > { %785 = vmatpush2.msra.mxu1 %v622_v22  ;;  %v612_v22 = vld [vmem:[%s2059_s5 + $0x538] sm:$0xff] }
 0x221   : > { %786 = vmatprep.subr.mxu1 %v616_v23  ;;  %v498_v23 = vld [vmem:[%s2059_s5 + $0x1a8] sm:$0xff] }
 0x222   : > { %787 = vmatpush2.msra.mxu1 %v615_v24  ;;  %v500_v24 = vld [vmem:[%s2059_s5 + $0x1b8] sm:$0xff] }
 0x223   : > { %788 = vmatprep.subr.mxu1 %v609_v25  ;;  %v492_v25 = vld [vmem:[%s2059_s5 + $0x178] sm:$0xff] }
 0x224   : > { %789 = vmatpush2.msra.mxu1 %v608_v27  ;;  %v605_v27 = vld [vmem:[%s2059_s5 + $0x500] sm:$0xff] }
 0x225   : > { %790 = vmatprep.subr.mxu1 %v602_v28  ;;  %v491_v28 = vld [vmem:[%s2059_s5 + $0x170] sm:$0xff] }
 0x226   : > { %791 = vmatpush2.msra.mxu1 %v601_v30  ;;  %v493_v30 = vld [vmem:[%s2059_s5 + $0x180] sm:$0xff] }
 0x227   : > { %792 = vmatprep.subr.mxu1 %v595_v31  ;;  %v485_v31 = vld [vmem:[%s2059_s5 + $0x140] sm:$0xff] }
 0x228   : > { %793 = vmatpush2.msra.mxu1 %v594_v32  ;;  %v598_v32 = vld [vmem:[%s2059_s5 + $0x4c8] sm:$0xff] }
 0x229   : > { %794 = vmatprep.subr.mxu1 %v588_v33  ;;  %v484_v33 = vld [vmem:[%s2059_s5 + $0x138] sm:$0xff] }
 0x22a   : > { %795 = vmatpush2.msra.mxu1 %v587_v34  ;;  %v486_v34 = vld [vmem:[%s2059_s5 + $0x148] sm:$0xff] }
 0x22b   : > { %796 = vmatprep.subr.mxu1 %v581_v35  ;;  %v478_v35 = vld [vmem:[%s2059_s5 + $0x108] sm:$0xff] }
 0x22c   : > { %797 = vmatpush2.msra.mxu1 %v580_v36  ;;  %v591_v36 = vld [vmem:[%s2059_s5 + $0x490] sm:$0xff] }
 0x22d   : > { %798 = vmatprep.subr.mxu1 %v574_v37  ;;  %v477_v37 = vld [vmem:[%s2059_s5 + $0x100] sm:$0xff] }
 0x22e   : > { %799 = vmatpush2.msra.mxu1 %v573_v39  ;;  %v471_v39 = vld [vmem:[%s2059_s5 + $0xd0] sm:$0xff] }
 0x22f   : > { %800 = vmatprep.subr.mxu1 %v567_v41  ;;  %v470_v41 = vld [vmem:[%s2059_s5 + $0xc8] sm:$0xff] }
 0x230   : > { %801 = vmatpush2.msra.mxu1 %v566_v42  ;;  %v464_v42 = vld [vmem:[%s2059_s5 + $0x98] sm:$0xff] }
 0x231   : > { %802 = vmatprep.subr.mxu1 %v560_v29  ;;  %v463_v29 = vld [vmem:[%s2059_s5 + $0x90] sm:$0xff] }
 0x232   : > { %803 = vmatpush2.msra.mxu1 %v559_v44  ;;  %v457_v44 = vld [vmem:[%s2059_s5 + $0x60] sm:$0xff] }
 0x233   : > { %1048 = vmatprep.subr.mxu1 %v668_v46  ;;  %v456_v46 = vld [vmem:[%s2059_s5 + $0x58] sm:$0xff] }
 0x2b3   : > { %v438_v47 = vpop.f32.mrf.mxu1 }
 0x2b4   : > { %v1726_v51 = vadd.f32 %v438_v47, %v393_v48  ;;  %v458_v47 = vld [vmem:[%s2059_s5 + $0x68] sm:$0xff] }
 0x2b5   : > { %v440_v49 = vpop.f32.mrf.mxu1 }
 0x2b6   : > { %v441_v50 = vadd.f32 %v440_v49, %v393_v48  ;;  %v450_v48 = vld [vmem:[%s2059_s5 + $0x28] sm:$0xff]  ;;  %v563_v49 = vld [vmem:[%s2059_s5 + $0x3b0] sm:$0xff] }
 0x2b7   : > { %v442_v52 = vpop.f32.mrf.mxu1 }
 0x2b8   : > { %733 = vmatprep.mubr.f32.mxu0 %v441_v50  ;;  %804 = vmatprep.mubr.f32.mxu1 %v441_v50  ;;  %v451_v52 = vld [vmem:[%s2059_s5 + $0x30] sm:$0xff] }
 0x2b9   : > { %v443_v56 = vpop.f32.mrf.mxu1  ;;  %734 = vmatmul.mubr.f32.vlgmr.msra.gmra.mxu0 %v1726_v51  ;;  %805 = vmatmul.mubr.f32.vlgmr.msra.gmra.mxu1 %v1726_v51 }
 0x2ba   : > { %812 = vmatpush1.msra.mxu0 %v554_v53  ;;  %1049 = vmatpush3.msra.mxu1 %v556_v54  ;;  %v667_v53 = vld [vmem:[%s2059_s5 + $0x6f0] sm:$0xff]  ;;  %v666_v54 = vld [vmem:[%s2059_s5 + $0x6e8] sm:$0xff] }
 0x2bb   : > { %813 = vmatprep.subr.mxu0 %v548_v55  ;;  %875 = vmatprep.mubr.f32.mxu0 %v441_v50  ;;  %v660_v55 = vld [vmem:[%s2059_s5 + $0x6b8] sm:$0xff]  ;;  %v659_v56 = vld [vmem:[%s2059_s5 + $0x6b0] sm:$0xff] }
 0x2bc   : > { %1050 = vmatprep.subr.mxu1 %v661_v57  ;;  %946 = vmatprep.mubr.f32.mxu1 %v441_v50  ;;  %v449_v50 = vld [vmem:[%s2059_s5 + $0x20] sm:$0xff] }
 0x2bd   : > { %814 = vmatpush1.msra.mxu0 %v547_v58  ;;  %1051 = vmatpush3.msra.mxu1 %v549_v59  ;;  %v653_v57 = vld [vmem:[%s2059_s5 + $0x680] sm:$0xff]  ;;  %v652_v58 = vld [vmem:[%s2059_s5 + $0x678] sm:$0xff]  ;;  %v646_v59 = vld [vmem:[%s2059_s5 + $0x648] sm:$0xff] }
 0x2be   : > { %815 = vmatprep.subr.mxu0 %v541_v60  ;;  %1052 = vmatprep.subr.mxu1 %v654_v61  ;;  %v645_v60 = vld [vmem:[%s2059_s5 + $0x640] sm:$0xff]  ;;  %v639_v61 = vld [vmem:[%s2059_s5 + $0x610] sm:$0xff] }
 0x2bf   : > { %816 = vmatpush1.msra.mxu0 %v540_v62  ;;  %1053 = vmatpush3.msra.mxu1 %v542_v63  ;;  %v638_v62 = vld [vmem:[%s2059_s5 + $0x608] sm:$0xff]  ;;  %v632_v63 = vld [vmem:[%s2059_s5 + $0x5d8] sm:$0xff] }
 0x2c0   : > { %817 = vmatprep.subr.mxu0 %v534_v1  ;;  %1054 = vmatprep.subr.mxu1 %v647_v2  ;;  %v631_v1 = vld [vmem:[%s2059_s5 + $0x5d0] sm:$0xff]  ;;  %v625_v2 = vld [vmem:[%s2059_s5 + $0x5a0] sm:$0xff] }
 0x2c1   : > { %818 = vmatpush1.msra.mxu0 %v533_v3  ;;  %1055 = vmatpush3.msra.mxu1 %v535_v4  ;;  %v624_v3 = vld [vmem:[%s2059_s5 + $0x598] sm:$0xff]  ;;  %v618_v4 = vld [vmem:[%s2059_s5 + $0x568] sm:$0xff] }
 0x2c2   : > { %819 = vmatprep.subr.mxu0 %v527_v5  ;;  %1056 = vmatprep.subr.mxu1 %v640_v6  ;;  %v617_v5 = vld [vmem:[%s2059_s5 + $0x560] sm:$0xff]  ;;  %v611_v6 = vld [vmem:[%s2059_s5 + $0x530] sm:$0xff] }
 0x2c3   : > { %820 = vmatpush1.msra.mxu0 %v526_v7  ;;  %1057 = vmatpush3.msra.mxu1 %v528_v8  ;;  %v610_v7 = vld [vmem:[%s2059_s5 + $0x528] sm:$0xff]  ;;  %v604_v8 = vld [vmem:[%s2059_s5 + $0x4f8] sm:$0xff] }
 0x2c4   : > { %821 = vmatprep.subr.mxu0 %v520_v9  ;;  %1058 = vmatprep.subr.mxu1 %v633_v10  ;;  %v603_v9 = vld [vmem:[%s2059_s5 + $0x4f0] sm:$0xff]  ;;  %v597_v10 = vld [vmem:[%s2059_s5 + $0x4c0] sm:$0xff] }
 0x2c5   : > { %822 = vmatpush1.msra.mxu0 %v519_v11  ;;  %1059 = vmatpush3.msra.mxu1 %v521_v12  ;;  %v596_v11 = vld [vmem:[%s2059_s5 + $0x4b8] sm:$0xff]  ;;  %v590_v12 = vld [vmem:[%s2059_s5 + $0x488] sm:$0xff] }
 0x2c6   : > { %823 = vmatprep.subr.mxu0 %v513_v13  ;;  %1060 = vmatprep.subr.mxu1 %v626_v14  ;;  %v589_v13 = vld [vmem:[%s2059_s5 + $0x480] sm:$0xff]  ;;  %v583_v14 = vld [vmem:[%s2059_s5 + $0x450] sm:$0xff] }
 0x2c7   : > { %824 = vmatpush1.msra.mxu0 %v512_v15  ;;  %1061 = vmatpush3.msra.mxu1 %v514_v16  ;;  %v582_v15 = vld [vmem:[%s2059_s5 + $0x448] sm:$0xff]  ;;  %v576_v16 = vld [vmem:[%s2059_s5 + $0x418] sm:$0xff] }
 0x2c8   : > { %825 = vmatprep.subr.mxu0 %v506_v17  ;;  %1062 = vmatprep.subr.mxu1 %v619_v18  ;;  %v575_v17 = vld [vmem:[%s2059_s5 + $0x410] sm:$0xff]  ;;  %v569_v18 = vld [vmem:[%s2059_s5 + $0x3e0] sm:$0xff] }
 0x2c9   : > { %826 = vmatpush1.msra.mxu0 %v505_v19  ;;  %1063 = vmatpush3.msra.mxu1 %v507_v20  ;;  %v568_v19 = vld [vmem:[%s2059_s5 + $0x3d8] sm:$0xff]  ;;  %v562_v20 = vld [vmem:[%s2059_s5 + $0x3a8] sm:$0xff] }
 0x2ca   : > { %827 = vmatprep.subr.mxu0 %v499_v21  ;;  %1064 = vmatprep.subr.mxu1 %v612_v22  ;;  %v561_v21 = vld [vmem:[%s2059_s5 + $0x3a0] sm:$0xff] }
 0x2cb   : > { %828 = vmatpush1.msra.mxu0 %v498_v23  ;;  %1065 = vmatpush3.msra.mxu1 %v500_v24 }
 0x2cc   : > { %829 = vmatprep.subr.mxu0 %v492_v25  ;;  %1066 = vmatprep.subr.mxu1 %v605_v27 }
 0x2cd   : > { %830 = vmatpush1.msra.mxu0 %v491_v28  ;;  %1067 = vmatpush3.msra.mxu1 %v493_v30 }
 0x2ce   : > { %831 = vmatprep.subr.mxu0 %v485_v31  ;;  %1068 = vmatprep.subr.mxu1 %v598_v32 }
 0x2cf   : > { %832 = vmatpush1.msra.mxu0 %v484_v33  ;;  %1069 = vmatpush3.msra.mxu1 %v486_v34 }
 0x2d0   : > { %833 = vmatprep.subr.mxu0 %v478_v35  ;;  %1070 = vmatprep.subr.mxu1 %v591_v36 }
 0x2d1   : > { %834 = vmatpush1.msra.mxu0 %v477_v37  ;;  %1071 = vmatpush3.msra.mxu1 %v479_v38 }
 0x2d2   : > { %835 = vmatprep.subr.mxu0 %v471_v39  ;;  %1072 = vmatprep.subr.mxu1 %v584_v40 }
 0x2d3   : > { %836 = vmatpush1.msra.mxu0 %v470_v41  ;;  %1073 = vmatpush3.msra.mxu1 %v472_v0 }
 0x2d4   : > { %837 = vmatprep.subr.mxu0 %v464_v42  ;;  %1074 = vmatprep.subr.mxu1 %v577_v43 }
 0x2d5   : > { %838 = vmatpush1.msra.mxu0 %v463_v29  ;;  %1075 = vmatpush3.msra.mxu1 %v465_v26 }
 0x2d6   : > { %839 = vmatprep.subr.mxu0 %v457_v44  ;;  %1076 = vmatprep.subr.mxu1 %v570_v45 }
 0x2d7   : > { %840 = vmatpush1.msra.mxu0 %v456_v46  ;;  %1077 = vmatpush3.msra.mxu1 %v458_v47 }
 0x2d8   : > { %841 = vmatprep.subr.mxu0 %v450_v48  ;;  %1078 = vmatprep.subr.mxu1 %v563_v49 }
 0x2d9   : > { %842 = vmatpush1.msra.mxu0 %v449_v50  ;;  %1079 = vmatpush3.msra.mxu1 %v451_v52 }
 0x2da   : > { %843 = vmatprep.subr.mxu0 %v667_v53  ;;  %947 = vmatmul.mubr.f32.vlgmr.msra.gmra.mxu1 %v1726_v51 }
 0x2db   : > { %844 = vmatpush2.msra.mxu0 %v666_v54 }
 0x2dc   : > { %845 = vmatprep.subr.mxu0 %v660_v55 }
 0x2dd   : > { %846 = vmatpush2.msra.mxu0 %v659_v56 }
 0x2de   : > { %847 = vmatprep.subr.mxu0 %v653_v57 }
 0x2df   : > { %848 = vmatpush2.msra.mxu0 %v652_v58 }
 0x2e0   : > { %849 = vmatprep.subr.mxu0 %v646_v59 }
 0x2e1   : > { %850 = vmatpush2.msra.mxu0 %v645_v60 }
 0x2e2   : > { %851 = vmatprep.subr.mxu0 %v639_v61 }
 0x2e3   : > { %852 = vmatpush2.msra.mxu0 %v638_v62 }
 0x2e4   : > { %853 = vmatprep.subr.mxu0 %v632_v63 }
 0x2e5   : > { %854 = vmatpush2.msra.mxu0 %v631_v1 }
 0x2e6   : > { %855 = vmatprep.subr.mxu0 %v625_v2 }
 0x2e7   : > { %856 = vmatpush2.msra.mxu0 %v624_v3 }
 0x2e8   : > { %857 = vmatprep.subr.mxu0 %v618_v4 }
 0x2e9   : > { %858 = vmatpush2.msra.mxu0 %v617_v5 }
 0x2ea   : > { %859 = vmatprep.subr.mxu0 %v611_v6 }
 0x2eb   : > { %860 = vmatpush2.msra.mxu0 %v610_v7 }
 0x2ec   : > { %861 = vmatprep.subr.mxu0 %v604_v8 }
 0x2ed   : > { %862 = vmatpush2.msra.mxu0 %v603_v9 }
 0x2ee   : > { %863 = vmatprep.subr.mxu0 %v597_v10 }
 0x2ef   : > { %864 = vmatpush2.msra.mxu0 %v596_v11 }
 0x2f0   : > { %865 = vmatprep.subr.mxu0 %v590_v12 }
 0x2f1   : > { %866 = vmatpush2.msra.mxu0 %v589_v13 }
 0x2f2   : > { %867 = vmatprep.subr.mxu0 %v583_v14 }
 0x2f3   : > { %868 = vmatpush2.msra.mxu0 %v582_v15 }
 0x2f4   : > { %869 = vmatprep.subr.mxu0 %v576_v16 }
 0x2f5   : > { %870 = vmatpush2.msra.mxu0 %v575_v17 }
 0x2f6   : > { %871 = vmatprep.subr.mxu0 %v569_v18 }
 0x2f7   : > { %872 = vmatpush2.msra.mxu0 %v568_v19 }
 0x2f8   : > { %873 = vmatprep.subr.mxu0 %v562_v20 }
 0x2f9   : > { %874 = vmatpush2.msra.mxu0 %v561_v21 }
 0x2fa   : > { %876 = vmatmul.mubr.f32.vlgmr.msra.gmra.mxu0 %v1726_v51 }
 0x379   : > { %v735_v22 = vpop.f32.mrf.mxu0  ;;  %v806_v23 = vpop.f32.mrf.mxu1 }
 0x37a   : > { %952 = vst [vmem:[%s244_s9] sm:$0xff] %v735_v22  ;;  %954 = vst [vmem:[%s244_s9 + $0x10] sm:$0xff] %v806_v23 }
 0x37b   : > { %v737_v24 = vpop.f32.mrf.mxu0  ;;  %v808_v25 = vpop.f32.mrf.mxu1 }
 0x37c   : > { %953 = vst [vmem:[%s244_s9 + $0x8] sm:$0xff] %v737_v24  ;;  %955 = vst [vmem:[%s244_s9 + $0x18] sm:$0xff] %v808_v25 }
 0x39a   : > { %v1080_v27 = vpop.f32.mrf.mxu1 }
 0x39c   : > { %v1081_v28 = vpop.f32.mrf.mxu1 }
 0x39d   : > { %v1082_v30 = vadd.f32 %v1081_v28, %v1080_v27 }
 0x39f   : > { %959 = vst.msk [vmem:[%s244_s9 + $0x30] sm:$0xff] %vm958_vm6, %v1082_v30 }
 0x3ba   : > { %v877_v51 = vpop.f32.mrf.mxu0 }
 0x3bb   : > { %956 = vst [vmem:[%s244_s9 + $0x20] sm:$0xff] %v877_v51 }
 0x3bc   : > { %v879_v31 = vpop.f32.mrf.mxu0 }
 0x3bd   : > { %957 = vst [vmem:[%s244_s9 + $0x28] sm:$0xff] %v879_v31 }
 0x3be   : > { %1142 = shalt.err (!%p1139_p3)
}
 0x3bf   : > { %s1143_s19 = scalar_lea.hbm %s2019_s16, 896  ;;  %s1147_s28 = scalar_lea.hbm %s2060_s6, 1792 }
 0x3c0   : > { %p1144_p4 = scmp.ne.s32.totalorder %s2019_s16, %s1143_s19  ;;  %p1148_p9 = scmp.lt.s32.totalorder %s2019_s16, %s2060_s6 }
 0x3c1   : > { %p1149_p10 = scmp.lt.s32.totalorder %s1147_s28, %s1143_s19 }
 0x3c2   : > { %p1145_p7 = pnand %p1144_p4, %p1269_p5 }
 0x3c3   : > { %p1150_p11 = por %p1149_p10, %p1148_p9 }
 0x3c4   : > { %p1146_p8 = pneg %p1145_p7 }
 0x3c6   : > { %p1151_p12 = pnand %p1150_p11, %p1146_p8 }
 0x3c8   : > { %1154 = shalt.err (!%p1151_p12)
}
 0x3c9   : > { %1085 = dma.vmem_to_hbm [thread:$0]  (%p1269_p5), %s976_s11, 896, %s2019_s16, %s961_s14  }
 0x3ca PF: > { %p1091_p13 = scmp.ge.s32.totalorder %s1189_s24, 2  ;;  %s987_s10 = sand.u32 1, %s1177_s21  }
 0x3cb   : > { %s988_s12 = scalar_lea.sflag [#allocation4], %s987_s10 }
 0x3cc   : > { %p1088_p0 = pnand %p1091_p13, %p1273_p6 }
 0x3ce   : > { %p1089_p1 = pneg %p1088_p0 }
 0x3d0   : > { %1172 = dma.done.wait (%p1089_p1), %s988_s12, 896  }
 0x3d1   : > { %1174 = vsyncadd (%p1089_p1), %s988_s12, 4294966400  ;;  %p16_p2 = scmp.ge.s32.totalorder %s1256_s27, 4   ;;  %s2063_s21 = smov %s1181_s22 }
 0x3d2   : > { %s2064_s22 = smov %s1185_s23  ;;  %s2065_s23 = smov %s1267_s30 }
 0x3d3   : > { %s2066_s24 = smov %s1256_s27  ;;  %18 = sbr.rel (!%p16_p2) target bundleno = 3 (0x3), region = 79 }
 0x3d8   :  { %993 = vsyncpa [#allocation4], 1 }
 0x3d9   :  { %995 = vsyncpa [#allocation4 + $0x1], 1 }

</bundles_post_ra>
